<compile_context>
chip_gen: v7x
topology: tpu7x:2x2x1
jax: 0.10.0
libtpu: 0.0.40
codegen_flags: <defaults>
</compile_context>

<pallas_src>
import functools

import jax
import jax.numpy as jnp
from jax import lax
from jax.experimental import pallas as pl
from jax.experimental.pallas import tpu as pltpu

EMB = 40
H_EEG = 62          # Conv2d(40, 40, (62, 1)) forces input height == 62
KW1 = 25            # temporal kernel of the first conv
POOL_K, POOL_S = 75, 15
BN_EPS = 1e-5


def _patch_embed_kernel(x_ref, w_ref, b_ref, pool_ref, wp_ref, bp_ref, o_ref,
                        acc_ref, *, w1_len, bblk, n_groups, g_stride):
    """One grid step processes `bblk` samples.

    x_ref   : (bblk, T, g*62)       bf16  tap-packed input (g taps stacked on lanes)
    w_ref   : (n_groups, g*62, 40)  bf16  fused conv1*conv2 weight, BN scale folded in
    b_ref   : (1, 40)               f32   fused conv bias + BN shift
    pool_ref: (W2, W1)              bf16  0/1 pooling windows (1/POOL_K folded into wp)
    wp_ref  : (40, emb)             bf16  projection weight pre-divided by POOL_K
    bp_ref  : (1, emb)              f32
    o_ref   : (bblk, W2, emb)       f32
    acc_ref : (bblk, W1, 40)        f32   conv accumulator (VMEM scratch)
    """
    n_out = w_ref.shape[2]

    # ---- fused temporal conv: group-outer / batch-inner so the (g*62, 40) RHS is
    # ---- loop-invariant (weight-stationary) across the whole batch block.
    for j in range(n_groups):                              # static, small (13 for g=2)
        w_j = w_ref[j]                                     # (g*62, 40), loaded once/group
        off = j * g_stride

        def conv_body(b, carry, _off=off, _w=w_j, _first=(j == 0)):
            lhs = x_ref[b, pl.ds(_off, w1_len), :]         # (W1, g*62) bf16
            contrib = jnp.dot(lhs, _w, preferred_element_type=jnp.float32)
            if _first:
                acc_ref[b] = contrib
            else:
                acc_ref[b] = acc_ref[b] + contrib
            return carry

        lax.fori_loop(0, bblk, conv_body, 0)

    # ---- epilogue: bias + ELU + avg-pool (matmul) + projection, per sample ----------
    # Hoist constant loads / broadcasts out of the batch loop.
    bias = jnp.broadcast_to(b_ref[...], (w1_len, n_out))               # (W1, 40)
    pool = pool_ref[...]                                               # (W2, W1) bf16
    wp = wp_ref[...]                                                   # (40, emb) bf16
    bp = jnp.broadcast_to(bp_ref[...], (pool.shape[0], wp.shape[1]))   # (W2, emb)

    def tail_body(b, carry):
        y = acc_ref[b] + bias                                          # (W1, 40) f32
        y = jnp.where(y > 0.0, y, jnp.exp(jnp.minimum(y, 0.0)) - 1.0)  # ELU(alpha=1)
        pooled = jnp.dot(pool, y.astype(jnp.bfloat16),
                         preferred_element_type=jnp.float32)           # (W2, 40)
        out = jnp.dot(pooled.astype(jnp.bfloat16), wp,
                      preferred_element_type=jnp.float32) + bp         # (W2, emb)
        o_ref[b] = out.astype(o_ref.dtype)
        return carry

    lax.fori_loop(0, bblk, tail_body, 0)
    # TODO(synk): Dropout / Dropout2d are identity at inference and are not implemented.


def _pick_batch_block(B, cap=8):
    divisors = [d for d in range(1, min(B, cap) + 1) if B % d == 0]
    for d in sorted(divisors, reverse=True):
        if B // d >= 2:        # keep >= 2 grid steps for megacore / v7x's 2 TensorCores
            return d
    return divisors[-1]


def patch_embedding_forward(x, params, *, batch_block=None, group_size=2):
    (w1, b1, w2, b2, gamma, beta, rmean, rvar, wp, bp) = params
    B, c_in, H, T = x.shape
    assert c_in == 1 and H == H_EEG
    W1 = T - KW1 + 1
    assert W1 >= POOL_K, f"need T >= {KW1 + POOL_K - 1} so that the pooled width is > 0"
    W2 = (W1 - POOL_K) // POOL_S + 1
    emb = wp.shape[0]

    g = int(group_size)
    assert g >= 1
    n_groups = -(-KW1 // g)                                 # ceil(25 / g)

    if batch_block is None:
        batch_block = _pick_batch_block(B)
    assert B % batch_block == 0, "pad the batch (and drop padded rows) for ragged B"

    # ------------- plain-JAX glue: layout + exact (f32) parameter folding -------------
    # time-major raw input, then pack g consecutive taps along the lane axis so each
    # conv group is a single K = g*62 contraction (fills the 128-lane MXU tile).
    x_t = x[:, 0].transpose(0, 2, 1)                                    # (B, T, 62) f32
    chunks = [x_t]
    for m in range(1, g):
        chunks.append(jnp.pad(x_t[:, m:, :], ((0, 0), (0, m), (0, 0))))
    x_packed = jnp.concatenate(chunks, axis=-1).astype(jnp.bfloat16)    # (B, T, g*62)

    # exact fusion of Conv2d(1,40,(1,25)) ∘ Conv2d(40,40,(62,1)) + BatchNorm (inference)
    w_eff = jnp.einsum('oih,ik->ohk', w2[:, :, :, 0], w1[:, 0, 0, :])   # (40, 62, 25)
    b_eff = b2 + jnp.einsum('oih,i->o', w2[:, :, :, 0], b1)             # (40,)
    inv_std = 1.0 / jnp.sqrt(rvar + BN_EPS)
    scale = gamma * inv_std
    shift = beta - rmean * scale
    w_kho = (w_eff * scale[:, None, None]).transpose(2, 1, 0)           # (25, 62, 40)
    b_fused = (b_eff * scale + shift)[None, :]                          # (1, 40) f32

    # pack taps into groups of g along the contraction axis; zero-pad the tail group
    pad_k = n_groups * g - KW1
    if pad_k:
        w_kho = jnp.concatenate(
            [w_kho, jnp.zeros((pad_k, H_EEG, w_kho.shape[2]), w_kho.dtype)], axis=0)
    w_packed = w_kho.reshape(n_groups, g * H_EEG, -1).astype(jnp.bfloat16)

    # pooling window matrix: 0/1 (exact in bf16); 1/POOL_K folded into the projection
    rows = jnp.arange(W2)[:, None] * POOL_S
    cols = jnp.arange(W1)[None, :]
    pool_ones = ((cols >= rows) & (cols < rows + POOL_K)).astype(jnp.bfloat16)  # (W2, W1)

    wp_scaled = (wp[:, :, 0, 0].T / POOL_K).astype(jnp.bfloat16)        # (40, emb)
    bp_row = bp[None, :].astype(jnp.float32)                            # (1, emb)

    kern = functools.partial(_patch_embed_kernel, w1_len=W1, bblk=batch_block,
                             n_groups=n_groups, g_stride=g)

    return pl.pallas_call(
        kern,
        out_shape=jax.ShapeDtypeStruct((B, W2, emb), jnp.float32),
        grid_spec=pltpu.PrefetchScalarGridSpec(
            num_scalar_prefetch=0,
            grid=(B // batch_block,),
            in_specs=[
                pl.BlockSpec((batch_block, T, g * H_EEG), lambda i: (i, 0, 0)),  # input
                pl.BlockSpec((n_groups, g * H_EEG, 40), lambda i: (0, 0, 0)),    # weights
                pl.BlockSpec((1, 40), lambda i: (0, 0)),                         # bias
                pl.BlockSpec((W2, W1), lambda i: (0, 0)),                        # pool
                pl.BlockSpec((40, emb), lambda i: (0, 0)),                       # proj W
                pl.BlockSpec((1, emb), lambda i: (0, 0)),                        # proj b
            ],
            out_specs=pl.BlockSpec((batch_block, W2, emb), lambda i: (i, 0, 0)),
            scratch_shapes=[pltpu.VMEM((batch_block, W1, 40), jnp.float32)],
        ),
        compiler_params=pltpu.CompilerParams(
            dimension_semantics=("parallel",)),
    )(x_packed, w_packed, b_fused, pool_ones, wp_scaled, bp_row)


def init_params(key, emb=EMB):
    ks = jax.random.split(key, 10)

    def u(k, shape, fan_in):
        bound = 1.0 / jnp.sqrt(float(fan_in))
        return jax.random.uniform(k, shape, jnp.float32, -bound, bound)

    w1 = u(ks[0], (40, 1, 1, KW1), 1 * 1 * KW1)          # Conv2d(1, 40, (1,25))
    b1 = u(ks[1], (40,), 1 * 1 * KW1)
    w2 = u(ks[2], (40, 40, H_EEG, 1), 40 * H_EEG)        # Conv2d(40, 40, (62,1))
    b2 = u(ks[3], (40,), 40 * H_EEG)
    gamma = jax.random.uniform(ks[4], (40,), jnp.float32, 0.5, 1.5)   # BatchNorm2d(40)
    beta = jax.random.uniform(ks[5], (40,), jnp.float32, -0.5, 0.5)
    rmean = jax.random.uniform(ks[6], (40,), jnp.float32, -0.1, 0.1)
    rvar = jax.random.uniform(ks[7], (40,), jnp.float32, 0.5, 1.5)
    wp = u(ks[8], (emb, 40, 1, 1), 40)                   # Conv2d(40, emb, (1,1))
    bp = u(ks[9], (emb,), 40)
    return (w1, b1, w2, b2, gamma, beta, rmean, rvar, wp, bp)


def reference_forward(x, params):
    """Pure-JAX f32 reference mirroring the PyTorch forward (eval mode)."""
    (w1, b1, w2, b2, gamma, beta, rmean, rvar, wp, bp) = params
    dn = ('NCHW', 'OIHW', 'NCHW')
    hi = lax.Precision.HIGHEST
    y = lax.conv_general_dilated(x, w1, (1, 1), 'VALID', dimension_numbers=dn,
                                 precision=hi)
    y = y + b1[None, :, None, None]
    y = lax.conv_general_dilated(y, w2, (1, 1), 'VALID', dimension_numbers=dn,
                                 precision=hi)
    y = y + b2[None, :, None, None]
    y = (y - rmean[None, :, None, None]) / jnp.sqrt(rvar[None, :, None, None] + BN_EPS)
    y = y * gamma[None, :, None, None] + beta[None, :, None, None]
    y = jnp.where(y > 0.0, y, jnp.exp(jnp.minimum(y, 0.0)) - 1.0)
    y = lax.reduce_window(y, 0.0, lax.add,
                          (1, 1, 1, POOL_K), (1, 1, 1, POOL_S), 'VALID') / POOL_K
    y = jnp.einsum('bchw,ec->behw', y, wp[:, :, 0, 0], precision=hi)
    y = y + bp[None, :, None, None]
    B, E, Hh, Ww = y.shape
    return y.transpose(0, 2, 3, 1).reshape(B, Hh * Ww, E)


if __name__ == "__main__":
    key = jax.random.PRNGKey(0)
    kx, kp = jax.random.split(key)
    B, T = 4, 129                        # small: W1 = 105, W2 = 3
    x = jax.random.normal(kx, (B, 1, H_EEG, T), jnp.float32)
    params = init_params(kp)

    out = patch_embedding_forward(x, params)   # auto batch_block=2 -> grid=(2,)
    out = jax.block_until_ready(out)

    ref = reference_forward(x, params)
    assert out.shape == ref.shape == (B, 3, EMB), (out.shape, ref.shape)
    # bf16 MXU inputs with f32 accumulation -> slightly looser tolerance than pure f32.
    if not jnp.allclose(out, ref, rtol=5e-3, atol=5e-3):
        err = jnp.max(jnp.abs(out - ref))
        raise AssertionError(f"mismatch vs reference, max abs err = {err}")
    print("KERNEL_OK")
</pallas_src>

<mosaic_0001>
module attributes {stable_mosaic.version = 11 : i64} {
  func.func @_patch_embed_kernel(%arg0: i32, %arg1: memref<2x129x124xbf16, #tpu.memory_space<vmem>>, %arg2: memref<13x124x40xbf16, #tpu.memory_space<vmem>>, %arg3: memref<1x40xf32, #tpu.memory_space<vmem>>, %arg4: memref<3x105xbf16, #tpu.memory_space<vmem>>, %arg5: memref<40x40xbf16, #tpu.memory_space<vmem>>, %arg6: memref<1x40xf32, #tpu.memory_space<vmem>>, %arg7: memref<2x3x40xf32, #tpu.memory_space<vmem>>, %arg8: memref<2x105x40xf32, #tpu.memory_space<vmem>>) attributes {dimension_semantics = [#tpu.dimension_semantics<parallel>], iteration_bounds = array<i64: 2>, scalar_prefetch = 0 : i64, scratch_operands = 1 : i64, tpu.core_type = #tpu.core_type<tc>, window_params = [{transform_indices = @transform_0, window_bounds = array<i64: 2, 129, 124>}, {pipeline_mode = #tpu.pipeline_mode<synchronous>, transform_indices = @transform_1, window_bounds = array<i64: 13, 124, 40>}, {pipeline_mode = #tpu.pipeline_mode<synchronous>, transform_indices = @transform_2, window_bounds = array<i64: 1, 40>}, {pipeline_mode = #tpu.pipeline_mode<synchronous>, transform_indices = @transform_3, window_bounds = array<i64: 3, 105>}, {pipeline_mode = #tpu.pipeline_mode<synchronous>, transform_indices = @transform_4, window_bounds = array<i64: 40, 40>}, {pipeline_mode = #tpu.pipeline_mode<synchronous>, transform_indices = @transform_5, window_bounds = array<i64: 1, 40>}, {transform_indices = @transform_6, window_bounds = array<i64: 2, 3, 40>}]} {
    %c0 = arith.constant 0 : index
    %c0_0 = arith.constant 0 : index
    %c0_1 = arith.constant 0 : index
    %0 = vector.load %arg2[%c0, %c0_0, %c0_1] : memref<13x124x40xbf16, #tpu.memory_space<vmem>>, vector<1x124x40xbf16>
    %1 = vector.shape_cast %0 : vector<1x124x40xbf16> to vector<124x40xbf16>
    %c0_i32 = arith.constant 0 : i32
    %c2_i32 = arith.constant 2 : i32
    %2 = arith.addi %c0_i32, %c2_i32 : i32
    %c1_i32 = arith.constant 1 : i32
    scf.for %arg9 = %c0_i32 to %2 step %c1_i32  : i32 {
      %48 = arith.index_cast %arg9 : i32 to index
      %c0_87 = arith.constant 0 : index
      %c0_88 = arith.constant 0 : index
      %49 = vector.load %arg1[%48, %c0_87, %c0_88] : memref<2x129x124xbf16, #tpu.memory_space<vmem>>, vector<1x105x124xbf16>
      %50 = vector.shape_cast %49 : vector<1x105x124xbf16> to vector<105x124xbf16>
      %cst = arith.constant dense<0.000000e+00> : vector<105x40xf32>
      %51 = tpu.matmul %50, %1, %cst {dimension_numbers = #tpu.dot_dimension_numbers<[1], [0], [0], [1], [0, 0, 1, 1], [], []>} : vector<105x124xbf16>, vector<124x40xbf16>, vector<105x40xf32> -> vector<105x40xf32>
      %52 = arith.index_cast %arg9 : i32 to index
      %c0_89 = arith.constant 0 : index
      %c0_90 = arith.constant 0 : index
      %53 = vector.load %arg8[%52, %c0_89, %c0_90] : memref<2x105x40xf32, #tpu.memory_space<vmem>>, vector<1x105x40xf32>
      %54 = vector.shape_cast %53 : vector<1x105x40xf32> to vector<105x40xf32>
      %55 = vector.shape_cast %51 : vector<105x40xf32> to vector<1x105x40xf32>
      tpu.vector_store %arg8[%52, %c0_89, %c0_90], %55 {strides = array<i32>} : memref<2x105x40xf32, #tpu.memory_space<vmem>>, vector<1x105x40xf32>,
    }
    %c2_i32_2 = arith.constant 2 : i32
    %c1 = arith.constant 1 : index
    %c0_3 = arith.constant 0 : index
    %c0_4 = arith.constant 0 : index
    %3 = vector.load %arg2[%c1, %c0_3, %c0_4] : memref<13x124x40xbf16, #tpu.memory_space<vmem>>, vector<1x124x40xbf16>
    %4 = vector.shape_cast %3 : vector<1x124x40xbf16> to vector<124x40xbf16>
    %c0_i32_5 = arith.constant 0 : i32
    %c2_i32_6 = arith.constant 2 : i32
    %5 = arith.addi %c0_i32_5, %c2_i32_6 : i32
    %c1_i32_7 = arith.constant 1 : i32
    scf.for %arg9 = %c0_i32_5 to %5 step %c1_i32_7  : i32 {
      %48 = arith.index_cast %arg9 : i32 to index
      %c2_87 = arith.constant 2 : index
      %c0_88 = arith.constant 0 : index
      %49 = vector.load %arg1[%48, %c2_87, %c0_88] : memref<2x129x124xbf16, #tpu.memory_space<vmem>>, vector<1x105x124xbf16>
      %50 = vector.shape_cast %49 : vector<1x105x124xbf16> to vector<105x124xbf16>
      %cst = arith.constant dense<0.000000e+00> : vector<105x40xf32>
      %51 = tpu.matmul %50, %4, %cst {dimension_numbers = #tpu.dot_dimension_numbers<[1], [0], [0], [1], [0, 0, 1, 1], [], []>} : vector<105x124xbf16>, vector<124x40xbf16>, vector<105x40xf32> -> vector<105x40xf32>
      %52 = arith.index_cast %arg9 : i32 to index
      %c0_89 = arith.constant 0 : index
      %c0_90 = arith.constant 0 : index
      %53 = vector.load %arg8[%52, %c0_89, %c0_90] : memref<2x105x40xf32, #tpu.memory_space<vmem>>, vector<1x105x40xf32>
      %54 = vector.shape_cast %53 : vector<1x105x40xf32> to vector<105x40xf32>
      %55 = arith.addf %54, %51 : vector<105x40xf32>
      %56 = arith.index_cast %arg9 : i32 to index
      %c0_91 = arith.constant 0 : index
      %c0_92 = arith.constant 0 : index
      %57 = vector.load %arg8[%56, %c0_91, %c0_92] : memref<2x105x40xf32, #tpu.memory_space<vmem>>, vector<1x105x40xf32>
      %58 = vector.shape_cast %57 : vector<1x105x40xf32> to vector<105x40xf32>
      %59 = vector.shape_cast %55 : vector<105x40xf32> to vector<1x105x40xf32>
      tpu.vector_store %arg8[%56, %c0_91, %c0_92], %59 {strides = array<i32>} : memref<2x105x40xf32, #tpu.memory_space<vmem>>, vector<1x105x40xf32>,
    }
    %c2_i32_8 = arith.constant 2 : i32
    %c2 = arith.constant 2 : index
    %c0_9 = arith.constant 0 : index
    %c0_10 = arith.constant 0 : index
    %6 = vector.load %arg2[%c2, %c0_9, %c0_10] : memref<13x124x40xbf16, #tpu.memory_space<vmem>>, vector<1x124x40xbf16>
    %7 = vector.shape_cast %6 : vector<1x124x40xbf16> to vector<124x40xbf16>
    %c0_i32_11 = arith.constant 0 : i32
    %c2_i32_12 = arith.constant 2 : i32
    %8 = arith.addi %c0_i32_11, %c2_i32_12 : i32
    %c1_i32_13 = arith.constant 1 : i32
    scf.for %arg9 = %c0_i32_11 to %8 step %c1_i32_13  : i32 {
      %48 = arith.index_cast %arg9 : i32 to index
      %c4_87 = arith.constant 4 : index
      %c0_88 = arith.constant 0 : index
      %49 = vector.load %arg1[%48, %c4_87, %c0_88] : memref<2x129x124xbf16, #tpu.memory_space<vmem>>, vector<1x105x124xbf16>
      %50 = vector.shape_cast %49 : vector<1x105x124xbf16> to vector<105x124xbf16>
      %cst = arith.constant dense<0.000000e+00> : vector<105x40xf32>
      %51 = tpu.matmul %50, %7, %cst {dimension_numbers = #tpu.dot_dimension_numbers<[1], [0], [0], [1], [0, 0, 1, 1], [], []>} : vector<105x124xbf16>, vector<124x40xbf16>, vector<105x40xf32> -> vector<105x40xf32>
      %52 = arith.index_cast %arg9 : i32 to index
      %c0_89 = arith.constant 0 : index
      %c0_90 = arith.constant 0 : index
      %53 = vector.load %arg8[%52, %c0_89, %c0_90] : memref<2x105x40xf32, #tpu.memory_space<vmem>>, vector<1x105x40xf32>
      %54 = vector.shape_cast %53 : vector<1x105x40xf32> to vector<105x40xf32>
      %55 = arith.addf %54, %51 : vector<105x40xf32>
      %56 = arith.index_cast %arg9 : i32 to index
      %c0_91 = arith.constant 0 : index
      %c0_92 = arith.constant 0 : index
      %57 = vector.load %arg8[%56, %c0_91, %c0_92] : memref<2x105x40xf32, #tpu.memory_space<vmem>>, vector<1x105x40xf32>
      %58 = vector.shape_cast %57 : vector<1x105x40xf32> to vector<105x40xf32>
      %59 = vector.shape_cast %55 : vector<105x40xf32> to vector<1x105x40xf32>
      tpu.vector_store %arg8[%56, %c0_91, %c0_92], %59 {strides = array<i32>} : memref<2x105x40xf32, #tpu.memory_space<vmem>>, vector<1x105x40xf32>,
    }
    %c2_i32_14 = arith.constant 2 : i32
    %c3 = arith.constant 3 : index
    %c0_15 = arith.constant 0 : index
    %c0_16 = arith.constant 0 : index
    %9 = vector.load %arg2[%c3, %c0_15, %c0_16] : memref<13x124x40xbf16, #tpu.memory_space<vmem>>, vector<1x124x40xbf16>
    %10 = vector.shape_cast %9 : vector<1x124x40xbf16> to vector<124x40xbf16>
    %c0_i32_17 = arith.constant 0 : i32
    %c2_i32_18 = arith.constant 2 : i32
    %11 = arith.addi %c0_i32_17, %c2_i32_18 : i32
    %c1_i32_19 = arith.constant 1 : i32
    scf.for %arg9 = %c0_i32_17 to %11 step %c1_i32_19  : i32 {
      %48 = arith.index_cast %arg9 : i32 to index
      %c6_87 = arith.constant 6 : index
      %c0_88 = arith.constant 0 : index
      %49 = vector.load %arg1[%48, %c6_87, %c0_88] : memref<2x129x124xbf16, #tpu.memory_space<vmem>>, vector<1x105x124xbf16>
      %50 = vector.shape_cast %49 : vector<1x105x124xbf16> to vector<105x124xbf16>
      %cst = arith.constant dense<0.000000e+00> : vector<105x40xf32>
      %51 = tpu.matmul %50, %10, %cst {dimension_numbers = #tpu.dot_dimension_numbers<[1], [0], [0], [1], [0, 0, 1, 1], [], []>} : vector<105x124xbf16>, vector<124x40xbf16>, vector<105x40xf32> -> vector<105x40xf32>
      %52 = arith.index_cast %arg9 : i32 to index
      %c0_89 = arith.constant 0 : index
      %c0_90 = arith.constant 0 : index
      %53 = vector.load %arg8[%52, %c0_89, %c0_90] : memref<2x105x40xf32, #tpu.memory_space<vmem>>, vector<1x105x40xf32>
      %54 = vector.shape_cast %53 : vector<1x105x40xf32> to vector<105x40xf32>
      %55 = arith.addf %54, %51 : vector<105x40xf32>
      %56 = arith.index_cast %arg9 : i32 to index
      %c0_91 = arith.constant 0 : index
      %c0_92 = arith.constant 0 : index
      %57 = vector.load %arg8[%56, %c0_91, %c0_92] : memref<2x105x40xf32, #tpu.memory_space<vmem>>, vector<1x105x40xf32>
      %58 = vector.shape_cast %57 : vector<1x105x40xf32> to vector<105x40xf32>
      %59 = vector.shape_cast %55 : vector<105x40xf32> to vector<1x105x40xf32>
      tpu.vector_store %arg8[%56, %c0_91, %c0_92], %59 {strides = array<i32>} : memref<2x105x40xf32, #tpu.memory_space<vmem>>, vector<1x105x40xf32>,
    }
    %c2_i32_20 = arith.constant 2 : i32
    %c4 = arith.constant 4 : index
    %c0_21 = arith.constant 0 : index
    %c0_22 = arith.constant 0 : index
    %12 = vector.load %arg2[%c4, %c0_21, %c0_22] : memref<13x124x40xbf16, #tpu.memory_space<vmem>>, vector<1x124x40xbf16>
    %13 = vector.shape_cast %12 : vector<1x124x40xbf16> to vector<124x40xbf16>
    %c0_i32_23 = arith.constant 0 : i32
    %c2_i32_24 = arith.constant 2 : i32
    %14 = arith.addi %c0_i32_23, %c2_i32_24 : i32
    %c1_i32_25 = arith.constant 1 : i32
    scf.for %arg9 = %c0_i32_23 to %14 step %c1_i32_25  : i32 {
      %48 = arith.index_cast %arg9 : i32 to index
      %c8_87 = arith.constant 8 : index
      %c0_88 = arith.constant 0 : index
      %49 = vector.load %arg1[%48, %c8_87, %c0_88] : memref<2x129x124xbf16, #tpu.memory_space<vmem>>, vector<1x105x124xbf16>
      %50 = vector.shape_cast %49 : vector<1x105x124xbf16> to vector<105x124xbf16>
      %cst = arith.constant dense<0.000000e+00> : vector<105x40xf32>
      %51 = tpu.matmul %50, %13, %cst {dimension_numbers = #tpu.dot_dimension_numbers<[1], [0], [0], [1], [0, 0, 1, 1], [], []>} : vector<105x124xbf16>, vector<124x40xbf16>, vector<105x40xf32> -> vector<105x40xf32>
      %52 = arith.index_cast %arg9 : i32 to index
      %c0_89 = arith.constant 0 : index
      %c0_90 = arith.constant 0 : index
      %53 = vector.load %arg8[%52, %c0_89, %c0_90] : memref<2x105x40xf32, #tpu.memory_space<vmem>>, vector<1x105x40xf32>
      %54 = vector.shape_cast %53 : vector<1x105x40xf32> to vector<105x40xf32>
      %55 = arith.addf %54, %51 : vector<105x40xf32>
      %56 = arith.index_cast %arg9 : i32 to index
      %c0_91 = arith.constant 0 : index
      %c0_92 = arith.constant 0 : index
      %57 = vector.load %arg8[%56, %c0_91, %c0_92] : memref<2x105x40xf32, #tpu.memory_space<vmem>>, vector<1x105x40xf32>
      %58 = vector.shape_cast %57 : vector<1x105x40xf32> to vector<105x40xf32>
      %59 = vector.shape_cast %55 : vector<105x40xf32> to vector<1x105x40xf32>
      tpu.vector_store %arg8[%56, %c0_91, %c0_92], %59 {strides = array<i32>} : memref<2x105x40xf32, #tpu.memory_space<vmem>>, vector<1x105x40xf32>,
    }
    %c2_i32_26 = arith.constant 2 : i32
    %c5 = arith.constant 5 : index
    %c0_27 = arith.constant 0 : index
    %c0_28 = arith.constant 0 : index
    %15 = vector.load %arg2[%c5, %c0_27, %c0_28] : memref<13x124x40xbf16, #tpu.memory_space<vmem>>, vector<1x124x40xbf16>
    %16 = vector.shape_cast %15 : vector<1x124x40xbf16> to vector<124x40xbf16>
    %c0_i32_29 = arith.constant 0 : i32
    %c2_i32_30 = arith.constant 2 : i32
    %17 = arith.addi %c0_i32_29, %c2_i32_30 : i32
    %c1_i32_31 = arith.constant 1 : i32
    scf.for %arg9 = %c0_i32_29 to %17 step %c1_i32_31  : i32 {
      %48 = arith.index_cast %arg9 : i32 to index
      %c10_87 = arith.constant 10 : index
      %c0_88 = arith.constant 0 : index
      %49 = vector.load %arg1[%48, %c10_87, %c0_88] : memref<2x129x124xbf16, #tpu.memory_space<vmem>>, vector<1x105x124xbf16>
      %50 = vector.shape_cast %49 : vector<1x105x124xbf16> to vector<105x124xbf16>
      %cst = arith.constant dense<0.000000e+00> : vector<105x40xf32>
      %51 = tpu.matmul %50, %16, %cst {dimension_numbers = #tpu.dot_dimension_numbers<[1], [0], [0], [1], [0, 0, 1, 1], [], []>} : vector<105x124xbf16>, vector<124x40xbf16>, vector<105x40xf32> -> vector<105x40xf32>
      %52 = arith.index_cast %arg9 : i32 to index
      %c0_89 = arith.constant 0 : index
      %c0_90 = arith.constant 0 : index
      %53 = vector.load %arg8[%52, %c0_89, %c0_90] : memref<2x105x40xf32, #tpu.memory_space<vmem>>, vector<1x105x40xf32>
      %54 = vector.shape_cast %53 : vector<1x105x40xf32> to vector<105x40xf32>
      %55 = arith.addf %54, %51 : vector<105x40xf32>
      %56 = arith.index_cast %arg9 : i32 to index
      %c0_91 = arith.constant 0 : index
      %c0_92 = arith.constant 0 : index
      %57 = vector.load %arg8[%56, %c0_91, %c0_92] : memref<2x105x40xf32, #tpu.memory_space<vmem>>, vector<1x105x40xf32>
      %58 = vector.shape_cast %57 : vector<1x105x40xf32> to vector<105x40xf32>
      %59 = vector.shape_cast %55 : vector<105x40xf32> to vector<1x105x40xf32>
      tpu.vector_store %arg8[%56, %c0_91, %c0_92], %59 {strides = array<i32>} : memref<2x105x40xf32, #tpu.memory_space<vmem>>, vector<1x105x40xf32>,
    }
    %c2_i32_32 = arith.constant 2 : i32
    %c6 = arith.constant 6 : index
    %c0_33 = arith.constant 0 : index
    %c0_34 = arith.constant 0 : index
    %18 = vector.load %arg2[%c6, %c0_33, %c0_34] : memref<13x124x40xbf16, #tpu.memory_space<vmem>>, vector<1x124x40xbf16>
    %19 = vector.shape_cast %18 : vector<1x124x40xbf16> to vector<124x40xbf16>
    %c0_i32_35 = arith.constant 0 : i32
    %c2_i32_36 = arith.constant 2 : i32
    %20 = arith.addi %c0_i32_35, %c2_i32_36 : i32
    %c1_i32_37 = arith.constant 1 : i32
    scf.for %arg9 = %c0_i32_35 to %20 step %c1_i32_37  : i32 {
      %48 = arith.index_cast %arg9 : i32 to index
      %c12_87 = arith.constant 12 : index
      %c0_88 = arith.constant 0 : index
      %49 = vector.load %arg1[%48, %c12_87, %c0_88] : memref<2x129x124xbf16, #tpu.memory_space<vmem>>, vector<1x105x124xbf16>
      %50 = vector.shape_cast %49 : vector<1x105x124xbf16> to vector<105x124xbf16>
      %cst = arith.constant dense<0.000000e+00> : vector<105x40xf32>
      %51 = tpu.matmul %50, %19, %cst {dimension_numbers = #tpu.dot_dimension_numbers<[1], [0], [0], [1], [0, 0, 1, 1], [], []>} : vector<105x124xbf16>, vector<124x40xbf16>, vector<105x40xf32> -> vector<105x40xf32>
      %52 = arith.index_cast %arg9 : i32 to index
      %c0_89 = arith.constant 0 : index
      %c0_90 = arith.constant 0 : index
      %53 = vector.load %arg8[%52, %c0_89, %c0_90] : memref<2x105x40xf32, #tpu.memory_space<vmem>>, vector<1x105x40xf32>
      %54 = vector.shape_cast %53 : vector<1x105x40xf32> to vector<105x40xf32>
      %55 = arith.addf %54, %51 : vector<105x40xf32>
      %56 = arith.index_cast %arg9 : i32 to index
      %c0_91 = arith.constant 0 : index
      %c0_92 = arith.constant 0 : index
      %57 = vector.load %arg8[%56, %c0_91, %c0_92] : memref<2x105x40xf32, #tpu.memory_space<vmem>>, vector<1x105x40xf32>
      %58 = vector.shape_cast %57 : vector<1x105x40xf32> to vector<105x40xf32>
      %59 = vector.shape_cast %55 : vector<105x40xf32> to vector<1x105x40xf32>
      tpu.vector_store %arg8[%56, %c0_91, %c0_92], %59 {strides = array<i32>} : memref<2x105x40xf32, #tpu.memory_space<vmem>>, vector<1x105x40xf32>,
    }
    %c2_i32_38 = arith.constant 2 : i32
    %c7 = arith.constant 7 : index
    %c0_39 = arith.constant 0 : index
    %c0_40 = arith.constant 0 : index
    %21 = vector.load %arg2[%c7, %c0_39, %c0_40] : memref<13x124x40xbf16, #tpu.memory_space<vmem>>, vector<1x124x40xbf16>
    %22 = vector.shape_cast %21 : vector<1x124x40xbf16> to vector<124x40xbf16>
    %c0_i32_41 = arith.constant 0 : i32
    %c2_i32_42 = arith.constant 2 : i32
    %23 = arith.addi %c0_i32_41, %c2_i32_42 : i32
    %c1_i32_43 = arith.constant 1 : i32
    scf.for %arg9 = %c0_i32_41 to %23 step %c1_i32_43  : i32 {
      %48 = arith.index_cast %arg9 : i32 to index
      %c14 = arith.constant 14 : index
      %c0_87 = arith.constant 0 : index
      %49 = vector.load %arg1[%48, %c14, %c0_87] : memref<2x129x124xbf16, #tpu.memory_space<vmem>>, vector<1x105x124xbf16>
      %50 = vector.shape_cast %49 : vector<1x105x124xbf16> to vector<105x124xbf16>
      %cst = arith.constant dense<0.000000e+00> : vector<105x40xf32>
      %51 = tpu.matmul %50, %22, %cst {dimension_numbers = #tpu.dot_dimension_numbers<[1], [0], [0], [1], [0, 0, 1, 1], [], []>} : vector<105x124xbf16>, vector<124x40xbf16>, vector<105x40xf32> -> vector<105x40xf32>
      %52 = arith.index_cast %arg9 : i32 to index
      %c0_88 = arith.constant 0 : index
      %c0_89 = arith.constant 0 : index
      %53 = vector.load %arg8[%52, %c0_88, %c0_89] : memref<2x105x40xf32, #tpu.memory_space<vmem>>, vector<1x105x40xf32>
      %54 = vector.shape_cast %53 : vector<1x105x40xf32> to vector<105x40xf32>
      %55 = arith.addf %54, %51 : vector<105x40xf32>
      %56 = arith.index_cast %arg9 : i32 to index
      %c0_90 = arith.constant 0 : index
      %c0_91 = arith.constant 0 : index
      %57 = vector.load %arg8[%56, %c0_90, %c0_91] : memref<2x105x40xf32, #tpu.memory_space<vmem>>, vector<1x105x40xf32>
      %58 = vector.shape_cast %57 : vector<1x105x40xf32> to vector<105x40xf32>
      %59 = vector.shape_cast %55 : vector<105x40xf32> to vector<1x105x40xf32>
      tpu.vector_store %arg8[%56, %c0_90, %c0_91], %59 {strides = array<i32>} : memref<2x105x40xf32, #tpu.memory_space<vmem>>, vector<1x105x40xf32>,
    }
    %c2_i32_44 = arith.constant 2 : i32
    %c8 = arith.constant 8 : index
    %c0_45 = arith.constant 0 : index
    %c0_46 = arith.constant 0 : index
    %24 = vector.load %arg2[%c8, %c0_45, %c0_46] : memref<13x124x40xbf16, #tpu.memory_space<vmem>>, vector<1x124x40xbf16>
    %25 = vector.shape_cast %24 : vector<1x124x40xbf16> to vector<124x40xbf16>
    %c0_i32_47 = arith.constant 0 : i32
    %c2_i32_48 = arith.constant 2 : i32
    %26 = arith.addi %c0_i32_47, %c2_i32_48 : i32
    %c1_i32_49 = arith.constant 1 : i32
    scf.for %arg9 = %c0_i32_47 to %26 step %c1_i32_49  : i32 {
      %48 = arith.index_cast %arg9 : i32 to index
      %c16 = arith.constant 16 : index
      %c0_87 = arith.constant 0 : index
      %49 = vector.load %arg1[%48, %c16, %c0_87] : memref<2x129x124xbf16, #tpu.memory_space<vmem>>, vector<1x105x124xbf16>
      %50 = vector.shape_cast %49 : vector<1x105x124xbf16> to vector<105x124xbf16>
      %cst = arith.constant dense<0.000000e+00> : vector<105x40xf32>
      %51 = tpu.matmul %50, %25, %cst {dimension_numbers = #tpu.dot_dimension_numbers<[1], [0], [0], [1], [0, 0, 1, 1], [], []>} : vector<105x124xbf16>, vector<124x40xbf16>, vector<105x40xf32> -> vector<105x40xf32>
      %52 = arith.index_cast %arg9 : i32 to index
      %c0_88 = arith.constant 0 : index
      %c0_89 = arith.constant 0 : index
      %53 = vector.load %arg8[%52, %c0_88, %c0_89] : memref<2x105x40xf32, #tpu.memory_space<vmem>>, vector<1x105x40xf32>
      %54 = vector.shape_cast %53 : vector<1x105x40xf32> to vector<105x40xf32>
      %55 = arith.addf %54, %51 : vector<105x40xf32>
      %56 = arith.index_cast %arg9 : i32 to index
      %c0_90 = arith.constant 0 : index
      %c0_91 = arith.constant 0 : index
      %57 = vector.load %arg8[%56, %c0_90, %c0_91] : memref<2x105x40xf32, #tpu.memory_space<vmem>>, vector<1x105x40xf32>
      %58 = vector.shape_cast %57 : vector<1x105x40xf32> to vector<105x40xf32>
      %59 = vector.shape_cast %55 : vector<105x40xf32> to vector<1x105x40xf32>
      tpu.vector_store %arg8[%56, %c0_90, %c0_91], %59 {strides = array<i32>} : memref<2x105x40xf32, #tpu.memory_space<vmem>>, vector<1x105x40xf32>,
    }
    %c2_i32_50 = arith.constant 2 : i32
    %c9 = arith.constant 9 : index
    %c0_51 = arith.constant 0 : index
    %c0_52 = arith.constant 0 : index
    %27 = vector.load %arg2[%c9, %c0_51, %c0_52] : memref<13x124x40xbf16, #tpu.memory_space<vmem>>, vector<1x124x40xbf16>
    %28 = vector.shape_cast %27 : vector<1x124x40xbf16> to vector<124x40xbf16>
    %c0_i32_53 = arith.constant 0 : i32
    %c2_i32_54 = arith.constant 2 : i32
    %29 = arith.addi %c0_i32_53, %c2_i32_54 : i32
    %c1_i32_55 = arith.constant 1 : i32
    scf.for %arg9 = %c0_i32_53 to %29 step %c1_i32_55  : i32 {
      %48 = arith.index_cast %arg9 : i32 to index
      %c18 = arith.constant 18 : index
      %c0_87 = arith.constant 0 : index
      %49 = vector.load %arg1[%48, %c18, %c0_87] : memref<2x129x124xbf16, #tpu.memory_space<vmem>>, vector<1x105x124xbf16>
      %50 = vector.shape_cast %49 : vector<1x105x124xbf16> to vector<105x124xbf16>
      %cst = arith.constant dense<0.000000e+00> : vector<105x40xf32>
      %51 = tpu.matmul %50, %28, %cst {dimension_numbers = #tpu.dot_dimension_numbers<[1], [0], [0], [1], [0, 0, 1, 1], [], []>} : vector<105x124xbf16>, vector<124x40xbf16>, vector<105x40xf32> -> vector<105x40xf32>
      %52 = arith.index_cast %arg9 : i32 to index
      %c0_88 = arith.constant 0 : index
      %c0_89 = arith.constant 0 : index
      %53 = vector.load %arg8[%52, %c0_88, %c0_89] : memref<2x105x40xf32, #tpu.memory_space<vmem>>, vector<1x105x40xf32>
      %54 = vector.shape_cast %53 : vector<1x105x40xf32> to vector<105x40xf32>
      %55 = arith.addf %54, %51 : vector<105x40xf32>
      %56 = arith.index_cast %arg9 : i32 to index
      %c0_90 = arith.constant 0 : index
      %c0_91 = arith.constant 0 : index
      %57 = vector.load %arg8[%56, %c0_90, %c0_91] : memref<2x105x40xf32, #tpu.memory_space<vmem>>, vector<1x105x40xf32>
      %58 = vector.shape_cast %57 : vector<1x105x40xf32> to vector<105x40xf32>
      %59 = vector.shape_cast %55 : vector<105x40xf32> to vector<1x105x40xf32>
      tpu.vector_store %arg8[%56, %c0_90, %c0_91], %59 {strides = array<i32>} : memref<2x105x40xf32, #tpu.memory_space<vmem>>, vector<1x105x40xf32>,
    }
    %c2_i32_56 = arith.constant 2 : i32
    %c10 = arith.constant 10 : index
    %c0_57 = arith.constant 0 : index
    %c0_58 = arith.constant 0 : index
    %30 = vector.load %arg2[%c10, %c0_57, %c0_58] : memref<13x124x40xbf16, #tpu.memory_space<vmem>>, vector<1x124x40xbf16>
    %31 = vector.shape_cast %30 : vector<1x124x40xbf16> to vector<124x40xbf16>
    %c0_i32_59 = arith.constant 0 : i32
    %c2_i32_60 = arith.constant 2 : i32
    %32 = arith.addi %c0_i32_59, %c2_i32_60 : i32
    %c1_i32_61 = arith.constant 1 : i32
    scf.for %arg9 = %c0_i32_59 to %32 step %c1_i32_61  : i32 {
      %48 = arith.index_cast %arg9 : i32 to index
      %c20 = arith.constant 20 : index
      %c0_87 = arith.constant 0 : index
      %49 = vector.load %arg1[%48, %c20, %c0_87] : memref<2x129x124xbf16, #tpu.memory_space<vmem>>, vector<1x105x124xbf16>
      %50 = vector.shape_cast %49 : vector<1x105x124xbf16> to vector<105x124xbf16>
      %cst = arith.constant dense<0.000000e+00> : vector<105x40xf32>
      %51 = tpu.matmul %50, %31, %cst {dimension_numbers = #tpu.dot_dimension_numbers<[1], [0], [0], [1], [0, 0, 1, 1], [], []>} : vector<105x124xbf16>, vector<124x40xbf16>, vector<105x40xf32> -> vector<105x40xf32>
      %52 = arith.index_cast %arg9 : i32 to index
      %c0_88 = arith.constant 0 : index
      %c0_89 = arith.constant 0 : index
      %53 = vector.load %arg8[%52, %c0_88, %c0_89] : memref<2x105x40xf32, #tpu.memory_space<vmem>>, vector<1x105x40xf32>
      %54 = vector.shape_cast %53 : vector<1x105x40xf32> to vector<105x40xf32>
      %55 = arith.addf %54, %51 : vector<105x40xf32>
      %56 = arith.index_cast %arg9 : i32 to index
      %c0_90 = arith.constant 0 : index
      %c0_91 = arith.constant 0 : index
      %57 = vector.load %arg8[%56, %c0_90, %c0_91] : memref<2x105x40xf32, #tpu.memory_space<vmem>>, vector<1x105x40xf32>
      %58 = vector.shape_cast %57 : vector<1x105x40xf32> to vector<105x40xf32>
      %59 = vector.shape_cast %55 : vector<105x40xf32> to vector<1x105x40xf32>
      tpu.vector_store %arg8[%56, %c0_90, %c0_91], %59 {strides = array<i32>} : memref<2x105x40xf32, #tpu.memory_space<vmem>>, vector<1x105x40xf32>,
    }
    %c2_i32_62 = arith.constant 2 : i32
    %c11 = arith.constant 11 : index
    %c0_63 = arith.constant 0 : index
    %c0_64 = arith.constant 0 : index
    %33 = vector.load %arg2[%c11, %c0_63, %c0_64] : memref<13x124x40xbf16, #tpu.memory_space<vmem>>, vector<1x124x40xbf16>
    %34 = vector.shape_cast %33 : vector<1x124x40xbf16> to vector<124x40xbf16>
    %c0_i32_65 = arith.constant 0 : i32
    %c2_i32_66 = arith.constant 2 : i32
    %35 = arith.addi %c0_i32_65, %c2_i32_66 : i32
    %c1_i32_67 = arith.constant 1 : i32
    scf.for %arg9 = %c0_i32_65 to %35 step %c1_i32_67  : i32 {
      %48 = arith.index_cast %arg9 : i32 to index
      %c22 = arith.constant 22 : index
      %c0_87 = arith.constant 0 : index
      %49 = vector.load %arg1[%48, %c22, %c0_87] : memref<2x129x124xbf16, #tpu.memory_space<vmem>>, vector<1x105x124xbf16>
      %50 = vector.shape_cast %49 : vector<1x105x124xbf16> to vector<105x124xbf16>
      %cst = arith.constant dense<0.000000e+00> : vector<105x40xf32>
      %51 = tpu.matmul %50, %34, %cst {dimension_numbers = #tpu.dot_dimension_numbers<[1], [0], [0], [1], [0, 0, 1, 1], [], []>} : vector<105x124xbf16>, vector<124x40xbf16>, vector<105x40xf32> -> vector<105x40xf32>
      %52 = arith.index_cast %arg9 : i32 to index
      %c0_88 = arith.constant 0 : index
      %c0_89 = arith.constant 0 : index
      %53 = vector.load %arg8[%52, %c0_88, %c0_89] : memref<2x105x40xf32, #tpu.memory_space<vmem>>, vector<1x105x40xf32>
      %54 = vector.shape_cast %53 : vector<1x105x40xf32> to vector<105x40xf32>
      %55 = arith.addf %54, %51 : vector<105x40xf32>
      %56 = arith.index_cast %arg9 : i32 to index
      %c0_90 = arith.constant 0 : index
      %c0_91 = arith.constant 0 : index
      %57 = vector.load %arg8[%56, %c0_90, %c0_91] : memref<2x105x40xf32, #tpu.memory_space<vmem>>, vector<1x105x40xf32>
      %58 = vector.shape_cast %57 : vector<1x105x40xf32> to vector<105x40xf32>
      %59 = vector.shape_cast %55 : vector<105x40xf32> to vector<1x105x40xf32>
      tpu.vector_store %arg8[%56, %c0_90, %c0_91], %59 {strides = array<i32>} : memref<2x105x40xf32, #tpu.memory_space<vmem>>, vector<1x105x40xf32>,
    }
    %c2_i32_68 = arith.constant 2 : i32
    %c12 = arith.constant 12 : index
    %c0_69 = arith.constant 0 : index
    %c0_70 = arith.constant 0 : index
    %36 = vector.load %arg2[%c12, %c0_69, %c0_70] : memref<13x124x40xbf16, #tpu.memory_space<vmem>>, vector<1x124x40xbf16>
    %37 = vector.shape_cast %36 : vector<1x124x40xbf16> to vector<124x40xbf16>
    %c0_i32_71 = arith.constant 0 : i32
    %c2_i32_72 = arith.constant 2 : i32
    %38 = arith.addi %c0_i32_71, %c2_i32_72 : i32
    %c1_i32_73 = arith.constant 1 : i32
    scf.for %arg9 = %c0_i32_71 to %38 step %c1_i32_73  : i32 {
      %48 = arith.index_cast %arg9 : i32 to index
      %c24 = arith.constant 24 : index
      %c0_87 = arith.constant 0 : index
      %49 = vector.load %arg1[%48, %c24, %c0_87] : memref<2x129x124xbf16, #tpu.memory_space<vmem>>, vector<1x105x124xbf16>
      %50 = vector.shape_cast %49 : vector<1x105x124xbf16> to vector<105x124xbf16>
      %cst = arith.constant dense<0.000000e+00> : vector<105x40xf32>
      %51 = tpu.matmul %50, %37, %cst {dimension_numbers = #tpu.dot_dimension_numbers<[1], [0], [0], [1], [0, 0, 1, 1], [], []>} : vector<105x124xbf16>, vector<124x40xbf16>, vector<105x40xf32> -> vector<105x40xf32>
      %52 = arith.index_cast %arg9 : i32 to index
      %c0_88 = arith.constant 0 : index
      %c0_89 = arith.constant 0 : index
      %53 = vector.load %arg8[%52, %c0_88, %c0_89] : memref<2x105x40xf32, #tpu.memory_space<vmem>>, vector<1x105x40xf32>
      %54 = vector.shape_cast %53 : vector<1x105x40xf32> to vector<105x40xf32>
      %55 = arith.addf %54, %51 : vector<105x40xf32>
      %56 = arith.index_cast %arg9 : i32 to index
      %c0_90 = arith.constant 0 : index
      %c0_91 = arith.constant 0 : index
      %57 = vector.load %arg8[%56, %c0_90, %c0_91] : memref<2x105x40xf32, #tpu.memory_space<vmem>>, vector<1x105x40xf32>
      %58 = vector.shape_cast %57 : vector<1x105x40xf32> to vector<105x40xf32>
      %59 = vector.shape_cast %55 : vector<105x40xf32> to vector<1x105x40xf32>
      tpu.vector_store %arg8[%56, %c0_90, %c0_91], %59 {strides = array<i32>} : memref<2x105x40xf32, #tpu.memory_space<vmem>>, vector<1x105x40xf32>,
    }
    %c2_i32_74 = arith.constant 2 : i32
    %c0_75 = arith.constant 0 : index
    %c0_76 = arith.constant 0 : index
    %39 = vector.load %arg3[%c0_75, %c0_76] : memref<1x40xf32, #tpu.memory_space<vmem>>, vector<1x40xf32>
    %40 = vector.shape_cast %39 : vector<1x40xf32> to vector<1x40xf32>
    %41 = vector.broadcast %40 : vector<1x40xf32> to vector<105x40xf32>
    %c0_77 = arith.constant 0 : index
    %c0_78 = arith.constant 0 : index
    %42 = vector.load %arg4[%c0_77, %c0_78] : memref<3x105xbf16, #tpu.memory_space<vmem>>, vector<3x105xbf16>
    %c0_79 = arith.constant 0 : index
    %c0_80 = arith.constant 0 : index
    %43 = vector.load %arg5[%c0_79, %c0_80] : memref<40x40xbf16, #tpu.memory_space<vmem>>, vector<40x40xbf16>
    %c0_81 = arith.constant 0 : index
    %c0_82 = arith.constant 0 : index
    %44 = vector.load %arg6[%c0_81, %c0_82] : memref<1x40xf32, #tpu.memory_space<vmem>>, vector<1x40xf32>
    %45 = vector.shape_cast %44 : vector<1x40xf32> to vector<1x40xf32>
    %46 = vector.broadcast %45 : vector<1x40xf32> to vector<3x40xf32>
    %c0_i32_83 = arith.constant 0 : i32
    %c2_i32_84 = arith.constant 2 : i32
    %47 = arith.addi %c0_i32_83, %c2_i32_84 : i32
    %c1_i32_85 = arith.constant 1 : i32
    scf.for %arg9 = %c0_i32_83 to %47 step %c1_i32_85  : i32 {
      %48 = arith.index_cast %arg9 : i32 to index
      %c0_87 = arith.constant 0 : index
      %c0_88 = arith.constant 0 : index
      %49 = vector.load %arg8[%48, %c0_87, %c0_88] : memref<2x105x40xf32, #tpu.memory_space<vmem>>, vector<1x105x40xf32>
      %50 = vector.shape_cast %49 : vector<1x105x40xf32> to vector<105x40xf32>
      %51 = arith.addf %50, %41 : vector<105x40xf32>
      %cst = arith.constant 0.000000e+00 : f32
      %52 = vector.broadcast %cst : f32 to vector<105x40xf32>
      %53 = arith.cmpf ogt, %51, %52 : vector<105x40xf32>
      %cst_89 = arith.constant 0.000000e+00 : f32
      %54 = vector.broadcast %cst_89 : f32 to vector<105x40xf32>
      %55 = arith.minimumf %51, %54 : vector<105x40xf32>
      %56 = math.exp %55 : vector<105x40xf32>
      %cst_90 = arith.constant 1.000000e+00 : f32
      %57 = vector.broadcast %cst_90 : f32 to vector<105x40xf32>
      %58 = arith.subf %56, %57 : vector<105x40xf32>
      %59 = arith.select %53, %51, %58 : vector<105x40xi1>, vector<105x40xf32>
      %60 = arith.truncf %59 : vector<105x40xf32> to vector<105x40xbf16>
      %cst_91 = arith.constant dense<0.000000e+00> : vector<3x40xf32>
      %61 = tpu.matmul %42, %60, %cst_91 {dimension_numbers = #tpu.dot_dimension_numbers<[1], [0], [0], [1], [0, 0, 1, 1], [], []>} : vector<3x105xbf16>, vector<105x40xbf16>, vector<3x40xf32> -> vector<3x40xf32>
      %62 = arith.truncf %61 : vector<3x40xf32> to vector<3x40xbf16>
      %cst_92 = arith.constant dense<0.000000e+00> : vector<3x40xf32>
      %63 = tpu.matmul %62, %43, %cst_92 {dimension_numbers = #tpu.dot_dimension_numbers<[1], [0], [0], [1], [0, 0, 1, 1], [], []>} : vector<3x40xbf16>, vector<40x40xbf16>, vector<3x40xf32> -> vector<3x40xf32>
      %64 = arith.addf %63, %46 : vector<3x40xf32>
      %65 = arith.index_cast %arg9 : i32 to index
      %c0_93 = arith.constant 0 : index
      %c0_94 = arith.constant 0 : index
      %66 = vector.load %arg7[%65, %c0_93, %c0_94] : memref<2x3x40xf32, #tpu.memory_space<vmem>>, vector<1x3x40xf32>
      %67 = vector.shape_cast %66 : vector<1x3x40xf32> to vector<3x40xf32>
      %68 = vector.shape_cast %64 : vector<3x40xf32> to vector<1x3x40xf32>
      tpu.vector_store %arg7[%65, %c0_93, %c0_94], %68 {strides = array<i32>} : memref<2x3x40xf32, #tpu.memory_space<vmem>>, vector<1x3x40xf32>,
    }
    %c2_i32_86 = arith.constant 2 : i32
    return
  }
  func.func @transform_0(%arg0: i32) -> (i32, i32, i32) {
    %c0_i32 = arith.constant 0 : i32
    %c0_i32_0 = arith.constant 0 : i32
    %c0_i32_1 = arith.constant 0 : i32
    return %arg0, %c0_i32, %c0_i32_0 : i32, i32, i32
  }
  func.func @transform_1(%arg0: i32) -> (i32, i32, i32) {
    %c0_i32 = arith.constant 0 : i32
    %c0_i32_0 = arith.constant 0 : i32
    %c0_i32_1 = arith.constant 0 : i32
    %c0_i32_2 = arith.constant 0 : i32
    return %c0_i32, %c0_i32_0, %c0_i32_1 : i32, i32, i32
  }
  func.func @transform_2(%arg0: i32) -> (i32, i32) {
    %c0_i32 = arith.constant 0 : i32
    %c0_i32_0 = arith.constant 0 : i32
    %c0_i32_1 = arith.constant 0 : i32
    return %c0_i32, %c0_i32_0 : i32, i32
  }
  func.func @transform_3(%arg0: i32) -> (i32, i32) {
    %c0_i32 = arith.constant 0 : i32
    %c0_i32_0 = arith.constant 0 : i32
    %c0_i32_1 = arith.constant 0 : i32
    return %c0_i32, %c0_i32_0 : i32, i32
  }
  func.func @transform_4(%arg0: i32) -> (i32, i32) {
    %c0_i32 = arith.constant 0 : i32
    %c0_i32_0 = arith.constant 0 : i32
    %c0_i32_1 = arith.constant 0 : i32
    return %c0_i32, %c0_i32_0 : i32, i32
  }
  func.func @transform_5(%arg0: i32) -> (i32, i32) {
    %c0_i32 = arith.constant 0 : i32
    %c0_i32_0 = arith.constant 0 : i32
    %c0_i32_1 = arith.constant 0 : i32
    return %c0_i32, %c0_i32_0 : i32, i32
  }
  func.func @transform_6(%arg0: i32) -> (i32, i32, i32) {
    %c0_i32 = arith.constant 0 : i32
    %c0_i32_0 = arith.constant 0 : i32
    %c0_i32_1 = arith.constant 0 : i32
    return %arg0, %c0_i32, %c0_i32_0 : i32, i32, i32
  }
}

</mosaic_0001>

<bundles_post_ra>
// kernel: tpu_custom_call.1
= control target key start
LH: loop header
LB: loop body
LE: loop exit
PB: predicated region body
PF: predicated region fallthrough
CT: control target
= control target key end

     0   :  { %s6487_s21 = smov 0   ;;  %s9228_s0 = inlined_call_operand.vmem [shape: bf16[4,129,124], index: 0, kind: input, shape index: {}]   ;;  %s9229_s1 = inlined_call_operand.vmem [shape: bf16[13,124,40], index: 1, kind: input, shape index: {}]   ;;  %s9230_s2 = inlined_call_operand.vmem [shape: f32[1,40], index: 2, kind: input, shape index: {}]   ;;  %s9231_s3 = inlined_call_operand.vmem [shape: bf16[3,105], index: 3, kind: input, shape index: {}]   ;;  %s9232_s4 = inlined_call_operand.vmem [shape: bf16[40,40], index: 4, kind: input, shape index: {}]   ;;  %s9233_s5 = inlined_call_operand.vmem [shape: f32[1,40], index: 5, kind: input, shape index: {}]   ;;  %s9234_s6 = inlined_call_operand.vmem [shape: f32[4,3,40], index: 6, kind: output, shape index: {}]  }
   0x1 LB: > { %s4482_s22 = sadd.s32 4294967295, %s6365_s21   ;;  %p4486_p0 = scmp.ge.s32.totalorder %s6365_s21, 1  ;;  %s6365_s21 = sphi %s6487_s21, %s16_s21  }
   0x2   : > { %p214_p1 = scmp.lt.s32.totalorder %s6365_s21, 3 }
   0x4   : > { %p215_p2 = pnand %p4486_p0, %p214_p1 }
   0x5   : > { %s4487_s23 = sshll.u32 (!%p215_p2), %s4482_s22, 1  ;;  %v6498_v0 = vld [vmem:[%s9229_s1] sm:$0xf] (!%p215_p2)  ;;  %v6503_v1 = vld [vmem:[%s9229_s1 + $0x4] sm:$0xf] (!%p215_p2)  ;;  %s6585_s17 = smov (!%p215_p2), 0  }
   0x6   : > { %218 = sbr.rel (%p215_p2) target bundleno = 4063 (0xfdf), region = 44  ;;  %p246_p3 = scmp.lt.s32.totalorder (!%p215_p2), %s4487_s23, 3  ;;  %v6508_v2 = vld [vmem:[%s9229_s1 + $0x8] sm:$0xf] (!%p215_p2)  ;;  %v6513_v3 = vld [vmem:[%s9229_s1 + $0xc] sm:$0xf] (!%p215_p2) }
   0x7   : > { %v6518_v4 = vld [vmem:[%s9229_s1 + $0x10] sm:$0xf] (!%p215_p2)  ;;  %v6523_v5 = vld [vmem:[%s9229_s1 + $0x14] sm:$0xf] (!%p215_p2)  ;;  %v6528_v6 = vld [vmem:[%s9229_s1 + $0x18] sm:$0xf] (!%p215_p2) }
   0x8   : > { %v6533_v7 = vld [vmem:[%s9229_s1 + $0x1c] sm:$0xf] (!%p215_p2)  ;;  %v6538_v8 = vld [vmem:[%s9229_s1 + $0x20] sm:$0xf] (!%p215_p2)  ;;  %v6543_v9 = vld [vmem:[%s9229_s1 + $0x24] sm:$0xf] (!%p215_p2) }
   0x9   : > { %v6548_v10 = vld [vmem:[%s9229_s1 + $0x28] sm:$0xf] (!%p215_p2)  ;;  %v6553_v11 = vld [vmem:[%s9229_s1 + $0x2c] sm:$0xf] (!%p215_p2)  ;;  %v6558_v12 = vld [vmem:[%s9229_s1 + $0x30] sm:$0xf] (!%p215_p2) }
   0xa   : > { %v6563_v13 = vld [vmem:[%s9229_s1 + $0x34] sm:$0xf] (!%p215_p2)  ;;  %v6573_v14 = vld [vmem:[%s9229_s1 + $0x38] sm:$0xf] (!%p215_p2)  ;;  %v6578_v15 = vld [vmem:[%s9229_s1 + $0x3c] sm:$0x3] (!%p215_p2) }
   0xd   : > { %s9236_s23 = smov (!%p246_p3, %s4487_s23), 3 }
   0xe   : > { %s6034_s26 = smul.u32 68, %s9236_s23  ;;  %s4490_s27 = sshll.u32 %s9236_s23, 2 }
   0xf   : > { %s6568_s10 = scalar_lea.vmem %s9234_s6, %s4490_s27 }
  0x10   : > { %s6583_s16 = scalar_lea.vmem %s9228_s0, %s6034_s26 }
  0x11 LB: >> { %v4499_v16 = vcombine.low %v6498_v0, %v6503_v1  ;;  %v6423_v17 = vmov 0.0   ;;  %v4500_v18 = vcombine.low %v6508_v2, %v6513_v3  ;;  %s5006_s18 = smul.u32 68, %s6369_s17  ;;  %vm6424_vm0 = vmmov 0   ;;  %s6369_s17 = sphi %s6585_s17, %s280_s17  }
  0x12   : >> { %5226 = vmatprep.subr.bf16.mxu0 %v6423_v17  ;;  %5826 = vmatprep.subr.bf16.mxu1 %v6423_v17  ;;  %v4501_v19 = vcombine.low %v6518_v4, %v6523_v5  ;;  %v4502_v20 = vcombine.low %v6528_v6, %v6533_v7  ;;  %v4503_v21 = vcombine.low %v6538_v8, %v6543_v9  ;;  %vm402_vm1 = vcmask 1045504   ;;  %s495_s20 = smul.u32 112, %s6369_s17  ;;  %s280_s17 = sadd.s32 1, %s6369_s17  }
  0x13   : >> { %5227 = vmatpush3.bf16.msra.mxu0 %v4499_v16  ;;  %5834 = vmatpush3.bf16.msra.mxu1 %v4499_v16  ;;  %s6602_s19 = scalar_lea.vmem %s6583_s16, %s5006_s18  ;;  %v4504_v22 = vcombine.low %v6548_v10, %v6553_v11  ;;  %v4505_v23 = vcombine.low %v6558_v12, %v6563_v13  ;;  %v4506_v24 = vcombine.low %v6573_v14, %v6578_v15  ;;  %vm380_vm2 = vcmask 1014784   ;;  %p277_p4 = scmp.ge.s32.totalorder %s280_s17, 2  }
  0x14   : >> { %5228 = vmatprep.subr.bf16.mxu0 %v6423_v17  ;;  %5827 = vmatprep.subr.bf16.mxu1 %v6423_v17  ;;  %v6184_v26 = vld [vmem:[%s6602_s19] sm:$0xff]   ;;  %v6186_v28 = vld [vmem:[%s6602_s19 + $0x8] sm:$0xff]   ;;  %v6188_v30 = vld [vmem:[%s6602_s19 + $0x10] sm:$0xff]   ;;  %vm497_vm3 = vcmask 326656   ;;  %s6656_s22 = scalar_lea.vmem [#allocation2], %s495_s20  ;;  %vm511_vm4 = vcmask 319488  }
  0x15   : >> { %5242 = vmatprep.mubr.msk.bf16.mxu0 %vm6424_vm0, %v6423_v17  ;;  %5258 = vmatprep.mubr.msk.bf16.mxu1 %vm6424_vm0, %v6423_v17  ;;  %v404_v25 = vsel %vm402_vm1, %v4506_v24, 0  ;;  %v6185_v27 = vld [vmem:[%s6602_s19 + $0x20] sm:$0xff]   ;;  %v6187_v29 = vld [vmem:[%s6602_s19 + $0x28] sm:$0xff]   ;;  %v6189_v31 = vld [vmem:[%s6602_s19 + $0x30] sm:$0x1f]   ;;  %s6769_s12 = smov (%p277_p4), 0  }
  0x16   : >> { %v6190_v32 = vld [vmem:[%s6602_s19 + $0x18] sm:$0xff]   ;;  %v6692_v61 = vld [vmem:[%s9229_s1 + $0x40] sm:$0xf] (%p277_p4)  ;;  %v6697_v62 = vld [vmem:[%s9229_s1 + $0x44] sm:$0xf] (%p277_p4) }
  0x17   : >> { %5229 = vmatpush3.bf16.msra.mxu0 %v4500_v18  ;;  %5835 = vmatpush3.bf16.msra.mxu1 %v4500_v18  ;;  %v6702_v63 = vld [vmem:[%s9229_s1 + $0x48] sm:$0xf] (%p277_p4)  ;;  %v6707_v16 = vld [vmem:[%s9229_s1 + $0x4c] sm:$0xf] (%p277_p4)  ;;  %v6712_v0 = vld [vmem:[%s9229_s1 + $0x50] sm:$0xf] (%p277_p4) }
  0x18   : >> { %5230 = vmatprep.subr.bf16.mxu0 %v6423_v17  ;;  %5828 = vmatprep.subr.bf16.mxu1 %v6423_v17  ;;  %v6717_v1 = vld [vmem:[%s9229_s1 + $0x54] sm:$0xf] (%p277_p4)  ;;  %v6722_v2 = vld [vmem:[%s9229_s1 + $0x58] sm:$0xf] (%p277_p4)  ;;  %v6727_v3 = vld [vmem:[%s9229_s1 + $0x5c] sm:$0xf] (%p277_p4) }
  0x19   : > { %v6732_v4 = vld [vmem:[%s9229_s1 + $0x60] sm:$0xf] (%p277_p4)  ;;  %v6737_v5 = vld [vmem:[%s9229_s1 + $0x64] sm:$0xf] (%p277_p4)  ;;  %v6742_v6 = vld [vmem:[%s9229_s1 + $0x68] sm:$0xf] (%p277_p4) }
  0x1a   : > { %v6747_v7 = vld [vmem:[%s9229_s1 + $0x6c] sm:$0xf] (%p277_p4)  ;;  %v6752_v8 = vld [vmem:[%s9229_s1 + $0x70] sm:$0xf] (%p277_p4)  ;;  %v6757_v9 = vld [vmem:[%s9229_s1 + $0x74] sm:$0xf] (%p277_p4) }
  0x1b   : >> { %5231 = vmatpush3.bf16.msra.mxu0 %v4501_v19  ;;  %5836 = vmatpush3.bf16.msra.mxu1 %v4501_v19  ;;  %v6762_v10 = vld [vmem:[%s9229_s1 + $0x78] sm:$0xf] (%p277_p4)  ;;  %v6767_v11 = vld [vmem:[%s9229_s1 + $0x7c] sm:$0x3] (%p277_p4) }
  0x1c   : >> { %5232 = vmatprep.subr.bf16.mxu0 %v6423_v17  ;;  %5829 = vmatprep.subr.bf16.mxu1 %v6423_v17 }
  0x1f   : >> { %5233 = vmatpush3.bf16.msra.mxu0 %v4502_v20  ;;  %5837 = vmatpush3.bf16.msra.mxu1 %v4502_v20 }
  0x20   : >> { %5234 = vmatprep.subr.bf16.mxu0 %v6423_v17  ;;  %5830 = vmatprep.subr.bf16.mxu1 %v6423_v17 }
  0x23   : >> { %5235 = vmatpush3.bf16.msra.mxu0 %v4503_v21  ;;  %5838 = vmatpush3.bf16.msra.mxu1 %v4503_v21 }
  0x24   : >> { %5236 = vmatprep.subr.bf16.mxu0 %v6423_v17  ;;  %5831 = vmatprep.subr.bf16.mxu1 %v6423_v17 }
  0x27   : >> { %5237 = vmatpush3.bf16.msra.mxu0 %v4504_v22  ;;  %5839 = vmatpush3.bf16.msra.mxu1 %v4504_v22 }
  0x28   : >> { %5238 = vmatprep.subr.bf16.mxu0 %v6423_v17  ;;  %5832 = vmatprep.subr.bf16.mxu1 %v6423_v17 }
  0x2b   : >> { %5239 = vmatpush3.bf16.msra.mxu0 %v4505_v23  ;;  %5840 = vmatpush3.bf16.msra.mxu1 %v4505_v23 }
  0x2c   : >> { %5240 = vmatprep.subr.bf16.mxu0 %v6423_v17  ;;  %5833 = vmatprep.subr.bf16.mxu1 %v6423_v17 }
  0x2f   : >> { %5241 = vmatpush3.bf16.msra.mxu0 %v404_v25  ;;  %5841 = vmatpush3.bf16.msra.mxu1 %v404_v25 }
  0x32   : >> { %5243 = vmatmul.mubr.msk.bf16.vlgmr.msra.gmra.mrb[0].mxu0 %vm380_vm2, %v6184_v26  ;;  %5259 = vmatmul.mubr.msk.bf16.vlgmr.msra.gmra.mrb[0].mxu1 %vm380_vm2, %v6185_v27 }
  0x33   : >> { %5246 = vmatprep.mubr.msk.bf16.mxu0 %vm6424_vm0, %v6423_v17  ;;  %5262 = vmatprep.mubr.msk.bf16.mxu1 %vm6424_vm0, %v6423_v17 }
  0x3a   : >> { %5247 = vmatmul.mubr.msk.bf16.gmra.mrb[4].mxu0 %vm380_vm2, %v6186_v28  ;;  %5263 = vmatmul.mubr.msk.bf16.gmra.mrb[4].mxu1 %vm380_vm2, %v6187_v29 }
  0x3b   : >> { %5250 = vmatprep.mubr.msk.bf16.mxu0 %vm6424_vm0, %v6423_v17  ;;  %5266 = vmatprep.mubr.msk.bf16.mxu1 %vm6424_vm0, %v6423_v17 }
  0x42   : >> { %5251 = vmatmul.mubr.msk.bf16.gmra.mrb[8].mxu0 %vm380_vm2, %v6188_v30  ;;  %5267 = vmatmul.mubr.msk.bf16.gmra.mrb[8].mxu1 %vm380_vm2, %v6189_v31 }
  0x43   : >> { %5254 = vmatprep.mubr.msk.bf16.mxu0 %vm6424_vm0, %v6423_v17 }
  0x4a   : >> { %5255 = vmatmul.mubr.msk.bf16.gmra.mrb[12].mxu0 %vm380_vm2, %v6190_v32 }
 0x105   : >> { %v440_v33 = vpop.f32.mrb[0].mxu0  ;;  %v472_v34 = vpop.f32.mrb[0].mxu1 }
 0x106   : >> { %498 = vst.msk [vmem:[%s6656_s22] sm:$0xff] %vm497_vm3, %v440_v33  ;;  %v5244_v35 = vpop.f32.mrb[1].mxu0  ;;  %506 = vst.msk [vmem:[%s6656_s22 + $0x40] sm:$0xff] %vm497_vm3, %v472_v34  ;;  %v5260_v36 = vpop.f32.mrb[1].mxu1 }
 0x107   : >> { %v443_v37 = vpop.f32.mrb[2].mxu0  ;;  %v475_v38 = vpop.f32.mrb[2].mxu1 }
 0x108   : >> { %499 = vst.msk [vmem:[%s6656_s22 + $0x8] sm:$0xff] %vm497_vm3, %v443_v37  ;;  %v5245_v39 = vpop.f32.mrb[3].mxu0  ;;  %507 = vst.msk [vmem:[%s6656_s22 + $0x48] sm:$0xff] %vm497_vm3, %v475_v38  ;;  %v5261_v40 = vpop.f32.mrb[3].mxu1 }
 0x10d   : >> { %v448_v41 = vpop.f32.mrb[4].mxu0  ;;  %v480_v42 = vpop.f32.mrb[4].mxu1 }
 0x10e   : >> { %500 = vst.msk [vmem:[%s6656_s22 + $0x10] sm:$0xff] %vm497_vm3, %v448_v41  ;;  %v5248_v43 = vpop.f32.mrb[5].mxu0  ;;  %508 = vst.msk [vmem:[%s6656_s22 + $0x50] sm:$0xff] %vm497_vm3, %v480_v42  ;;  %v5264_v44 = vpop.f32.mrb[5].mxu1 }
 0x10f   : >> { %v451_v45 = vpop.f32.mrb[6].mxu0  ;;  %v483_v46 = vpop.f32.mrb[6].mxu1 }
 0x110   : >> { %501 = vst.msk [vmem:[%s6656_s22 + $0x18] sm:$0xff] %vm497_vm3, %v451_v45  ;;  %v5249_v47 = vpop.f32.mrb[7].mxu0  ;;  %509 = vst.msk [vmem:[%s6656_s22 + $0x58] sm:$0xff] %vm497_vm3, %v483_v46  ;;  %v5265_v48 = vpop.f32.mrb[7].mxu1 }
 0x115   : >> { %v456_v49 = vpop.f32.mrb[8].mxu0  ;;  %v488_v50 = vpop.f32.mrb[8].mxu1 }
 0x116   : >> { %502 = vst.msk [vmem:[%s6656_s22 + $0x20] sm:$0xff] %vm497_vm3, %v456_v49  ;;  %v5252_v51 = vpop.f32.mrb[9].mxu0  ;;  %510 = vst.msk [vmem:[%s6656_s22 + $0x60] sm:$0xff] %vm497_vm3, %v488_v50  ;;  %v5268_v52 = vpop.f32.mrb[9].mxu1 }
 0x117   : >> { %v459_v53 = vpop.f32.mrb[10].mxu0  ;;  %v491_v54 = vpop.f32.mrb[10].mxu1 }
 0x118   : >> { %503 = vst.msk [vmem:[%s6656_s22 + $0x28] sm:$0xff] %vm497_vm3, %v459_v53  ;;  %v5253_v55 = vpop.f32.mrb[11].mxu0  ;;  %v5269_v56 = vpop.f32.mrb[11].mxu1 }
 0x119   : >> { %512 = vst.msk [vmem:[%s6656_s22 + $0x68] sm:$0x1] %vm511_vm4, %v491_v54 }
 0x11a   : > { %279 = sbr.rel (!%p277_p4) target bundleno = 17 (0x11), region = 212 }
 0x11d   : >> { %v464_v57 = vpop.f32.mrb[12].mxu0 }
 0x11e   : >> { %504 = vst.msk [vmem:[%s6656_s22 + $0x30] sm:$0xff] %vm497_vm3, %v464_v57  ;;  %v5256_v58 = vpop.f32.mrb[13].mxu0 }
 0x11f   : >> { %v467_v59 = vpop.f32.mrb[14].mxu0 }
 0x120   : >> { %505 = vst.msk [vmem:[%s6656_s22 + $0x38] sm:$0xff] %vm497_vm3, %v467_v59  ;;  %v5257_v60 = vpop.f32.mrb[15].mxu0 }
 0x121 LB: >> { %v4538_v12 = vcombine.low %v6692_v61, %v6697_v62  ;;  %v6425_v13 = vmov 0.0   ;;  %v4539_v14 = vcombine.low %v6702_v63, %v6707_v16  ;;  %s5007_s23 = smul.u32 68, %s6373_s12  ;;  %vm6426_vm5 = vmmov 0   ;;  %s6373_s12 = sphi %s6769_s12, %s535_s12  }
 0x122   : >> { %5270 = vmatprep.subr.bf16.mxu0 %v6425_v13  ;;  %5842 = vmatprep.subr.bf16.mxu1 %v6425_v13  ;;  %v4540_v15 = vcombine.low %v6712_v0, %v6717_v1  ;;  %v4541_v17 = vcombine.low %v6722_v2, %v6727_v3  ;;  %v4542_v18 = vcombine.low %v6732_v4, %v6737_v5  ;;  %vm588_vm6 = vcmask 1046528   ;;  %s764_s14 = smul.u32 112, %s6373_s12  ;;  %s535_s12 = sadd.s32 1, %s6373_s12  }
 0x123   : >> { %5271 = vmatpush3.bf16.msra.mxu0 %v4538_v12  ;;  %5850 = vmatpush3.bf16.msra.mxu1 %v4538_v12  ;;  %s6786_s13 = scalar_lea.vmem %s6583_s16, %s5007_s23  ;;  %v4543_v19 = vcombine.low %v6742_v6, %v6747_v7  ;;  %v4544_v21 = vcombine.low %v6752_v8, %v6757_v9  ;;  %v4545_v25 = vcombine.low %v6762_v10, %v6767_v11  ;;  %p532_p5 = scmp.ge.s32.totalorder %s535_s12, 2  }
 0x124   : >> { %5272 = vmatprep.subr.bf16.mxu0 %v6425_v13  ;;  %5843 = vmatprep.subr.bf16.mxu1 %v6425_v13  ;;  %v6191_v20 = vld [vmem:[%s6786_s13] sm:$0xfe]   ;;  %v6192_v22 = vld [vmem:[%s6786_s13 + $0x8] sm:$0xff]   ;;  %v6195_v33 = vld [vmem:[%s6786_s13 + $0x10] sm:$0xff]   ;;  %s6846_s15 = scalar_lea.vmem [#allocation2], %s764_s14  ;;  %s6973_s30 = smov (%p532_p5), 0  }
 0x125   : >> { %5286 = vmatprep.mubr.msk.bf16.mxu0 %vm6426_vm5, %v6425_v13  ;;  %5302 = vmatprep.mubr.msk.bf16.mxu1 %vm6426_vm5, %v6425_v13  ;;  %v6193_v23 = vld [vmem:[%s6786_s13 + $0x20] sm:$0xff]   ;;  %v6194_v24 = vld [vmem:[%s6786_s13 + $0x28] sm:$0xff]   ;;  %v589_v26 = vrot.slane %v6191_v20, 1  ;;  %v590_v27 = vrot.slane %v6192_v22, 1  ;;  %v673_v30 = vsel %vm402_vm1, %v4545_v25, 0  ;;  %v592_v35 = vrot.slane %v6195_v33, 1 }
 0x126   : >> { %v596_v28 = vrot.slane %v6193_v23, 1  ;;  %v598_v29 = vrot.slane %v6194_v24, 1  ;;  %v6196_v34 = vld [vmem:[%s6786_s13 + $0x30] sm:$0x3f]   ;;  %v6197_v39 = vld [vmem:[%s6786_s13 + $0x18] sm:$0xff]  }
 0x127   : >> { %5273 = vmatpush3.bf16.msra.mxu0 %v4539_v14  ;;  %5851 = vmatpush3.bf16.msra.mxu1 %v4539_v14  ;;  %v591_v31 = vsel %vm588_vm6, %v589_v26, %v590_v27  ;;  %v600_v36 = vrot.slane %v6196_v34, 1  ;;  %v593_v37 = vsel %vm588_vm6, %v590_v27, %v592_v35  ;;  %v594_v40 = vrot.slane %v6197_v39, 1  ;;  %v766_v43 = vld [vmem:[%s6846_s15] sm:$0xff]  ;;  %v767_v46 = vld [vmem:[%s6846_s15 + $0x8] sm:$0xff]  ;;  %v768_v59 = vld [vmem:[%s6846_s15 + $0x10] sm:$0xff] }
 0x128   : >> { %5274 = vmatprep.subr.bf16.mxu0 %v6425_v13  ;;  %5844 = vmatprep.subr.bf16.mxu1 %v6425_v13  ;;  %v599_v32 = vsel %vm588_vm6, %v596_v28, %v598_v29  ;;  %v774_v44 = vld [vmem:[%s6846_s15 + $0x40] sm:$0xff]  ;;  %v775_v48 = vld [vmem:[%s6846_s15 + $0x48] sm:$0xff]  ;;  %v776_v60 = vld [vmem:[%s6846_s15 + $0x50] sm:$0xff] }
 0x129   : >> { %v601_v38 = vsel %vm588_vm6, %v598_v29, %v600_v36  ;;  %v595_v41 = vsel %vm588_vm6, %v592_v35, %v594_v40  ;;  %v597_v42 = vsel %vm588_vm6, %v594_v40, %v596_v28  ;;  %v770_v27 = vld [vmem:[%s6846_s15 + $0x20] sm:$0xff]  ;;  %v6916_v61 = vld [vmem:[%s9229_s1 + $0x90] sm:$0xf] (%p532_p5)  ;;  %v6921_v62 = vld [vmem:[%s9229_s1 + $0x94] sm:$0xf] (%p532_p5) }
 0x12a   : >> { %v778_v28 = vld [vmem:[%s6846_s15 + $0x60] sm:$0xff]  ;;  %v6926_v63 = vld [vmem:[%s9229_s1 + $0x98] sm:$0xf] (%p532_p5)  ;;  %v6931_v16 = vld [vmem:[%s9229_s1 + $0x9c] sm:$0xf] (%p532_p5) }
 0x12b   : >> { %5275 = vmatpush3.bf16.msra.mxu0 %v4540_v15  ;;  %5852 = vmatpush3.bf16.msra.mxu1 %v4540_v15  ;;  %v777_v15 = vld [vmem:[%s6846_s15 + $0x58] sm:$0xff]  ;;  %v6936_v0 = vld [vmem:[%s9229_s1 + $0xa0] sm:$0xf] (%p532_p5)  ;;  %v6941_v1 = vld [vmem:[%s9229_s1 + $0xa4] sm:$0xf] (%p532_p5) }
 0x12c   : >> { %5276 = vmatprep.subr.bf16.mxu0 %v6425_v13  ;;  %5845 = vmatprep.subr.bf16.mxu1 %v6425_v13  ;;  %v6946_v2 = vld [vmem:[%s9229_s1 + $0xa8] sm:$0xf] (%p532_p5)  ;;  %v6951_v3 = vld [vmem:[%s9229_s1 + $0xac] sm:$0xf] (%p532_p5)  ;;  %v6956_v4 = vld [vmem:[%s9229_s1 + $0xb0] sm:$0xf] (%p532_p5) }
 0x12d   : > { %v6961_v5 = vld [vmem:[%s9229_s1 + $0xb4] sm:$0xf] (%p532_p5)  ;;  %v6966_v6 = vld [vmem:[%s9229_s1 + $0xb8] sm:$0xf] (%p532_p5)  ;;  %v6971_v7 = vld [vmem:[%s9229_s1 + $0xbc] sm:$0x3] (%p532_p5) }
 0x12f   : >> { %5277 = vmatpush3.bf16.msra.mxu0 %v4541_v17  ;;  %5853 = vmatpush3.bf16.msra.mxu1 %v4541_v17 }
 0x130   : >> { %5278 = vmatprep.subr.bf16.mxu0 %v6425_v13  ;;  %5846 = vmatprep.subr.bf16.mxu1 %v6425_v13 }
 0x133   : >> { %5279 = vmatpush3.bf16.msra.mxu0 %v4542_v18  ;;  %5854 = vmatpush3.bf16.msra.mxu1 %v4542_v18 }
 0x134   : >> { %5280 = vmatprep.subr.bf16.mxu0 %v6425_v13  ;;  %5847 = vmatprep.subr.bf16.mxu1 %v6425_v13 }
 0x137   : >> { %5281 = vmatpush3.bf16.msra.mxu0 %v4543_v19  ;;  %5855 = vmatpush3.bf16.msra.mxu1 %v4543_v19 }
 0x138   : >> { %5282 = vmatprep.subr.bf16.mxu0 %v6425_v13  ;;  %5848 = vmatprep.subr.bf16.mxu1 %v6425_v13 }
 0x13b   : >> { %5283 = vmatpush3.bf16.msra.mxu0 %v4544_v21  ;;  %5856 = vmatpush3.bf16.msra.mxu1 %v4544_v21 }
 0x13c   : >> { %5284 = vmatprep.subr.bf16.mxu0 %v6425_v13  ;;  %5849 = vmatprep.subr.bf16.mxu1 %v6425_v13 }
 0x13f   : >> { %5285 = vmatpush3.bf16.msra.mxu0 %v673_v30  ;;  %5857 = vmatpush3.bf16.msra.mxu1 %v673_v30  ;;  %v771_v30 = vld [vmem:[%s6846_s15 + $0x28] sm:$0xff] }
 0x142   : >> { %5287 = vmatmul.mubr.msk.bf16.vlgmr.msra.gmra.mrb[0].mxu0 %vm380_vm2, %v591_v31  ;;  %5303 = vmatmul.mubr.msk.bf16.vlgmr.msra.gmra.mrb[0].mxu1 %vm380_vm2, %v599_v32  ;;  %v779_v32 = vld [vmem:[%s6846_s15 + $0x68] sm:$0x1] }
 0x143   : >> { %5290 = vmatprep.mubr.msk.bf16.mxu0 %vm6426_vm5, %v6425_v13  ;;  %5306 = vmatprep.mubr.msk.bf16.mxu1 %vm6426_vm5, %v6425_v13 }
 0x14a   : >> { %5291 = vmatmul.mubr.msk.bf16.gmra.mrb[4].mxu0 %vm380_vm2, %v593_v37  ;;  %5307 = vmatmul.mubr.msk.bf16.gmra.mrb[4].mxu1 %vm380_vm2, %v601_v38 }
 0x14b   : >> { %5294 = vmatprep.mubr.msk.bf16.mxu0 %vm6426_vm5, %v6425_v13  ;;  %5310 = vmatprep.mubr.msk.bf16.mxu1 %vm6426_vm5, %v6425_v13 }
 0x152   : >> { %5295 = vmatmul.mubr.msk.bf16.gmra.mrb[8].mxu0 %vm380_vm2, %v595_v41  ;;  %5311 = vmatmul.mubr.msk.bf16.gmra.mrb[8].mxu1 %vm380_vm2, %v600_v36 }
 0x153   : >> { %5298 = vmatprep.mubr.msk.bf16.mxu0 %vm6426_vm5, %v6425_v13  ;;  %v769_v13 = vld [vmem:[%s6846_s15 + $0x18] sm:$0xff] }
 0x15a   : >> { %5299 = vmatmul.mubr.msk.bf16.gmra.mrb[12].mxu0 %vm380_vm2, %v597_v42 }
 0x215   : >> { %v709_v45 = vpop.f32.mrb[0].mxu0  ;;  %v741_v47 = vpop.f32.mrb[0].mxu1 }
 0x216   : >> { %v780_v49 = vadd.f32 %v766_v43, %v709_v45  ;;  %v5288_v50 = vpop.f32.mrb[1].mxu0  ;;  %v788_v51 = vadd.f32 %v774_v44, %v741_v47  ;;  %v5304_v52 = vpop.f32.mrb[1].mxu1  ;;  %v772_v43 = vld [vmem:[%s6846_s15 + $0x30] sm:$0xff]  ;;  %v773_v45 = vld [vmem:[%s6846_s15 + $0x38] sm:$0xff] }
 0x217   : >> { %v712_v53 = vpop.f32.mrb[2].mxu0  ;;  %v744_v54 = vpop.f32.mrb[2].mxu1  ;;  %v6901_v52 = vld [vmem:[%s9229_s1 + $0x84] sm:$0xf] (%p532_p5) }
 0x218   : >> { %795 = vst.msk [vmem:[%s6846_s15] sm:$0xff] %vm497_vm3, %v780_v49  ;;  %v781_v55 = vadd.f32 %v767_v46, %v712_v53  ;;  %v5289_v56 = vpop.f32.mrb[3].mxu0  ;;  %803 = vst.msk [vmem:[%s6846_s15 + $0x40] sm:$0xff] %vm497_vm3, %v788_v51  ;;  %v789_v57 = vadd.f32 %v775_v48, %v744_v54  ;;  %v5305_v58 = vpop.f32.mrb[3].mxu1  ;;  %v6896_v51 = vld [vmem:[%s9229_s1 + $0x80] sm:$0xf] (%p532_p5) }
 0x219   : > { %v6906_v53 = vld [vmem:[%s9229_s1 + $0x88] sm:$0xf] (%p532_p5)  ;;  %v6911_v54 = vld [vmem:[%s9229_s1 + $0x8c] sm:$0xf] (%p532_p5) }
 0x21a   : >> { %796 = vst.msk [vmem:[%s6846_s15 + $0x8] sm:$0xff] %vm497_vm3, %v781_v55  ;;  %804 = vst.msk [vmem:[%s6846_s15 + $0x48] sm:$0xff] %vm497_vm3, %v789_v57 }
 0x21d   : >> { %v717_v12 = vpop.f32.mrb[4].mxu0  ;;  %v749_v14 = vpop.f32.mrb[4].mxu1 }
 0x21e   : >> { %v782_v17 = vadd.f32 %v768_v59, %v717_v12  ;;  %v5292_v18 = vpop.f32.mrb[5].mxu0  ;;  %v790_v19 = vadd.f32 %v776_v60, %v749_v14  ;;  %v5308_v20 = vpop.f32.mrb[5].mxu1 }
 0x21f   : >> { %v720_v21 = vpop.f32.mrb[6].mxu0  ;;  %v752_v22 = vpop.f32.mrb[6].mxu1 }
 0x220   : >> { %797 = vst.msk [vmem:[%s6846_s15 + $0x10] sm:$0xff] %vm497_vm3, %v782_v17  ;;  %v783_v23 = vadd.f32 %v769_v13, %v720_v21  ;;  %v5293_v24 = vpop.f32.mrb[7].mxu0  ;;  %805 = vst.msk [vmem:[%s6846_s15 + $0x50] sm:$0xff] %vm497_vm3, %v790_v19  ;;  %v791_v25 = vadd.f32 %v777_v15, %v752_v22  ;;  %v5309_v26 = vpop.f32.mrb[7].mxu1 }
 0x222   : >> { %798 = vst.msk [vmem:[%s6846_s15 + $0x18] sm:$0xff] %vm497_vm3, %v783_v23  ;;  %806 = vst.msk [vmem:[%s6846_s15 + $0x58] sm:$0xff] %vm497_vm3, %v791_v25 }
 0x225   : >> { %v725_v29 = vpop.f32.mrb[8].mxu0  ;;  %v757_v31 = vpop.f32.mrb[8].mxu1 }
 0x226   : >> { %v784_v33 = vadd.f32 %v770_v27, %v725_v29  ;;  %v5296_v34 = vpop.f32.mrb[9].mxu0  ;;  %v792_v35 = vadd.f32 %v778_v28, %v757_v31  ;;  %v5312_v36 = vpop.f32.mrb[9].mxu1 }
 0x227   : >> { %v728_v37 = vpop.f32.mrb[10].mxu0  ;;  %v760_v38 = vpop.f32.mrb[10].mxu1 }
 0x228   : >> { %799 = vst.msk [vmem:[%s6846_s15 + $0x20] sm:$0xff] %vm497_vm3, %v784_v33  ;;  %v785_v39 = vadd.f32 %v771_v30, %v728_v37  ;;  %v5297_v40 = vpop.f32.mrb[11].mxu0  ;;  %807 = vst.msk [vmem:[%s6846_s15 + $0x60] sm:$0xff] %vm497_vm3, %v792_v35  ;;  %v793_v41 = vadd.f32 %v779_v32, %v760_v38  ;;  %v5313_v42 = vpop.f32.mrb[11].mxu1 }
 0x22a   : >> { %800 = vst.msk [vmem:[%s6846_s15 + $0x28] sm:$0xff] %vm497_vm3, %v785_v39 }
 0x22b   : >> { %809 = vst.msk [vmem:[%s6846_s15 + $0x68] sm:$0x1] %vm511_vm4, %v793_v41 }
 0x22c   : > { %534 = sbr.rel (!%p532_p5) target bundleno = 289 (0x121), region = 223 }
 0x22d   : >> { %v733_v44 = vpop.f32.mrb[12].mxu0 }
 0x22e   : >> { %v786_v46 = vadd.f32 %v772_v43, %v733_v44  ;;  %v5300_v47 = vpop.f32.mrb[13].mxu0 }
 0x22f   : >> { %v736_v48 = vpop.f32.mrb[14].mxu0 }
 0x230   : >> { %801 = vst.msk [vmem:[%s6846_s15 + $0x30] sm:$0xff] %vm497_vm3, %v786_v46  ;;  %v787_v49 = vadd.f32 %v773_v45, %v736_v48  ;;  %v5301_v50 = vpop.f32.mrb[15].mxu0 }
 0x232   : >> { %802 = vst.msk [vmem:[%s6846_s15 + $0x38] sm:$0xff] %vm497_vm3, %v787_v49 }
 0x233 LB: >> { %v4577_v8 = vcombine.low %v6896_v51, %v6901_v52  ;;  %v6427_v9 = vmov 0.0   ;;  %v4578_v10 = vcombine.low %v6906_v53, %v6911_v54  ;;  %s5008_s7 = smul.u32 68, %s6377_s30  ;;  %vm6428_vm7 = vmmov 0   ;;  %s6377_s30 = sphi %s6973_s30, %s832_s30  }
 0x234   : >> { %5314 = vmatprep.subr.bf16.mxu0 %v6427_v9  ;;  %5858 = vmatprep.subr.bf16.mxu1 %v6427_v9  ;;  %v4579_v11 = vcombine.low %v6916_v61, %v6921_v62  ;;  %v4580_v55 = vcombine.low %v6926_v63, %v6931_v16  ;;  %v4581_v56 = vcombine.low %v6936_v0, %v6941_v1  ;;  %s1061_s9 = smul.u32 112, %s6377_s30  ;;  %s832_s30 = sadd.s32 1, %s6377_s30  }
 0x235   : >> { %5315 = vmatpush3.bf16.msra.mxu0 %v4577_v8  ;;  %5866 = vmatpush3.bf16.msra.mxu1 %v4577_v8  ;;  %s6990_s8 = scalar_lea.vmem %s6583_s16, %s5008_s7  ;;  %v4582_v57 = vcombine.low %v6946_v2, %v6951_v3  ;;  %v4583_v59 = vcombine.low %v6956_v4, %v6961_v5  ;;  %v4584_v14 = vcombine.low %v6966_v6, %v6971_v7  ;;  %p829_p6 = scmp.ge.s32.totalorder %s832_s30, 2  }
 0x236   : >> { %5316 = vmatprep.subr.bf16.mxu0 %v6427_v9  ;;  %5859 = vmatprep.subr.bf16.mxu1 %v6427_v9  ;;  %v6198_v58 = vld [vmem:[%s6990_s8] sm:$0xfc]   ;;  %v6199_v60 = vld [vmem:[%s6990_s8 + $0x8] sm:$0xff]   ;;  %v6202_v23 = vld [vmem:[%s6990_s8 + $0x10] sm:$0xff]   ;;  %s7050_s11 = scalar_lea.vmem [#allocation2], %s1061_s9  ;;  %s7177_s25 = smov (%p829_p6), 0  }
 0x237   : >> { %5330 = vmatprep.mubr.msk.bf16.mxu0 %vm6428_vm7, %v6427_v9  ;;  %5346 = vmatprep.mubr.msk.bf16.mxu1 %vm6428_vm7, %v6427_v9  ;;  %v6200_v12 = vld [vmem:[%s6990_s8 + $0x20] sm:$0xff]   ;;  %v6201_v13 = vld [vmem:[%s6990_s8 + $0x28] sm:$0xff]   ;;  %v886_v15 = vrot.slane %v6198_v58, 2  ;;  %v887_v17 = vrot.slane %v6199_v60, 2  ;;  %v970_v20 = vsel %vm402_vm1, %v4584_v14, 0  ;;  %v889_v25 = vrot.slane %v6202_v23, 2 }
 0x238   : >> { %v893_v18 = vrot.slane %v6200_v12, 2  ;;  %v895_v19 = vrot.slane %v6201_v13, 2  ;;  %v6203_v24 = vld [vmem:[%s6990_s8 + $0x30] sm:$0x7f]   ;;  %v6204_v29 = vld [vmem:[%s6990_s8 + $0x18] sm:$0xff]  }
 0x239   : >> { %5317 = vmatpush3.bf16.msra.mxu0 %v4578_v10  ;;  %5867 = vmatpush3.bf16.msra.mxu1 %v4578_v10  ;;  %v888_v21 = vsel %vm402_vm1, %v886_v15, %v887_v17  ;;  %v897_v26 = vrot.slane %v6203_v24, 2  ;;  %v890_v27 = vsel %vm402_vm1, %v887_v17, %v889_v25  ;;  %v891_v30 = vrot.slane %v6204_v29, 2  ;;  %v1063_v33 = vld [vmem:[%s7050_s11] sm:$0xff]  ;;  %v1064_v36 = vld [vmem:[%s7050_s11 + $0x8] sm:$0xff]  ;;  %v1065_v49 = vld [vmem:[%s7050_s11 + $0x10] sm:$0xff] }
 0x23a   : >> { %5318 = vmatprep.subr.bf16.mxu0 %v6427_v9  ;;  %5860 = vmatprep.subr.bf16.mxu1 %v6427_v9  ;;  %v896_v22 = vsel %vm402_vm1, %v893_v18, %v895_v19  ;;  %v1071_v34 = vld [vmem:[%s7050_s11 + $0x40] sm:$0xff]  ;;  %v1072_v38 = vld [vmem:[%s7050_s11 + $0x48] sm:$0xff]  ;;  %v1073_v50 = vld [vmem:[%s7050_s11 + $0x50] sm:$0xff] }
 0x23b   : >> { %v898_v28 = vsel %vm402_vm1, %v895_v19, %v897_v26  ;;  %v892_v31 = vsel %vm402_vm1, %v889_v25, %v891_v30  ;;  %v894_v32 = vsel %vm402_vm1, %v891_v30, %v893_v18  ;;  %v1067_v17 = vld [vmem:[%s7050_s11 + $0x20] sm:$0xff]  ;;  %v7120_v51 = vld [vmem:[%s9229_s1 + $0xd0] sm:$0xf] (%p829_p6)  ;;  %v7125_v52 = vld [vmem:[%s9229_s1 + $0xd4] sm:$0xf] (%p829_p6) }
 0x23c   : >> { %v1075_v18 = vld [vmem:[%s7050_s11 + $0x60] sm:$0xff]  ;;  %v7130_v53 = vld [vmem:[%s9229_s1 + $0xd8] sm:$0xf] (%p829_p6)  ;;  %v7135_v54 = vld [vmem:[%s9229_s1 + $0xdc] sm:$0xf] (%p829_p6) }
 0x23d   : >> { %5319 = vmatpush3.bf16.msra.mxu0 %v4579_v11  ;;  %5868 = vmatpush3.bf16.msra.mxu1 %v4579_v11  ;;  %v1074_v11 = vld [vmem:[%s7050_s11 + $0x58] sm:$0xff]  ;;  %v7140_v61 = vld [vmem:[%s9229_s1 + $0xe0] sm:$0xf] (%p829_p6)  ;;  %v7145_v62 = vld [vmem:[%s9229_s1 + $0xe4] sm:$0xf] (%p829_p6) }
 0x23e   : >> { %5320 = vmatprep.subr.bf16.mxu0 %v6427_v9  ;;  %5861 = vmatprep.subr.bf16.mxu1 %v6427_v9  ;;  %v7150_v63 = vld [vmem:[%s9229_s1 + $0xe8] sm:$0xf] (%p829_p6)  ;;  %v7155_v16 = vld [vmem:[%s9229_s1 + $0xec] sm:$0xf] (%p829_p6)  ;;  %v7160_v0 = vld [vmem:[%s9229_s1 + $0xf0] sm:$0xf] (%p829_p6) }
 0x23f   : > { %v7165_v1 = vld [vmem:[%s9229_s1 + $0xf4] sm:$0xf] (%p829_p6)  ;;  %v7170_v2 = vld [vmem:[%s9229_s1 + $0xf8] sm:$0xf] (%p829_p6)  ;;  %v7175_v3 = vld [vmem:[%s9229_s1 + $0xfc] sm:$0x3] (%p829_p6) }
 0x241   : >> { %5321 = vmatpush3.bf16.msra.mxu0 %v4580_v55  ;;  %5869 = vmatpush3.bf16.msra.mxu1 %v4580_v55 }
 0x242   : >> { %5322 = vmatprep.subr.bf16.mxu0 %v6427_v9  ;;  %5862 = vmatprep.subr.bf16.mxu1 %v6427_v9 }
 0x245   : >> { %5323 = vmatpush3.bf16.msra.mxu0 %v4581_v56  ;;  %5870 = vmatpush3.bf16.msra.mxu1 %v4581_v56 }
 0x246   : >> { %5324 = vmatprep.subr.bf16.mxu0 %v6427_v9  ;;  %5863 = vmatprep.subr.bf16.mxu1 %v6427_v9 }
 0x249   : >> { %5325 = vmatpush3.bf16.msra.mxu0 %v4582_v57  ;;  %5871 = vmatpush3.bf16.msra.mxu1 %v4582_v57 }
 0x24a   : >> { %5326 = vmatprep.subr.bf16.mxu0 %v6427_v9  ;;  %5864 = vmatprep.subr.bf16.mxu1 %v6427_v9 }
 0x24d   : >> { %5327 = vmatpush3.bf16.msra.mxu0 %v4583_v59  ;;  %5872 = vmatpush3.bf16.msra.mxu1 %v4583_v59 }
 0x24e   : >> { %5328 = vmatprep.subr.bf16.mxu0 %v6427_v9  ;;  %5865 = vmatprep.subr.bf16.mxu1 %v6427_v9 }
 0x251   : >> { %5329 = vmatpush3.bf16.msra.mxu0 %v970_v20  ;;  %5873 = vmatpush3.bf16.msra.mxu1 %v970_v20  ;;  %v1068_v20 = vld [vmem:[%s7050_s11 + $0x28] sm:$0xff] }
 0x254   : >> { %5331 = vmatmul.mubr.msk.bf16.vlgmr.msra.gmra.mrb[0].mxu0 %vm380_vm2, %v888_v21  ;;  %5347 = vmatmul.mubr.msk.bf16.vlgmr.msra.gmra.mrb[0].mxu1 %vm380_vm2, %v896_v22  ;;  %v1076_v22 = vld [vmem:[%s7050_s11 + $0x68] sm:$0x1] }
 0x255   : >> { %5334 = vmatprep.mubr.msk.bf16.mxu0 %vm6428_vm7, %v6427_v9  ;;  %5350 = vmatprep.mubr.msk.bf16.mxu1 %vm6428_vm7, %v6427_v9 }
 0x25c   : >> { %5335 = vmatmul.mubr.msk.bf16.gmra.mrb[4].mxu0 %vm380_vm2, %v890_v27  ;;  %5351 = vmatmul.mubr.msk.bf16.gmra.mrb[4].mxu1 %vm380_vm2, %v898_v28 }
 0x25d   : >> { %5338 = vmatprep.mubr.msk.bf16.mxu0 %vm6428_vm7, %v6427_v9  ;;  %5354 = vmatprep.mubr.msk.bf16.mxu1 %vm6428_vm7, %v6427_v9 }
 0x264   : >> { %5339 = vmatmul.mubr.msk.bf16.gmra.mrb[8].mxu0 %vm380_vm2, %v892_v31  ;;  %5355 = vmatmul.mubr.msk.bf16.gmra.mrb[8].mxu1 %vm380_vm2, %v897_v26 }
 0x265   : >> { %5342 = vmatprep.mubr.msk.bf16.mxu0 %vm6428_vm7, %v6427_v9  ;;  %v1066_v9 = vld [vmem:[%s7050_s11 + $0x18] sm:$0xff] }
 0x26c   : >> { %5343 = vmatmul.mubr.msk.bf16.gmra.mrb[12].mxu0 %vm380_vm2, %v894_v32 }
 0x327   : >> { %v1006_v35 = vpop.f32.mrb[0].mxu0  ;;  %v1038_v37 = vpop.f32.mrb[0].mxu1 }
 0x328   : >> { %v1077_v39 = vadd.f32 %v1063_v33, %v1006_v35  ;;  %v5332_v40 = vpop.f32.mrb[1].mxu0  ;;  %v1085_v41 = vadd.f32 %v1071_v34, %v1038_v37  ;;  %v5348_v42 = vpop.f32.mrb[1].mxu1  ;;  %v1069_v33 = vld [vmem:[%s7050_s11 + $0x30] sm:$0xff]  ;;  %v1070_v35 = vld [vmem:[%s7050_s11 + $0x38] sm:$0xff] }
 0x329   : >> { %v1009_v43 = vpop.f32.mrb[2].mxu0  ;;  %v1041_v44 = vpop.f32.mrb[2].mxu1  ;;  %v7105_v42 = vld [vmem:[%s9229_s1 + $0xc4] sm:$0xf] (%p829_p6) }
 0x32a   : >> { %1092 = vst.msk [vmem:[%s7050_s11] sm:$0xff] %vm497_vm3, %v1077_v39  ;;  %v1078_v45 = vadd.f32 %v1064_v36, %v1009_v43  ;;  %v5333_v46 = vpop.f32.mrb[3].mxu0  ;;  %1100 = vst.msk [vmem:[%s7050_s11 + $0x40] sm:$0xff] %vm497_vm3, %v1085_v41  ;;  %v1086_v47 = vadd.f32 %v1072_v38, %v1041_v44  ;;  %v5349_v48 = vpop.f32.mrb[3].mxu1  ;;  %v7100_v41 = vld [vmem:[%s9229_s1 + $0xc0] sm:$0xf] (%p829_p6) }
 0x32b   : > { %v7110_v43 = vld [vmem:[%s9229_s1 + $0xc8] sm:$0xf] (%p829_p6)  ;;  %v7115_v44 = vld [vmem:[%s9229_s1 + $0xcc] sm:$0xf] (%p829_p6) }
 0x32c   : >> { %1093 = vst.msk [vmem:[%s7050_s11 + $0x8] sm:$0xff] %vm497_vm3, %v1078_v45  ;;  %1101 = vst.msk [vmem:[%s7050_s11 + $0x48] sm:$0xff] %vm497_vm3, %v1086_v47 }
 0x32f   : >> { %v1014_v8 = vpop.f32.mrb[4].mxu0  ;;  %v1046_v10 = vpop.f32.mrb[4].mxu1 }
 0x330   : >> { %v1079_v55 = vadd.f32 %v1065_v49, %v1014_v8  ;;  %v5336_v56 = vpop.f32.mrb[5].mxu0  ;;  %v1087_v57 = vadd.f32 %v1073_v50, %v1046_v10  ;;  %v5352_v58 = vpop.f32.mrb[5].mxu1 }
 0x331   : >> { %v1017_v59 = vpop.f32.mrb[6].mxu0  ;;  %v1049_v60 = vpop.f32.mrb[6].mxu1 }
 0x332   : >> { %1094 = vst.msk [vmem:[%s7050_s11 + $0x10] sm:$0xff] %vm497_vm3, %v1079_v55  ;;  %v1080_v12 = vadd.f32 %v1066_v9, %v1017_v59  ;;  %v5337_v13 = vpop.f32.mrb[7].mxu0  ;;  %1102 = vst.msk [vmem:[%s7050_s11 + $0x50] sm:$0xff] %vm497_vm3, %v1087_v57  ;;  %v1088_v14 = vadd.f32 %v1074_v11, %v1049_v60  ;;  %v5353_v15 = vpop.f32.mrb[7].mxu1 }
 0x334   : >> { %1095 = vst.msk [vmem:[%s7050_s11 + $0x18] sm:$0xff] %vm497_vm3, %v1080_v12  ;;  %1103 = vst.msk [vmem:[%s7050_s11 + $0x58] sm:$0xff] %vm497_vm3, %v1088_v14 }
 0x337   : >> { %v1022_v19 = vpop.f32.mrb[8].mxu0  ;;  %v1054_v21 = vpop.f32.mrb[8].mxu1 }
 0x338   : >> { %v1081_v23 = vadd.f32 %v1067_v17, %v1022_v19  ;;  %v5340_v24 = vpop.f32.mrb[9].mxu0  ;;  %v1089_v25 = vadd.f32 %v1075_v18, %v1054_v21  ;;  %v5356_v26 = vpop.f32.mrb[9].mxu1 }
 0x339   : >> { %v1025_v27 = vpop.f32.mrb[10].mxu0  ;;  %v1057_v28 = vpop.f32.mrb[10].mxu1 }
 0x33a   : >> { %1096 = vst.msk [vmem:[%s7050_s11 + $0x20] sm:$0xff] %vm497_vm3, %v1081_v23  ;;  %v1082_v29 = vadd.f32 %v1068_v20, %v1025_v27  ;;  %v5341_v30 = vpop.f32.mrb[11].mxu0  ;;  %1104 = vst.msk [vmem:[%s7050_s11 + $0x60] sm:$0xff] %vm497_vm3, %v1089_v25  ;;  %v1090_v31 = vadd.f32 %v1076_v22, %v1057_v28  ;;  %v5357_v32 = vpop.f32.mrb[11].mxu1 }
 0x33c   : >> { %1097 = vst.msk [vmem:[%s7050_s11 + $0x28] sm:$0xff] %vm497_vm3, %v1082_v29 }
 0x33d   : >> { %1106 = vst.msk [vmem:[%s7050_s11 + $0x68] sm:$0x1] %vm511_vm4, %v1090_v31 }
 0x33e   : > { %831 = sbr.rel (!%p829_p6) target bundleno = 563 (0x233), region = 234 }
 0x33f   : >> { %v1030_v34 = vpop.f32.mrb[12].mxu0 }
 0x340   : >> { %v1083_v36 = vadd.f32 %v1069_v33, %v1030_v34  ;;  %v5344_v37 = vpop.f32.mrb[13].mxu0 }
 0x341   : >> { %v1033_v38 = vpop.f32.mrb[14].mxu0 }
 0x342   : >> { %1098 = vst.msk [vmem:[%s7050_s11 + $0x30] sm:$0xff] %vm497_vm3, %v1083_v36  ;;  %v1084_v39 = vadd.f32 %v1070_v35, %v1033_v38  ;;  %v5345_v40 = vpop.f32.mrb[15].mxu0 }
 0x344   : >> { %1099 = vst.msk [vmem:[%s7050_s11 + $0x38] sm:$0xff] %vm497_vm3, %v1084_v39 }
 0x345 LB: >> { %v4616_v4 = vcombine.low %v7100_v41, %v7105_v42  ;;  %v6429_v5 = vmov 0.0   ;;  %v4617_v6 = vcombine.low %v7110_v43, %v7115_v44  ;;  %s5009_s26 = smul.u32 68, %s6381_s25  ;;  %vm6430_vm8 = vmmov 0   ;;  %s6381_s25 = sphi %s7177_s25, %s1129_s25  }
 0x346   : >> { %5358 = vmatprep.subr.bf16.mxu0 %v6429_v5  ;;  %5874 = vmatprep.subr.bf16.mxu1 %v6429_v5  ;;  %v4618_v7 = vcombine.low %v7120_v51, %v7125_v52  ;;  %v4619_v45 = vcombine.low %v7130_v53, %v7135_v54  ;;  %v4620_v46 = vcombine.low %v7140_v61, %v7145_v62  ;;  %vm1182_vm9 = vcmask 1044480   ;;  %s1358_s28 = smul.u32 112, %s6381_s25  ;;  %s1129_s25 = sadd.s32 1, %s6381_s25  }
 0x347   : >> { %5359 = vmatpush3.bf16.msra.mxu0 %v4616_v4  ;;  %5882 = vmatpush3.bf16.msra.mxu1 %v4616_v4  ;;  %s7194_s27 = scalar_lea.vmem %s6583_s16, %s5009_s26  ;;  %v4621_v47 = vcombine.low %v7150_v63, %v7155_v16  ;;  %v4622_v49 = vcombine.low %v7160_v0, %v7165_v1  ;;  %v4623_v10 = vcombine.low %v7170_v2, %v7175_v3  ;;  %p1126_p7 = scmp.ge.s32.totalorder %s1129_s25, 2  }
 0x348   : >> { %5360 = vmatprep.subr.bf16.mxu0 %v6429_v5  ;;  %5875 = vmatprep.subr.bf16.mxu1 %v6429_v5  ;;  %v6205_v48 = vld [vmem:[%s7194_s27] sm:$0xf8]   ;;  %v6206_v50 = vld [vmem:[%s7194_s27 + $0x8] sm:$0xff]   ;;  %v6209_v12 = vld [vmem:[%s7194_s27 + $0x10] sm:$0xff]   ;;  %s7254_s29 = scalar_lea.vmem [#allocation2], %s1358_s28  ;;  %s7381_s18 = smov (%p1126_p7), 0  }
 0x349   : >> { %5374 = vmatprep.mubr.msk.bf16.mxu0 %vm6430_vm8, %v6429_v5  ;;  %5390 = vmatprep.mubr.msk.bf16.mxu1 %vm6430_vm8, %v6429_v5  ;;  %v6207_v8 = vld [vmem:[%s7194_s27 + $0x20] sm:$0xff]   ;;  %v6208_v9 = vld [vmem:[%s7194_s27 + $0x28] sm:$0xff]   ;;  %v1183_v11 = vrot.slane %v6205_v48, 3  ;;  %v1184_v55 = vrot.slane %v6206_v50, 3  ;;  %v1267_v58 = vsel %vm402_vm1, %v4623_v10, 0  ;;  %v6210_v13 = vld [vmem:[%s7194_s27 + $0x30] sm:$0xff]  }
 0x34a   : >> { %v1190_v56 = vrot.slane %v6207_v8, 3  ;;  %v1192_v57 = vrot.slane %v6208_v9, 3  ;;  %v1186_v14 = vrot.slane %v6209_v12, 3  ;;  %v1194_v15 = vrot.slane %v6210_v13, 3  ;;  %v6211_v19 = vld [vmem:[%s7194_s27 + $0x18] sm:$0xff]  }
 0x34b   : >> { %5361 = vmatpush3.bf16.msra.mxu0 %v4617_v6  ;;  %5883 = vmatpush3.bf16.msra.mxu1 %v4617_v6  ;;  %v1185_v59 = vsel %vm1182_vm9, %v1183_v11, %v1184_v55  ;;  %v1188_v20 = vrot.slane %v6211_v19, 3  ;;  %v1360_v23 = vld [vmem:[%s7254_s29] sm:$0xff]  ;;  %v1361_v26 = vld [vmem:[%s7254_s29 + $0x8] sm:$0xff]  ;;  %v1362_v39 = vld [vmem:[%s7254_s29 + $0x10] sm:$0xff] }
 0x34c   : >> { %5362 = vmatprep.subr.bf16.mxu0 %v6429_v5  ;;  %5876 = vmatprep.subr.bf16.mxu1 %v6429_v5  ;;  %v1193_v60 = vsel %vm1182_vm9, %v1190_v56, %v1192_v57  ;;  %v1187_v17 = vsel %vm1182_vm9, %v1184_v55, %v1186_v14  ;;  %v1195_v18 = vsel %vm1182_vm9, %v1192_v57, %v1194_v15  ;;  %v1368_v24 = vld [vmem:[%s7254_s29 + $0x40] sm:$0xff]  ;;  %v1369_v28 = vld [vmem:[%s7254_s29 + $0x48] sm:$0xff]  ;;  %v1370_v40 = vld [vmem:[%s7254_s29 + $0x50] sm:$0xff] }
 0x34d   : >> { %v1189_v21 = vsel %vm1182_vm9, %v1186_v14, %v1188_v20  ;;  %v1191_v22 = vsel %vm1182_vm9, %v1188_v20, %v1190_v56  ;;  %v1364_v55 = vld [vmem:[%s7254_s29 + $0x20] sm:$0xff]  ;;  %v7324_v41 = vld [vmem:[%s9229_s1 + $0x110] sm:$0xf] (%p1126_p7)  ;;  %v7329_v42 = vld [vmem:[%s9229_s1 + $0x114] sm:$0xf] (%p1126_p7) }
 0x34e   : >> { %v1372_v56 = vld [vmem:[%s7254_s29 + $0x60] sm:$0xff]  ;;  %v7334_v43 = vld [vmem:[%s9229_s1 + $0x118] sm:$0xf] (%p1126_p7)  ;;  %v7339_v44 = vld [vmem:[%s9229_s1 + $0x11c] sm:$0xf] (%p1126_p7) }
 0x34f   : >> { %5363 = vmatpush3.bf16.msra.mxu0 %v4618_v7  ;;  %5884 = vmatpush3.bf16.msra.mxu1 %v4618_v7  ;;  %v1371_v7 = vld [vmem:[%s7254_s29 + $0x58] sm:$0xff]  ;;  %v7344_v51 = vld [vmem:[%s9229_s1 + $0x120] sm:$0xf] (%p1126_p7)  ;;  %v7349_v52 = vld [vmem:[%s9229_s1 + $0x124] sm:$0xf] (%p1126_p7) }
 0x350   : >> { %5364 = vmatprep.subr.bf16.mxu0 %v6429_v5  ;;  %5877 = vmatprep.subr.bf16.mxu1 %v6429_v5  ;;  %v7354_v53 = vld [vmem:[%s9229_s1 + $0x128] sm:$0xf] (%p1126_p7)  ;;  %v7359_v54 = vld [vmem:[%s9229_s1 + $0x12c] sm:$0xf] (%p1126_p7)  ;;  %v7364_v61 = vld [vmem:[%s9229_s1 + $0x130] sm:$0xf] (%p1126_p7) }
 0x351   : > { %v7369_v62 = vld [vmem:[%s9229_s1 + $0x134] sm:$0xf] (%p1126_p7)  ;;  %v7374_v63 = vld [vmem:[%s9229_s1 + $0x138] sm:$0xf] (%p1126_p7)  ;;  %v7379_v16 = vld [vmem:[%s9229_s1 + $0x13c] sm:$0x3] (%p1126_p7) }
 0x353   : >> { %5365 = vmatpush3.bf16.msra.mxu0 %v4619_v45  ;;  %5885 = vmatpush3.bf16.msra.mxu1 %v4619_v45 }
 0x354   : >> { %5366 = vmatprep.subr.bf16.mxu0 %v6429_v5  ;;  %5878 = vmatprep.subr.bf16.mxu1 %v6429_v5 }
 0x357   : >> { %5367 = vmatpush3.bf16.msra.mxu0 %v4620_v46  ;;  %5886 = vmatpush3.bf16.msra.mxu1 %v4620_v46 }
 0x358   : >> { %5368 = vmatprep.subr.bf16.mxu0 %v6429_v5  ;;  %5879 = vmatprep.subr.bf16.mxu1 %v6429_v5 }
 0x35b   : >> { %5369 = vmatpush3.bf16.msra.mxu0 %v4621_v47  ;;  %5887 = vmatpush3.bf16.msra.mxu1 %v4621_v47 }
 0x35c   : >> { %5370 = vmatprep.subr.bf16.mxu0 %v6429_v5  ;;  %5880 = vmatprep.subr.bf16.mxu1 %v6429_v5 }
 0x35f   : >> { %5371 = vmatpush3.bf16.msra.mxu0 %v4622_v49  ;;  %5888 = vmatpush3.bf16.msra.mxu1 %v4622_v49 }
 0x360   : >> { %5372 = vmatprep.subr.bf16.mxu0 %v6429_v5  ;;  %5881 = vmatprep.subr.bf16.mxu1 %v6429_v5 }
 0x363   : >> { %5373 = vmatpush3.bf16.msra.mxu0 %v1267_v58  ;;  %5889 = vmatpush3.bf16.msra.mxu1 %v1267_v58  ;;  %v1365_v58 = vld [vmem:[%s7254_s29 + $0x28] sm:$0xff] }
 0x366   : >> { %5375 = vmatmul.mubr.msk.bf16.vlgmr.msra.gmra.mrb[0].mxu0 %vm380_vm2, %v1185_v59  ;;  %5391 = vmatmul.mubr.msk.bf16.vlgmr.msra.gmra.mrb[0].mxu1 %vm380_vm2, %v1193_v60  ;;  %v1373_v60 = vld [vmem:[%s7254_s29 + $0x68] sm:$0x1] }
 0x367   : >> { %5378 = vmatprep.mubr.msk.bf16.mxu0 %vm6430_vm8, %v6429_v5  ;;  %5394 = vmatprep.mubr.msk.bf16.mxu1 %vm6430_vm8, %v6429_v5 }
 0x36e   : >> { %5379 = vmatmul.mubr.msk.bf16.gmra.mrb[4].mxu0 %vm380_vm2, %v1187_v17  ;;  %5395 = vmatmul.mubr.msk.bf16.gmra.mrb[4].mxu1 %vm380_vm2, %v1195_v18 }
 0x36f   : >> { %5382 = vmatprep.mubr.msk.bf16.mxu0 %vm6430_vm8, %v6429_v5  ;;  %5398 = vmatprep.mubr.msk.bf16.mxu1 %vm6430_vm8, %v6429_v5 }
 0x376   : >> { %5383 = vmatmul.mubr.msk.bf16.gmra.mrb[8].mxu0 %vm380_vm2, %v1189_v21  ;;  %5399 = vmatmul.mubr.msk.bf16.gmra.mrb[8].mxu1 %vm380_vm2, %v1194_v15 }
 0x377   : >> { %5386 = vmatprep.mubr.msk.bf16.mxu0 %vm6430_vm8, %v6429_v5  ;;  %v1363_v5 = vld [vmem:[%s7254_s29 + $0x18] sm:$0xff] }
 0x37e   : >> { %5387 = vmatmul.mubr.msk.bf16.gmra.mrb[12].mxu0 %vm380_vm2, %v1191_v22 }
 0x439   : >> { %v1303_v25 = vpop.f32.mrb[0].mxu0  ;;  %v1335_v27 = vpop.f32.mrb[0].mxu1 }
 0x43a   : >> { %v1374_v29 = vadd.f32 %v1360_v23, %v1303_v25  ;;  %v5376_v30 = vpop.f32.mrb[1].mxu0  ;;  %v1382_v31 = vadd.f32 %v1368_v24, %v1335_v27  ;;  %v5392_v32 = vpop.f32.mrb[1].mxu1  ;;  %v1366_v23 = vld [vmem:[%s7254_s29 + $0x30] sm:$0xff]  ;;  %v1367_v25 = vld [vmem:[%s7254_s29 + $0x38] sm:$0xff] }
 0x43b   : >> { %v1306_v33 = vpop.f32.mrb[2].mxu0  ;;  %v1338_v34 = vpop.f32.mrb[2].mxu1  ;;  %v7309_v32 = vld [vmem:[%s9229_s1 + $0x104] sm:$0xf] (%p1126_p7) }
 0x43c   : >> { %1389 = vst.msk [vmem:[%s7254_s29] sm:$0xff] %vm497_vm3, %v1374_v29  ;;  %v1375_v35 = vadd.f32 %v1361_v26, %v1306_v33  ;;  %v5377_v36 = vpop.f32.mrb[3].mxu0  ;;  %1397 = vst.msk [vmem:[%s7254_s29 + $0x40] sm:$0xff] %vm497_vm3, %v1382_v31  ;;  %v1383_v37 = vadd.f32 %v1369_v28, %v1338_v34  ;;  %v5393_v38 = vpop.f32.mrb[3].mxu1  ;;  %v7304_v31 = vld [vmem:[%s9229_s1 + $0x100] sm:$0xf] (%p1126_p7) }
 0x43d   : > { %v7314_v33 = vld [vmem:[%s9229_s1 + $0x108] sm:$0xf] (%p1126_p7)  ;;  %v7319_v34 = vld [vmem:[%s9229_s1 + $0x10c] sm:$0xf] (%p1126_p7) }
 0x43e   : >> { %1390 = vst.msk [vmem:[%s7254_s29 + $0x8] sm:$0xff] %vm497_vm3, %v1375_v35  ;;  %1398 = vst.msk [vmem:[%s7254_s29 + $0x48] sm:$0xff] %vm497_vm3, %v1383_v37 }
 0x441   : >> { %v1311_v4 = vpop.f32.mrb[4].mxu0  ;;  %v1343_v6 = vpop.f32.mrb[4].mxu1 }
 0x442   : >> { %v1376_v45 = vadd.f32 %v1362_v39, %v1311_v4  ;;  %v5380_v46 = vpop.f32.mrb[5].mxu0  ;;  %v1384_v47 = vadd.f32 %v1370_v40, %v1343_v6  ;;  %v5396_v48 = vpop.f32.mrb[5].mxu1 }
 0x443   : >> { %v1314_v49 = vpop.f32.mrb[6].mxu0  ;;  %v1346_v50 = vpop.f32.mrb[6].mxu1 }
 0x444   : >> { %1391 = vst.msk [vmem:[%s7254_s29 + $0x10] sm:$0xff] %vm497_vm3, %v1376_v45  ;;  %v1377_v8 = vadd.f32 %v1363_v5, %v1314_v49  ;;  %v5381_v9 = vpop.f32.mrb[7].mxu0  ;;  %1399 = vst.msk [vmem:[%s7254_s29 + $0x50] sm:$0xff] %vm497_vm3, %v1384_v47  ;;  %v1385_v10 = vadd.f32 %v1371_v7, %v1346_v50  ;;  %v5397_v11 = vpop.f32.mrb[7].mxu1 }
 0x446   : >> { %1392 = vst.msk [vmem:[%s7254_s29 + $0x18] sm:$0xff] %vm497_vm3, %v1377_v8  ;;  %1400 = vst.msk [vmem:[%s7254_s29 + $0x58] sm:$0xff] %vm497_vm3, %v1385_v10 }
 0x449   : >> { %v1319_v57 = vpop.f32.mrb[8].mxu0  ;;  %v1351_v59 = vpop.f32.mrb[8].mxu1 }
 0x44a   : >> { %v1378_v12 = vadd.f32 %v1364_v55, %v1319_v57  ;;  %v5384_v13 = vpop.f32.mrb[9].mxu0  ;;  %v1386_v14 = vadd.f32 %v1372_v56, %v1351_v59  ;;  %v5400_v15 = vpop.f32.mrb[9].mxu1 }
 0x44b   : >> { %v1322_v17 = vpop.f32.mrb[10].mxu0  ;;  %v1354_v18 = vpop.f32.mrb[10].mxu1 }
 0x44c   : >> { %1393 = vst.msk [vmem:[%s7254_s29 + $0x20] sm:$0xff] %vm497_vm3, %v1378_v12  ;;  %v1379_v19 = vadd.f32 %v1365_v58, %v1322_v17  ;;  %v5385_v20 = vpop.f32.mrb[11].mxu0  ;;  %1401 = vst.msk [vmem:[%s7254_s29 + $0x60] sm:$0xff] %vm497_vm3, %v1386_v14  ;;  %v1387_v21 = vadd.f32 %v1373_v60, %v1354_v18  ;;  %v5401_v22 = vpop.f32.mrb[11].mxu1 }
 0x44e   : >> { %1394 = vst.msk [vmem:[%s7254_s29 + $0x28] sm:$0xff] %vm497_vm3, %v1379_v19 }
 0x44f   : >> { %1403 = vst.msk [vmem:[%s7254_s29 + $0x68] sm:$0x1] %vm511_vm4, %v1387_v21 }
 0x450   : > { %1128 = sbr.rel (!%p1126_p7) target bundleno = 837 (0x345), region = 245 }
 0x451   : >> { %v1327_v24 = vpop.f32.mrb[12].mxu0 }
 0x452   : >> { %v1380_v26 = vadd.f32 %v1366_v23, %v1327_v24  ;;  %v5388_v27 = vpop.f32.mrb[13].mxu0 }
 0x453   : >> { %v1330_v28 = vpop.f32.mrb[14].mxu0 }
 0x454   : >> { %1395 = vst.msk [vmem:[%s7254_s29 + $0x30] sm:$0xff] %vm497_vm3, %v1380_v26  ;;  %v1381_v29 = vadd.f32 %v1367_v25, %v1330_v28  ;;  %v5389_v30 = vpop.f32.mrb[15].mxu0 }
 0x456   : >> { %1396 = vst.msk [vmem:[%s7254_s29 + $0x38] sm:$0xff] %vm497_vm3, %v1381_v29 }
 0x457 LB: >> { %v4655_v0 = vcombine.low %v7304_v31, %v7309_v32  ;;  %v6431_v1 = vmov 0.0   ;;  %v4656_v2 = vcombine.low %v7314_v33, %v7319_v34  ;;  %s5010_s19 = smul.u32 68, %s6385_s18  ;;  %vm6432_vm10 = vmmov 0   ;;  %s6385_s18 = sphi %s7381_s18, %s1426_s18  }
 0x458   : >> { %5402 = vmatprep.subr.bf16.mxu0 %v6431_v1  ;;  %5890 = vmatprep.subr.bf16.mxu1 %v6431_v1  ;;  %v4657_v3 = vcombine.low %v7324_v41, %v7329_v42  ;;  %v4658_v35 = vcombine.low %v7334_v43, %v7339_v44  ;;  %v4659_v36 = vcombine.low %v7344_v51, %v7349_v52  ;;  %s1641_s22 = smul.u32 112, %s6385_s18  ;;  %s1426_s18 = sadd.s32 1, %s6385_s18  }
 0x459   : >> { %5403 = vmatpush3.bf16.msra.mxu0 %v4655_v0  ;;  %5898 = vmatpush3.bf16.msra.mxu1 %v4655_v0  ;;  %s7393_s20 = scalar_lea.vmem %s6583_s16, %s5010_s19  ;;  %v4660_v37 = vcombine.low %v7354_v53, %v7359_v54  ;;  %v4661_v38 = vcombine.low %v7364_v61, %v7369_v62  ;;  %v4662_v39 = vcombine.low %v7374_v63, %v7379_v16  ;;  %p1423_p8 = scmp.ge.s32.totalorder %s1426_s18, 2  }
 0x45a   : >> { %5404 = vmatprep.subr.bf16.mxu0 %v6431_v1  ;;  %5891 = vmatprep.subr.bf16.mxu1 %v6431_v1  ;;  %v6212_v4 = vld [vmem:[%s7393_s20 + $0x4] sm:$0xff]   ;;  %v6214_v6 = vld [vmem:[%s7393_s20 + $0xc] sm:$0xff]   ;;  %v6216_v45 = vld [vmem:[%s7393_s20 + $0x14] sm:$0xff]   ;;  %s7429_s24 = scalar_lea.vmem [#allocation2], %s1641_s22  ;;  %s7556_s23 = smov (%p1423_p8), 0  }
 0x45b   : >> { %5418 = vmatprep.mubr.msk.bf16.mxu0 %vm6432_vm10, %v6431_v1  ;;  %5434 = vmatprep.mubr.msk.bf16.mxu1 %vm6432_vm10, %v6431_v1  ;;  %v1550_v40 = vsel %vm402_vm1, %v4662_v39, 0  ;;  %v6213_v5 = vld [vmem:[%s7393_s20 + $0x24] sm:$0xff]   ;;  %v6215_v7 = vld [vmem:[%s7393_s20 + $0x2c] sm:$0xff]   ;;  %v6217_v46 = vld [vmem:[%s7393_s20 + $0x34] sm:$0x1f]  }
 0x45c   : >> { %v6218_v47 = vld [vmem:[%s7393_s20 + $0x1c] sm:$0xff]   ;;  %v7499_v31 = vld [vmem:[%s9229_s1 + $0x150] sm:$0xf] (%p1423_p8)  ;;  %v7504_v32 = vld [vmem:[%s9229_s1 + $0x154] sm:$0xf] (%p1423_p8) }
 0x45d   : >> { %5405 = vmatpush3.bf16.msra.mxu0 %v4656_v2  ;;  %5899 = vmatpush3.bf16.msra.mxu1 %v4656_v2  ;;  %v1643_v48 = vld [vmem:[%s7429_s24] sm:$0xff]  ;;  %v1644_v8 = vld [vmem:[%s7429_s24 + $0x8] sm:$0xff]  ;;  %v1645_v15 = vld [vmem:[%s7429_s24 + $0x10] sm:$0xff] }
 0x45e   : >> { %5406 = vmatprep.subr.bf16.mxu0 %v6431_v1  ;;  %5892 = vmatprep.subr.bf16.mxu1 %v6431_v1  ;;  %v1651_v49 = vld [vmem:[%s7429_s24 + $0x40] sm:$0xff]  ;;  %v1652_v10 = vld [vmem:[%s7429_s24 + $0x48] sm:$0xff]  ;;  %v1653_v17 = vld [vmem:[%s7429_s24 + $0x50] sm:$0xff] }
 0x45f   : >> { %v1646_v19 = vld [vmem:[%s7429_s24 + $0x18] sm:$0xff]  ;;  %v1655_v2 = vld [vmem:[%s7429_s24 + $0x60] sm:$0xff]  ;;  %v7529_v43 = vld [vmem:[%s9229_s1 + $0x168] sm:$0xf] (%p1423_p8) }
 0x460   : >> { %v1654_v21 = vld [vmem:[%s7429_s24 + $0x58] sm:$0xff]  ;;  %v7519_v41 = vld [vmem:[%s9229_s1 + $0x160] sm:$0xf] (%p1423_p8)  ;;  %v7524_v42 = vld [vmem:[%s9229_s1 + $0x164] sm:$0xf] (%p1423_p8) }
 0x461   : >> { %5407 = vmatpush3.bf16.msra.mxu0 %v4657_v3  ;;  %5900 = vmatpush3.bf16.msra.mxu1 %v4657_v3  ;;  %v7509_v33 = vld [vmem:[%s9229_s1 + $0x158] sm:$0xf] (%p1423_p8)  ;;  %v7514_v34 = vld [vmem:[%s9229_s1 + $0x15c] sm:$0xf] (%p1423_p8)  ;;  %v7534_v44 = vld [vmem:[%s9229_s1 + $0x16c] sm:$0xf] (%p1423_p8) }
 0x462   : >> { %5408 = vmatprep.subr.bf16.mxu0 %v6431_v1  ;;  %5893 = vmatprep.subr.bf16.mxu1 %v6431_v1  ;;  %v7539_v51 = vld [vmem:[%s9229_s1 + $0x170] sm:$0xf] (%p1423_p8)  ;;  %v7544_v52 = vld [vmem:[%s9229_s1 + $0x174] sm:$0xf] (%p1423_p8)  ;;  %v7549_v53 = vld [vmem:[%s9229_s1 + $0x178] sm:$0xf] (%p1423_p8) }
 0x463   : > { %v7554_v54 = vld [vmem:[%s9229_s1 + $0x17c] sm:$0x3] (%p1423_p8) }
 0x465   : >> { %5409 = vmatpush3.bf16.msra.mxu0 %v4658_v35  ;;  %5901 = vmatpush3.bf16.msra.mxu1 %v4658_v35  ;;  %v1648_v35 = vld [vmem:[%s7429_s24 + $0x28] sm:$0xff] }
 0x466   : >> { %5410 = vmatprep.subr.bf16.mxu0 %v6431_v1  ;;  %5894 = vmatprep.subr.bf16.mxu1 %v6431_v1 }
 0x469   : >> { %5411 = vmatpush3.bf16.msra.mxu0 %v4659_v36  ;;  %5902 = vmatpush3.bf16.msra.mxu1 %v4659_v36 }
 0x46a   : >> { %5412 = vmatprep.subr.bf16.mxu0 %v6431_v1  ;;  %5895 = vmatprep.subr.bf16.mxu1 %v6431_v1 }
 0x46d   : >> { %5413 = vmatpush3.bf16.msra.mxu0 %v4660_v37  ;;  %5903 = vmatpush3.bf16.msra.mxu1 %v4660_v37  ;;  %v1656_v37 = vld [vmem:[%s7429_s24 + $0x68] sm:$0x1] }
 0x46e   : >> { %5414 = vmatprep.subr.bf16.mxu0 %v6431_v1  ;;  %5896 = vmatprep.subr.bf16.mxu1 %v6431_v1 }
 0x471   : >> { %5415 = vmatpush3.bf16.msra.mxu0 %v4661_v38  ;;  %5904 = vmatpush3.bf16.msra.mxu1 %v4661_v38 }
 0x472   : >> { %5416 = vmatprep.subr.bf16.mxu0 %v6431_v1  ;;  %5897 = vmatprep.subr.bf16.mxu1 %v6431_v1 }
 0x475   : >> { %5417 = vmatpush3.bf16.msra.mxu0 %v1550_v40  ;;  %5905 = vmatpush3.bf16.msra.mxu1 %v1550_v40 }
 0x478   : >> { %5419 = vmatmul.mubr.msk.bf16.vlgmr.msra.gmra.mrb[0].mxu0 %vm380_vm2, %v6212_v4  ;;  %5435 = vmatmul.mubr.msk.bf16.vlgmr.msra.gmra.mrb[0].mxu1 %vm380_vm2, %v6213_v5 }
 0x479   : >> { %5422 = vmatprep.mubr.msk.bf16.mxu0 %vm6432_vm10, %v6431_v1  ;;  %5438 = vmatprep.mubr.msk.bf16.mxu1 %vm6432_vm10, %v6431_v1 }
 0x480   : >> { %5423 = vmatmul.mubr.msk.bf16.gmra.mrb[4].mxu0 %vm380_vm2, %v6214_v6  ;;  %5439 = vmatmul.mubr.msk.bf16.gmra.mrb[4].mxu1 %vm380_vm2, %v6215_v7 }
 0x481   : >> { %5426 = vmatprep.mubr.msk.bf16.mxu0 %vm6432_vm10, %v6431_v1  ;;  %5442 = vmatprep.mubr.msk.bf16.mxu1 %vm6432_vm10, %v6431_v1 }
 0x488   : >> { %5427 = vmatmul.mubr.msk.bf16.gmra.mrb[8].mxu0 %vm380_vm2, %v6216_v45  ;;  %5443 = vmatmul.mubr.msk.bf16.gmra.mrb[8].mxu1 %vm380_vm2, %v6217_v46 }
 0x489   : >> { %5430 = vmatprep.mubr.msk.bf16.mxu0 %vm6432_vm10, %v6431_v1  ;;  %v1647_v1 = vld [vmem:[%s7429_s24 + $0x20] sm:$0xff] }
 0x490   : >> { %5431 = vmatmul.mubr.msk.bf16.gmra.mrb[12].mxu0 %vm380_vm2, %v6218_v47 }
 0x54b   : >> { %v1586_v50 = vpop.f32.mrb[0].mxu0  ;;  %v1618_v9 = vpop.f32.mrb[0].mxu1 }
 0x54c   : >> { %v1657_v11 = vadd.f32 %v1643_v48, %v1586_v50  ;;  %v5420_v55 = vpop.f32.mrb[1].mxu0  ;;  %v1665_v56 = vadd.f32 %v1651_v49, %v1618_v9  ;;  %v5436_v57 = vpop.f32.mrb[1].mxu1  ;;  %v1649_v48 = vld [vmem:[%s7429_s24 + $0x30] sm:$0xff]  ;;  %v1650_v50 = vld [vmem:[%s7429_s24 + $0x38] sm:$0xff] }
 0x54d   : >> { %v1589_v58 = vpop.f32.mrb[2].mxu0  ;;  %v1621_v59 = vpop.f32.mrb[2].mxu1  ;;  %v7484_v57 = vld [vmem:[%s9229_s1 + $0x144] sm:$0xf] (%p1423_p8) }
 0x54e   : >> { %1672 = vst.msk [vmem:[%s7429_s24] sm:$0xff] %vm497_vm3, %v1657_v11  ;;  %v1658_v60 = vadd.f32 %v1644_v8, %v1589_v58  ;;  %v5421_v12 = vpop.f32.mrb[3].mxu0  ;;  %1680 = vst.msk [vmem:[%s7429_s24 + $0x40] sm:$0xff] %vm497_vm3, %v1665_v56  ;;  %v1666_v13 = vadd.f32 %v1652_v10, %v1621_v59  ;;  %v5437_v14 = vpop.f32.mrb[3].mxu1  ;;  %v7479_v56 = vld [vmem:[%s9229_s1 + $0x140] sm:$0xf] (%p1423_p8) }
 0x54f   : > { %v7489_v58 = vld [vmem:[%s9229_s1 + $0x148] sm:$0xf] (%p1423_p8)  ;;  %v7494_v59 = vld [vmem:[%s9229_s1 + $0x14c] sm:$0xf] (%p1423_p8) }
 0x550   : >> { %1673 = vst.msk [vmem:[%s7429_s24 + $0x8] sm:$0xff] %vm497_vm3, %v1658_v60  ;;  %1681 = vst.msk [vmem:[%s7429_s24 + $0x48] sm:$0xff] %vm497_vm3, %v1666_v13 }
 0x553   : >> { %v1594_v18 = vpop.f32.mrb[4].mxu0  ;;  %v1626_v20 = vpop.f32.mrb[4].mxu1 }
 0x554   : >> { %v1659_v22 = vadd.f32 %v1645_v15, %v1594_v18  ;;  %v5424_v23 = vpop.f32.mrb[5].mxu0  ;;  %v1667_v24 = vadd.f32 %v1653_v17, %v1626_v20  ;;  %v5440_v25 = vpop.f32.mrb[5].mxu1 }
 0x555   : >> { %v1597_v26 = vpop.f32.mrb[6].mxu0  ;;  %v1629_v27 = vpop.f32.mrb[6].mxu1 }
 0x556   : >> { %1674 = vst.msk [vmem:[%s7429_s24 + $0x10] sm:$0xff] %vm497_vm3, %v1659_v22  ;;  %v1660_v28 = vadd.f32 %v1646_v19, %v1597_v26  ;;  %v5425_v29 = vpop.f32.mrb[7].mxu0  ;;  %1682 = vst.msk [vmem:[%s7429_s24 + $0x50] sm:$0xff] %vm497_vm3, %v1667_v24  ;;  %v1668_v30 = vadd.f32 %v1654_v21, %v1629_v27  ;;  %v5441_v0 = vpop.f32.mrb[7].mxu1 }
 0x558   : >> { %1675 = vst.msk [vmem:[%s7429_s24 + $0x18] sm:$0xff] %vm497_vm3, %v1660_v28  ;;  %1683 = vst.msk [vmem:[%s7429_s24 + $0x58] sm:$0xff] %vm497_vm3, %v1668_v30 }
 0x55b   : >> { %v1602_v3 = vpop.f32.mrb[8].mxu0  ;;  %v1634_v36 = vpop.f32.mrb[8].mxu1 }
 0x55c   : >> { %v1661_v38 = vadd.f32 %v1647_v1, %v1602_v3  ;;  %v5428_v39 = vpop.f32.mrb[9].mxu0  ;;  %v1669_v40 = vadd.f32 %v1655_v2, %v1634_v36  ;;  %v5444_v4 = vpop.f32.mrb[9].mxu1 }
 0x55d   : >> { %v1605_v5 = vpop.f32.mrb[10].mxu0  ;;  %v1637_v6 = vpop.f32.mrb[10].mxu1 }
 0x55e   : >> { %1676 = vst.msk [vmem:[%s7429_s24 + $0x20] sm:$0xff] %vm497_vm3, %v1661_v38  ;;  %v1662_v7 = vadd.f32 %v1648_v35, %v1605_v5  ;;  %v5429_v45 = vpop.f32.mrb[11].mxu0  ;;  %1684 = vst.msk [vmem:[%s7429_s24 + $0x60] sm:$0xff] %vm497_vm3, %v1669_v40  ;;  %v1670_v46 = vadd.f32 %v1656_v37, %v1637_v6  ;;  %v5445_v47 = vpop.f32.mrb[11].mxu1 }
 0x560   : >> { %1677 = vst.msk [vmem:[%s7429_s24 + $0x28] sm:$0xff] %vm497_vm3, %v1662_v7 }
 0x561   : >> { %1686 = vst.msk [vmem:[%s7429_s24 + $0x68] sm:$0x1] %vm511_vm4, %v1670_v46 }
 0x562   : > { %1425 = sbr.rel (!%p1423_p8) target bundleno = 1111 (0x457), region = 256 }
 0x563   : >> { %v1610_v49 = vpop.f32.mrb[12].mxu0 }
 0x564   : >> { %v1663_v8 = vadd.f32 %v1649_v48, %v1610_v49  ;;  %v5432_v9 = vpop.f32.mrb[13].mxu0 }
 0x565   : >> { %v1613_v10 = vpop.f32.mrb[14].mxu0 }
 0x566   : >> { %1678 = vst.msk [vmem:[%s7429_s24 + $0x30] sm:$0xff] %vm497_vm3, %v1663_v8  ;;  %v1664_v11 = vadd.f32 %v1650_v50, %v1613_v10  ;;  %v5433_v55 = vpop.f32.mrb[15].mxu0 }
 0x568   : >> { %1679 = vst.msk [vmem:[%s7429_s24 + $0x38] sm:$0xff] %vm497_vm3, %v1664_v11 }
 0x569 LB: >> { %v4694_v61 = vcombine.low %v7479_v56, %v7484_v57  ;;  %v6433_v62 = vmov 0.0   ;;  %v4695_v63 = vcombine.low %v7489_v58, %v7494_v59  ;;  %s5011_s13 = smul.u32 68, %s6389_s23  ;;  %vm6434_vm11 = vmmov 0   ;;  %s6389_s23 = sphi %s7556_s23, %s1709_s23  }
 0x56a   : >> { %5446 = vmatprep.subr.bf16.mxu0 %v6433_v62  ;;  %5906 = vmatprep.subr.bf16.mxu1 %v6433_v62  ;;  %v4696_v16 = vcombine.low %v7499_v31, %v7504_v32  ;;  %v4697_v60 = vcombine.low %v7509_v33, %v7514_v34  ;;  %v4698_v12 = vcombine.low %v7519_v41, %v7524_v42  ;;  %s1938_s15 = smul.u32 112, %s6389_s23  ;;  %s1709_s23 = sadd.s32 1, %s6389_s23  }
 0x56b   : >> { %5447 = vmatpush3.bf16.msra.mxu0 %v4694_v61  ;;  %5914 = vmatpush3.bf16.msra.mxu1 %v4694_v61  ;;  %s7573_s14 = scalar_lea.vmem %s6583_s16, %s5011_s13  ;;  %v4699_v13 = vcombine.low %v7529_v43, %v7534_v44  ;;  %v4700_v15 = vcombine.low %v7539_v51, %v7544_v52  ;;  %v4701_v20 = vcombine.low %v7549_v53, %v7554_v54  ;;  %p1706_p9 = scmp.ge.s32.totalorder %s1709_s23, 2  }
 0x56c   : >> { %5448 = vmatprep.subr.bf16.mxu0 %v6433_v62  ;;  %5907 = vmatprep.subr.bf16.mxu1 %v6433_v62  ;;  %v6219_v14 = vld [vmem:[%s7573_s14 + $0x4] sm:$0xfe]   ;;  %v6220_v17 = vld [vmem:[%s7573_s14 + $0xc] sm:$0xff]   ;;  %v6223_v28 = vld [vmem:[%s7573_s14 + $0x14] sm:$0xff]   ;;  %s7633_s17 = scalar_lea.vmem [#allocation2], %s1938_s15  ;;  %s7760_s7 = smov (%p1706_p9), 0  }
 0x56d   : >> { %5462 = vmatprep.mubr.msk.bf16.mxu0 %vm6434_vm11, %v6433_v62  ;;  %5478 = vmatprep.mubr.msk.bf16.mxu1 %vm6434_vm11, %v6433_v62  ;;  %v6221_v18 = vld [vmem:[%s7573_s14 + $0x24] sm:$0xff]   ;;  %v6222_v19 = vld [vmem:[%s7573_s14 + $0x2c] sm:$0xff]   ;;  %v1763_v21 = vrot.slane %v6219_v14, 1  ;;  %v1764_v22 = vrot.slane %v6220_v17, 1  ;;  %v1847_v25 = vsel %vm402_vm1, %v4701_v20, 0  ;;  %v1766_v30 = vrot.slane %v6223_v28, 1 }
 0x56e   : >> { %v1770_v23 = vrot.slane %v6221_v18, 1  ;;  %v1772_v24 = vrot.slane %v6222_v19, 1  ;;  %v6224_v29 = vld [vmem:[%s7573_s14 + $0x34] sm:$0x3f]   ;;  %v6225_v3 = vld [vmem:[%s7573_s14 + $0x1c] sm:$0xff]  }
 0x56f   : >> { %5449 = vmatpush3.bf16.msra.mxu0 %v4695_v63  ;;  %5915 = vmatpush3.bf16.msra.mxu1 %v4695_v63  ;;  %v1765_v26 = vsel %vm588_vm6, %v1763_v21, %v1764_v22  ;;  %v1774_v0 = vrot.slane %v6224_v29, 1  ;;  %v1767_v1 = vsel %vm588_vm6, %v1764_v22, %v1766_v30  ;;  %v1768_v35 = vrot.slane %v6225_v3, 1  ;;  %v1940_v38 = vld [vmem:[%s7633_s17] sm:$0xff]  ;;  %v1941_v4 = vld [vmem:[%s7633_s17 + $0x8] sm:$0xff]  ;;  %v1942_v11 = vld [vmem:[%s7633_s17 + $0x10] sm:$0xff] }
 0x570   : >> { %5450 = vmatprep.subr.bf16.mxu0 %v6433_v62  ;;  %5908 = vmatprep.subr.bf16.mxu1 %v6433_v62  ;;  %v1773_v27 = vsel %vm588_vm6, %v1770_v23, %v1772_v24  ;;  %v1948_v39 = vld [vmem:[%s7633_s17 + $0x40] sm:$0xff]  ;;  %v1949_v6 = vld [vmem:[%s7633_s17 + $0x48] sm:$0xff]  ;;  %v1950_v55 = vld [vmem:[%s7633_s17 + $0x50] sm:$0xff] }
 0x571   : >> { %v1775_v2 = vsel %vm588_vm6, %v1772_v24, %v1774_v0  ;;  %v1769_v36 = vsel %vm588_vm6, %v1766_v30, %v1768_v35  ;;  %v1771_v37 = vsel %vm588_vm6, %v1768_v35, %v1770_v23  ;;  %v1944_v22 = vld [vmem:[%s7633_s17 + $0x20] sm:$0xff]  ;;  %v7703_v56 = vld [vmem:[%s9229_s1 + $0x190] sm:$0xf] (%p1706_p9)  ;;  %v7708_v57 = vld [vmem:[%s9229_s1 + $0x194] sm:$0xf] (%p1706_p9) }
 0x572   : >> { %v1952_v23 = vld [vmem:[%s7633_s17 + $0x60] sm:$0xff]  ;;  %v7713_v58 = vld [vmem:[%s9229_s1 + $0x198] sm:$0xf] (%p1706_p9)  ;;  %v7718_v59 = vld [vmem:[%s9229_s1 + $0x19c] sm:$0xf] (%p1706_p9) }
 0x573   : >> { %5451 = vmatpush3.bf16.msra.mxu0 %v4696_v16  ;;  %5916 = vmatpush3.bf16.msra.mxu1 %v4696_v16  ;;  %v1951_v16 = vld [vmem:[%s7633_s17 + $0x58] sm:$0xff]  ;;  %v7723_v31 = vld [vmem:[%s9229_s1 + $0x1a0] sm:$0xf] (%p1706_p9)  ;;  %v7728_v32 = vld [vmem:[%s9229_s1 + $0x1a4] sm:$0xf] (%p1706_p9) }
 0x574   : >> { %5452 = vmatprep.subr.bf16.mxu0 %v6433_v62  ;;  %5909 = vmatprep.subr.bf16.mxu1 %v6433_v62  ;;  %v7733_v33 = vld [vmem:[%s9229_s1 + $0x1a8] sm:$0xf] (%p1706_p9)  ;;  %v7738_v34 = vld [vmem:[%s9229_s1 + $0x1ac] sm:$0xf] (%p1706_p9)  ;;  %v7743_v41 = vld [vmem:[%s9229_s1 + $0x1b0] sm:$0xf] (%p1706_p9) }
 0x575   : > { %v7748_v42 = vld [vmem:[%s9229_s1 + $0x1b4] sm:$0xf] (%p1706_p9)  ;;  %v7753_v43 = vld [vmem:[%s9229_s1 + $0x1b8] sm:$0xf] (%p1706_p9)  ;;  %v7758_v44 = vld [vmem:[%s9229_s1 + $0x1bc] sm:$0x3] (%p1706_p9) }
 0x577   : >> { %5453 = vmatpush3.bf16.msra.mxu0 %v4697_v60  ;;  %5917 = vmatpush3.bf16.msra.mxu1 %v4697_v60 }
 0x578   : >> { %5454 = vmatprep.subr.bf16.mxu0 %v6433_v62  ;;  %5910 = vmatprep.subr.bf16.mxu1 %v6433_v62 }
 0x57b   : >> { %5455 = vmatpush3.bf16.msra.mxu0 %v4698_v12  ;;  %5918 = vmatpush3.bf16.msra.mxu1 %v4698_v12 }
 0x57c   : >> { %5456 = vmatprep.subr.bf16.mxu0 %v6433_v62  ;;  %5911 = vmatprep.subr.bf16.mxu1 %v6433_v62 }
 0x57f   : >> { %5457 = vmatpush3.bf16.msra.mxu0 %v4699_v13  ;;  %5919 = vmatpush3.bf16.msra.mxu1 %v4699_v13 }
 0x580   : >> { %5458 = vmatprep.subr.bf16.mxu0 %v6433_v62  ;;  %5912 = vmatprep.subr.bf16.mxu1 %v6433_v62 }
 0x583   : >> { %5459 = vmatpush3.bf16.msra.mxu0 %v4700_v15  ;;  %5920 = vmatpush3.bf16.msra.mxu1 %v4700_v15 }
 0x584   : >> { %5460 = vmatprep.subr.bf16.mxu0 %v6433_v62  ;;  %5913 = vmatprep.subr.bf16.mxu1 %v6433_v62 }
 0x587   : >> { %5461 = vmatpush3.bf16.msra.mxu0 %v1847_v25  ;;  %5921 = vmatpush3.bf16.msra.mxu1 %v1847_v25  ;;  %v1945_v25 = vld [vmem:[%s7633_s17 + $0x28] sm:$0xff] }
 0x58a   : >> { %5463 = vmatmul.mubr.msk.bf16.vlgmr.msra.gmra.mrb[0].mxu0 %vm380_vm2, %v1765_v26  ;;  %5479 = vmatmul.mubr.msk.bf16.vlgmr.msra.gmra.mrb[0].mxu1 %vm380_vm2, %v1773_v27  ;;  %v1953_v27 = vld [vmem:[%s7633_s17 + $0x68] sm:$0x1] }
 0x58b   : >> { %5466 = vmatprep.mubr.msk.bf16.mxu0 %vm6434_vm11, %v6433_v62  ;;  %5482 = vmatprep.mubr.msk.bf16.mxu1 %vm6434_vm11, %v6433_v62 }
 0x592   : >> { %5467 = vmatmul.mubr.msk.bf16.gmra.mrb[4].mxu0 %vm380_vm2, %v1767_v1  ;;  %5483 = vmatmul.mubr.msk.bf16.gmra.mrb[4].mxu1 %vm380_vm2, %v1775_v2 }
 0x593   : >> { %5470 = vmatprep.mubr.msk.bf16.mxu0 %vm6434_vm11, %v6433_v62  ;;  %5486 = vmatprep.mubr.msk.bf16.mxu1 %vm6434_vm11, %v6433_v62 }
 0x59a   : >> { %5471 = vmatmul.mubr.msk.bf16.gmra.mrb[8].mxu0 %vm380_vm2, %v1769_v36  ;;  %5487 = vmatmul.mubr.msk.bf16.gmra.mrb[8].mxu1 %vm380_vm2, %v1774_v0 }
 0x59b   : >> { %5474 = vmatprep.mubr.msk.bf16.mxu0 %vm6434_vm11, %v6433_v62  ;;  %v1943_v62 = vld [vmem:[%s7633_s17 + $0x18] sm:$0xff] }
 0x5a2   : >> { %5475 = vmatmul.mubr.msk.bf16.gmra.mrb[12].mxu0 %vm380_vm2, %v1771_v37 }
 0x65d   : >> { %v1883_v40 = vpop.f32.mrb[0].mxu0  ;;  %v1915_v5 = vpop.f32.mrb[0].mxu1 }
 0x65e   : >> { %v1954_v7 = vadd.f32 %v1940_v38, %v1883_v40  ;;  %v5464_v45 = vpop.f32.mrb[1].mxu0  ;;  %v1962_v46 = vadd.f32 %v1948_v39, %v1915_v5  ;;  %v5480_v47 = vpop.f32.mrb[1].mxu1  ;;  %v1946_v38 = vld [vmem:[%s7633_s17 + $0x30] sm:$0xff]  ;;  %v1947_v40 = vld [vmem:[%s7633_s17 + $0x38] sm:$0xff] }
 0x65f   : >> { %v1886_v48 = vpop.f32.mrb[2].mxu0  ;;  %v1918_v49 = vpop.f32.mrb[2].mxu1  ;;  %v7688_v47 = vld [vmem:[%s9229_s1 + $0x184] sm:$0xf] (%p1706_p9) }
 0x660   : >> { %1969 = vst.msk [vmem:[%s7633_s17] sm:$0xff] %vm497_vm3, %v1954_v7  ;;  %v1955_v50 = vadd.f32 %v1941_v4, %v1886_v48  ;;  %v5465_v8 = vpop.f32.mrb[3].mxu0  ;;  %1977 = vst.msk [vmem:[%s7633_s17 + $0x40] sm:$0xff] %vm497_vm3, %v1962_v46  ;;  %v1963_v9 = vadd.f32 %v1949_v6, %v1918_v49  ;;  %v5481_v10 = vpop.f32.mrb[3].mxu1  ;;  %v7683_v46 = vld [vmem:[%s9229_s1 + $0x180] sm:$0xf] (%p1706_p9) }
 0x661   : > { %v7693_v48 = vld [vmem:[%s9229_s1 + $0x188] sm:$0xf] (%p1706_p9)  ;;  %v7698_v49 = vld [vmem:[%s9229_s1 + $0x18c] sm:$0xf] (%p1706_p9) }
 0x662   : >> { %1970 = vst.msk [vmem:[%s7633_s17 + $0x8] sm:$0xff] %vm497_vm3, %v1955_v50  ;;  %1978 = vst.msk [vmem:[%s7633_s17 + $0x48] sm:$0xff] %vm497_vm3, %v1963_v9 }
 0x665   : >> { %v1891_v61 = vpop.f32.mrb[4].mxu0  ;;  %v1923_v63 = vpop.f32.mrb[4].mxu1 }
 0x666   : >> { %v1956_v60 = vadd.f32 %v1942_v11, %v1891_v61  ;;  %v5468_v12 = vpop.f32.mrb[5].mxu0  ;;  %v1964_v13 = vadd.f32 %v1950_v55, %v1923_v63  ;;  %v5484_v14 = vpop.f32.mrb[5].mxu1 }
 0x667   : >> { %v1894_v15 = vpop.f32.mrb[6].mxu0  ;;  %v1926_v17 = vpop.f32.mrb[6].mxu1 }
 0x668   : >> { %1971 = vst.msk [vmem:[%s7633_s17 + $0x10] sm:$0xff] %vm497_vm3, %v1956_v60  ;;  %v1957_v18 = vadd.f32 %v1943_v62, %v1894_v15  ;;  %v5469_v19 = vpop.f32.mrb[7].mxu0  ;;  %1979 = vst.msk [vmem:[%s7633_s17 + $0x50] sm:$0xff] %vm497_vm3, %v1964_v13  ;;  %v1965_v20 = vadd.f32 %v1951_v16, %v1926_v17  ;;  %v5485_v21 = vpop.f32.mrb[7].mxu1 }
 0x66a   : >> { %1972 = vst.msk [vmem:[%s7633_s17 + $0x18] sm:$0xff] %vm497_vm3, %v1957_v18  ;;  %1980 = vst.msk [vmem:[%s7633_s17 + $0x58] sm:$0xff] %vm497_vm3, %v1965_v20 }
 0x66d   : >> { %v1899_v24 = vpop.f32.mrb[8].mxu0  ;;  %v1931_v26 = vpop.f32.mrb[8].mxu1 }
 0x66e   : >> { %v1958_v28 = vadd.f32 %v1944_v22, %v1899_v24  ;;  %v5472_v29 = vpop.f32.mrb[9].mxu0  ;;  %v1966_v30 = vadd.f32 %v1952_v23, %v1931_v26  ;;  %v5488_v0 = vpop.f32.mrb[9].mxu1 }
 0x66f   : >> { %v1902_v1 = vpop.f32.mrb[10].mxu0  ;;  %v1934_v2 = vpop.f32.mrb[10].mxu1 }
 0x670   : >> { %1973 = vst.msk [vmem:[%s7633_s17 + $0x20] sm:$0xff] %vm497_vm3, %v1958_v28  ;;  %v1959_v3 = vadd.f32 %v1945_v25, %v1902_v1  ;;  %v5473_v35 = vpop.f32.mrb[11].mxu0  ;;  %1981 = vst.msk [vmem:[%s7633_s17 + $0x60] sm:$0xff] %vm497_vm3, %v1966_v30  ;;  %v1967_v36 = vadd.f32 %v1953_v27, %v1934_v2  ;;  %v5489_v37 = vpop.f32.mrb[11].mxu1 }
 0x672   : >> { %1974 = vst.msk [vmem:[%s7633_s17 + $0x28] sm:$0xff] %vm497_vm3, %v1959_v3 }
 0x673   : >> { %1983 = vst.msk [vmem:[%s7633_s17 + $0x68] sm:$0x1] %vm511_vm4, %v1967_v36 }
 0x674   : > { %1708 = sbr.rel (!%p1706_p9) target bundleno = 1385 (0x569), region = 267 }
 0x675   : >> { %v1907_v39 = vpop.f32.mrb[12].mxu0 }
 0x676   : >> { %v1960_v4 = vadd.f32 %v1946_v38, %v1907_v39  ;;  %v5476_v5 = vpop.f32.mrb[13].mxu0 }
 0x677   : >> { %v1910_v6 = vpop.f32.mrb[14].mxu0 }
 0x678   : >> { %1975 = vst.msk [vmem:[%s7633_s17 + $0x30] sm:$0xff] %vm497_vm3, %v1960_v4  ;;  %v1961_v7 = vadd.f32 %v1947_v40, %v1910_v6  ;;  %v5477_v45 = vpop.f32.mrb[15].mxu0 }
 0x67a   : >> { %1976 = vst.msk [vmem:[%s7633_s17 + $0x38] sm:$0xff] %vm497_vm3, %v1961_v7 }
 0x67b LB: >> { %v4733_v51 = vcombine.low %v7683_v46, %v7688_v47  ;;  %v6435_v52 = vmov 0.0   ;;  %v4734_v53 = vcombine.low %v7693_v48, %v7698_v49  ;;  %s5012_s8 = smul.u32 68, %s6393_s7  ;;  %vm6436_vm12 = vmmov 0   ;;  %s6393_s7 = sphi %s7760_s7, %s2006_s7  }
 0x67c   : >> { %5490 = vmatprep.subr.bf16.mxu0 %v6435_v52  ;;  %5922 = vmatprep.subr.bf16.mxu1 %v6435_v52  ;;  %v4735_v54 = vcombine.low %v7703_v56, %v7708_v57  ;;  %v4736_v50 = vcombine.low %v7713_v58, %v7718_v59  ;;  %v4737_v8 = vcombine.low %v7723_v31, %v7728_v32  ;;  %s2235_s11 = smul.u32 112, %s6393_s7  ;;  %s2006_s7 = sadd.s32 1, %s6393_s7  }
 0x67d   : >> { %5491 = vmatpush3.bf16.msra.mxu0 %v4733_v51  ;;  %5930 = vmatpush3.bf16.msra.mxu1 %v4733_v51  ;;  %s7777_s9 = scalar_lea.vmem %s6583_s16, %s5012_s8  ;;  %v4738_v9 = vcombine.low %v7733_v33, %v7738_v34  ;;  %v4739_v11 = vcombine.low %v7743_v41, %v7748_v42  ;;  %v4740_v63 = vcombine.low %v7753_v43, %v7758_v44  ;;  %p2003_p10 = scmp.ge.s32.totalorder %s2006_s7, 2  }
 0x67e   : >> { %5492 = vmatprep.subr.bf16.mxu0 %v6435_v52  ;;  %5923 = vmatprep.subr.bf16.mxu1 %v6435_v52  ;;  %v6226_v10 = vld [vmem:[%s7777_s9 + $0x4] sm:$0xfc]   ;;  %v6227_v55 = vld [vmem:[%s7777_s9 + $0xc] sm:$0xff]   ;;  %v6230_v18 = vld [vmem:[%s7777_s9 + $0x14] sm:$0xff]   ;;  %s7837_s12 = scalar_lea.vmem [#allocation2], %s2235_s11  ;;  %s7964_s26 = smov (%p2003_p10), 0  }
 0x67f   : >> { %5506 = vmatprep.mubr.msk.bf16.mxu0 %vm6436_vm12, %v6435_v52  ;;  %5522 = vmatprep.mubr.msk.bf16.mxu1 %vm6436_vm12, %v6435_v52  ;;  %v6228_v61 = vld [vmem:[%s7777_s9 + $0x24] sm:$0xff]   ;;  %v6229_v62 = vld [vmem:[%s7777_s9 + $0x2c] sm:$0xff]   ;;  %v2060_v16 = vrot.slane %v6226_v10, 2  ;;  %v2061_v60 = vrot.slane %v6227_v55, 2  ;;  %v2144_v14 = vsel %vm402_vm1, %v4740_v63, 0  ;;  %v2063_v20 = vrot.slane %v6230_v18, 2 }
 0x680   : >> { %v2067_v12 = vrot.slane %v6228_v61, 2  ;;  %v2069_v13 = vrot.slane %v6229_v62, 2  ;;  %v6231_v19 = vld [vmem:[%s7777_s9 + $0x34] sm:$0x7f]   ;;  %v6232_v24 = vld [vmem:[%s7777_s9 + $0x1c] sm:$0xff]  }
 0x681   : >> { %5493 = vmatpush3.bf16.msra.mxu0 %v4734_v53  ;;  %5931 = vmatpush3.bf16.msra.mxu1 %v4734_v53  ;;  %v2062_v15 = vsel %vm402_vm1, %v2060_v16, %v2061_v60  ;;  %v2071_v21 = vrot.slane %v6231_v19, 2  ;;  %v2064_v22 = vsel %vm402_vm1, %v2061_v60, %v2063_v20  ;;  %v2065_v25 = vrot.slane %v6232_v24, 2  ;;  %v2237_v28 = vld [vmem:[%s7837_s12] sm:$0xff]  ;;  %v2238_v0 = vld [vmem:[%s7837_s12 + $0x8] sm:$0xff]  ;;  %v2239_v7 = vld [vmem:[%s7837_s12 + $0x10] sm:$0xff] }
 0x682   : >> { %5494 = vmatprep.subr.bf16.mxu0 %v6435_v52  ;;  %5924 = vmatprep.subr.bf16.mxu1 %v6435_v52  ;;  %v2070_v17 = vsel %vm402_vm1, %v2067_v12, %v2069_v13  ;;  %v2245_v29 = vld [vmem:[%s7837_s12 + $0x40] sm:$0xff]  ;;  %v2246_v2 = vld [vmem:[%s7837_s12 + $0x48] sm:$0xff]  ;;  %v2247_v45 = vld [vmem:[%s7837_s12 + $0x50] sm:$0xff] }
 0x683   : >> { %v2072_v23 = vsel %vm402_vm1, %v2069_v13, %v2071_v21  ;;  %v2066_v26 = vsel %vm402_vm1, %v2063_v20, %v2065_v25  ;;  %v2068_v27 = vsel %vm402_vm1, %v2065_v25, %v2067_v12  ;;  %v2241_v60 = vld [vmem:[%s7837_s12 + $0x20] sm:$0xff]  ;;  %v7907_v46 = vld [vmem:[%s9229_s1 + $0x1d0] sm:$0xf] (%p2003_p10)  ;;  %v7912_v47 = vld [vmem:[%s9229_s1 + $0x1d4] sm:$0xf] (%p2003_p10) }
 0x684   : >> { %v2249_v12 = vld [vmem:[%s7837_s12 + $0x60] sm:$0xff]  ;;  %v7917_v48 = vld [vmem:[%s9229_s1 + $0x1d8] sm:$0xf] (%p2003_p10)  ;;  %v7922_v49 = vld [vmem:[%s9229_s1 + $0x1dc] sm:$0xf] (%p2003_p10) }
 0x685   : >> { %5495 = vmatpush3.bf16.msra.mxu0 %v4735_v54  ;;  %5932 = vmatpush3.bf16.msra.mxu1 %v4735_v54  ;;  %v2248_v54 = vld [vmem:[%s7837_s12 + $0x58] sm:$0xff]  ;;  %v7927_v56 = vld [vmem:[%s9229_s1 + $0x1e0] sm:$0xf] (%p2003_p10)  ;;  %v7932_v57 = vld [vmem:[%s9229_s1 + $0x1e4] sm:$0xf] (%p2003_p10) }
 0x686   : >> { %5496 = vmatprep.subr.bf16.mxu0 %v6435_v52  ;;  %5925 = vmatprep.subr.bf16.mxu1 %v6435_v52  ;;  %v7937_v58 = vld [vmem:[%s9229_s1 + $0x1e8] sm:$0xf] (%p2003_p10)  ;;  %v7942_v59 = vld [vmem:[%s9229_s1 + $0x1ec] sm:$0xf] (%p2003_p10)  ;;  %v7947_v31 = vld [vmem:[%s9229_s1 + $0x1f0] sm:$0xf] (%p2003_p10) }
 0x687   : > { %v7952_v32 = vld [vmem:[%s9229_s1 + $0x1f4] sm:$0xf] (%p2003_p10)  ;;  %v7957_v33 = vld [vmem:[%s9229_s1 + $0x1f8] sm:$0xf] (%p2003_p10)  ;;  %v7962_v34 = vld [vmem:[%s9229_s1 + $0x1fc] sm:$0x3] (%p2003_p10) }
 0x689   : >> { %5497 = vmatpush3.bf16.msra.mxu0 %v4736_v50  ;;  %5933 = vmatpush3.bf16.msra.mxu1 %v4736_v50 }
 0x68a   : >> { %5498 = vmatprep.subr.bf16.mxu0 %v6435_v52  ;;  %5926 = vmatprep.subr.bf16.mxu1 %v6435_v52 }
 0x68d   : >> { %5499 = vmatpush3.bf16.msra.mxu0 %v4737_v8  ;;  %5934 = vmatpush3.bf16.msra.mxu1 %v4737_v8 }
 0x68e   : >> { %5500 = vmatprep.subr.bf16.mxu0 %v6435_v52  ;;  %5927 = vmatprep.subr.bf16.mxu1 %v6435_v52 }
 0x691   : >> { %5501 = vmatpush3.bf16.msra.mxu0 %v4738_v9  ;;  %5935 = vmatpush3.bf16.msra.mxu1 %v4738_v9 }
 0x692   : >> { %5502 = vmatprep.subr.bf16.mxu0 %v6435_v52  ;;  %5928 = vmatprep.subr.bf16.mxu1 %v6435_v52 }
 0x695   : >> { %5503 = vmatpush3.bf16.msra.mxu0 %v4739_v11  ;;  %5936 = vmatpush3.bf16.msra.mxu1 %v4739_v11 }
 0x696   : >> { %5504 = vmatprep.subr.bf16.mxu0 %v6435_v52  ;;  %5929 = vmatprep.subr.bf16.mxu1 %v6435_v52 }
 0x699   : >> { %5505 = vmatpush3.bf16.msra.mxu0 %v2144_v14  ;;  %5937 = vmatpush3.bf16.msra.mxu1 %v2144_v14  ;;  %v2242_v14 = vld [vmem:[%s7837_s12 + $0x28] sm:$0xff] }
 0x69c   : >> { %5507 = vmatmul.mubr.msk.bf16.vlgmr.msra.gmra.mrb[0].mxu0 %vm380_vm2, %v2062_v15  ;;  %5523 = vmatmul.mubr.msk.bf16.vlgmr.msra.gmra.mrb[0].mxu1 %vm380_vm2, %v2070_v17  ;;  %v2250_v17 = vld [vmem:[%s7837_s12 + $0x68] sm:$0x1] }
 0x69d   : >> { %5510 = vmatprep.mubr.msk.bf16.mxu0 %vm6436_vm12, %v6435_v52  ;;  %5526 = vmatprep.mubr.msk.bf16.mxu1 %vm6436_vm12, %v6435_v52 }
 0x6a4   : >> { %5511 = vmatmul.mubr.msk.bf16.gmra.mrb[4].mxu0 %vm380_vm2, %v2064_v22  ;;  %5527 = vmatmul.mubr.msk.bf16.gmra.mrb[4].mxu1 %vm380_vm2, %v2072_v23 }
 0x6a5   : >> { %5514 = vmatprep.mubr.msk.bf16.mxu0 %vm6436_vm12, %v6435_v52  ;;  %5530 = vmatprep.mubr.msk.bf16.mxu1 %vm6436_vm12, %v6435_v52 }
 0x6ac   : >> { %5515 = vmatmul.mubr.msk.bf16.gmra.mrb[8].mxu0 %vm380_vm2, %v2066_v26  ;;  %5531 = vmatmul.mubr.msk.bf16.gmra.mrb[8].mxu1 %vm380_vm2, %v2071_v21 }
 0x6ad   : >> { %5518 = vmatprep.mubr.msk.bf16.mxu0 %vm6436_vm12, %v6435_v52  ;;  %v2240_v52 = vld [vmem:[%s7837_s12 + $0x18] sm:$0xff] }
 0x6b4   : >> { %5519 = vmatmul.mubr.msk.bf16.gmra.mrb[12].mxu0 %vm380_vm2, %v2068_v27 }
 0x76f   : >> { %v2180_v30 = vpop.f32.mrb[0].mxu0  ;;  %v2212_v1 = vpop.f32.mrb[0].mxu1 }
 0x770   : >> { %v2251_v3 = vadd.f32 %v2237_v28, %v2180_v30  ;;  %v5508_v35 = vpop.f32.mrb[1].mxu0  ;;  %v2259_v36 = vadd.f32 %v2245_v29, %v2212_v1  ;;  %v5524_v37 = vpop.f32.mrb[1].mxu1  ;;  %v2243_v28 = vld [vmem:[%s7837_s12 + $0x30] sm:$0xff]  ;;  %v2244_v30 = vld [vmem:[%s7837_s12 + $0x38] sm:$0xff] }
 0x771   : >> { %v2183_v38 = vpop.f32.mrb[2].mxu0  ;;  %v2215_v39 = vpop.f32.mrb[2].mxu1  ;;  %v7892_v37 = vld [vmem:[%s9229_s1 + $0x1c4] sm:$0xf] (%p2003_p10) }
 0x772   : >> { %2266 = vst.msk [vmem:[%s7837_s12] sm:$0xff] %vm497_vm3, %v2251_v3  ;;  %v2252_v40 = vadd.f32 %v2238_v0, %v2183_v38  ;;  %v5509_v4 = vpop.f32.mrb[3].mxu0  ;;  %2274 = vst.msk [vmem:[%s7837_s12 + $0x40] sm:$0xff] %vm497_vm3, %v2259_v36  ;;  %v2260_v5 = vadd.f32 %v2246_v2, %v2215_v39  ;;  %v5525_v6 = vpop.f32.mrb[3].mxu1  ;;  %v7887_v36 = vld [vmem:[%s9229_s1 + $0x1c0] sm:$0xf] (%p2003_p10) }
 0x773   : > { %v7897_v38 = vld [vmem:[%s9229_s1 + $0x1c8] sm:$0xf] (%p2003_p10)  ;;  %v7902_v39 = vld [vmem:[%s9229_s1 + $0x1cc] sm:$0xf] (%p2003_p10) }
 0x774   : >> { %2267 = vst.msk [vmem:[%s7837_s12 + $0x8] sm:$0xff] %vm497_vm3, %v2252_v40  ;;  %2275 = vst.msk [vmem:[%s7837_s12 + $0x48] sm:$0xff] %vm497_vm3, %v2260_v5 }
 0x777   : >> { %v2188_v51 = vpop.f32.mrb[4].mxu0  ;;  %v2220_v53 = vpop.f32.mrb[4].mxu1 }
 0x778   : >> { %v2253_v50 = vadd.f32 %v2239_v7, %v2188_v51  ;;  %v5512_v8 = vpop.f32.mrb[5].mxu0  ;;  %v2261_v9 = vadd.f32 %v2247_v45, %v2220_v53  ;;  %v5528_v10 = vpop.f32.mrb[5].mxu1 }
 0x779   : >> { %v2191_v11 = vpop.f32.mrb[6].mxu0  ;;  %v2223_v55 = vpop.f32.mrb[6].mxu1 }
 0x77a   : >> { %2268 = vst.msk [vmem:[%s7837_s12 + $0x10] sm:$0xff] %vm497_vm3, %v2253_v50  ;;  %v2254_v61 = vadd.f32 %v2240_v52, %v2191_v11  ;;  %v5513_v62 = vpop.f32.mrb[7].mxu0  ;;  %2276 = vst.msk [vmem:[%s7837_s12 + $0x50] sm:$0xff] %vm497_vm3, %v2261_v9  ;;  %v2262_v63 = vadd.f32 %v2248_v54, %v2223_v55  ;;  %v5529_v16 = vpop.f32.mrb[7].mxu1 }
 0x77c   : >> { %2269 = vst.msk [vmem:[%s7837_s12 + $0x18] sm:$0xff] %vm497_vm3, %v2254_v61  ;;  %2277 = vst.msk [vmem:[%s7837_s12 + $0x58] sm:$0xff] %vm497_vm3, %v2262_v63 }
 0x77f   : >> { %v2196_v13 = vpop.f32.mrb[8].mxu0  ;;  %v2228_v15 = vpop.f32.mrb[8].mxu1 }
 0x780   : >> { %v2255_v18 = vadd.f32 %v2241_v60, %v2196_v13  ;;  %v5516_v19 = vpop.f32.mrb[9].mxu0  ;;  %v2263_v20 = vadd.f32 %v2249_v12, %v2228_v15  ;;  %v5532_v21 = vpop.f32.mrb[9].mxu1 }
 0x781   : >> { %v2199_v22 = vpop.f32.mrb[10].mxu0  ;;  %v2231_v23 = vpop.f32.mrb[10].mxu1 }
 0x782   : >> { %2270 = vst.msk [vmem:[%s7837_s12 + $0x20] sm:$0xff] %vm497_vm3, %v2255_v18  ;;  %v2256_v24 = vadd.f32 %v2242_v14, %v2199_v22  ;;  %v5517_v25 = vpop.f32.mrb[11].mxu0  ;;  %2278 = vst.msk [vmem:[%s7837_s12 + $0x60] sm:$0xff] %vm497_vm3, %v2263_v20  ;;  %v2264_v26 = vadd.f32 %v2250_v17, %v2231_v23  ;;  %v5533_v27 = vpop.f32.mrb[11].mxu1 }
 0x784   : >> { %2271 = vst.msk [vmem:[%s7837_s12 + $0x28] sm:$0xff] %vm497_vm3, %v2256_v24 }
 0x785   : >> { %2280 = vst.msk [vmem:[%s7837_s12 + $0x68] sm:$0x1] %vm511_vm4, %v2264_v26 }
 0x786   : > { %2005 = sbr.rel (!%p2003_p10) target bundleno = 1659 (0x67b), region = 278 }
 0x787   : >> { %v2204_v29 = vpop.f32.mrb[12].mxu0 }
 0x788   : >> { %v2257_v0 = vadd.f32 %v2243_v28, %v2204_v29  ;;  %v5520_v1 = vpop.f32.mrb[13].mxu0 }
 0x789   : >> { %v2207_v2 = vpop.f32.mrb[14].mxu0 }
 0x78a   : >> { %2272 = vst.msk [vmem:[%s7837_s12 + $0x30] sm:$0xff] %vm497_vm3, %v2257_v0  ;;  %v2258_v3 = vadd.f32 %v2244_v30, %v2207_v2  ;;  %v5521_v35 = vpop.f32.mrb[15].mxu0 }
 0x78c   : >> { %2273 = vst.msk [vmem:[%s7837_s12 + $0x38] sm:$0xff] %vm497_vm3, %v2258_v3 }
 0x78d LB: >> { %v4772_v41 = vcombine.low %v7887_v36, %v7892_v37  ;;  %v6437_v42 = vmov 0.0   ;;  %v4773_v43 = vcombine.low %v7897_v38, %v7902_v39  ;;  %s5013_s27 = smul.u32 68, %s6397_s26  ;;  %vm6438_vm13 = vmmov 0   ;;  %s6397_s26 = sphi %s7964_s26, %s2303_s26  }
 0x78e   : >> { %5534 = vmatprep.subr.bf16.mxu0 %v6437_v42  ;;  %5938 = vmatprep.subr.bf16.mxu1 %v6437_v42  ;;  %v4774_v44 = vcombine.low %v7907_v46, %v7912_v47  ;;  %v4775_v40 = vcombine.low %v7917_v48, %v7922_v49  ;;  %v4776_v4 = vcombine.low %v7927_v56, %v7932_v57  ;;  %s2532_s29 = smul.u32 112, %s6397_s26  ;;  %s2303_s26 = sadd.s32 1, %s6397_s26  }
 0x78f   : >> { %5535 = vmatpush3.bf16.msra.mxu0 %v4772_v41  ;;  %5946 = vmatpush3.bf16.msra.mxu1 %v4772_v41  ;;  %s7981_s28 = scalar_lea.vmem %s6583_s16, %s5013_s27  ;;  %v4777_v5 = vcombine.low %v7937_v58, %v7942_v59  ;;  %v4778_v7 = vcombine.low %v7947_v31, %v7952_v32  ;;  %v4779_v53 = vcombine.low %v7957_v33, %v7962_v34  ;;  %p2300_p11 = scmp.ge.s32.totalorder %s2303_s26, 2  }
 0x790   : >> { %5536 = vmatprep.subr.bf16.mxu0 %v6437_v42  ;;  %5939 = vmatprep.subr.bf16.mxu1 %v6437_v42  ;;  %v6233_v6 = vld [vmem:[%s7981_s28 + $0x4] sm:$0xf8]   ;;  %v6234_v45 = vld [vmem:[%s7981_s28 + $0xc] sm:$0xff]   ;;  %v6237_v61 = vld [vmem:[%s7981_s28 + $0x14] sm:$0xff]   ;;  %s8041_s30 = scalar_lea.vmem [#allocation2], %s2532_s29  ;;  %s8168_s19 = smov (%p2300_p11), 0  }
 0x791   : >> { %5550 = vmatprep.mubr.msk.bf16.mxu0 %vm6438_vm13, %v6437_v42  ;;  %5566 = vmatprep.mubr.msk.bf16.mxu1 %vm6438_vm13, %v6437_v42  ;;  %v6235_v51 = vld [vmem:[%s7981_s28 + $0x24] sm:$0xff]   ;;  %v6236_v52 = vld [vmem:[%s7981_s28 + $0x2c] sm:$0xff]   ;;  %v2357_v54 = vrot.slane %v6233_v6, 3  ;;  %v2358_v50 = vrot.slane %v6234_v45, 3  ;;  %v2441_v10 = vsel %vm402_vm1, %v4779_v53, 0  ;;  %v6238_v62 = vld [vmem:[%s7981_s28 + $0x34] sm:$0xff]  }
 0x792   : >> { %v2364_v8 = vrot.slane %v6235_v51, 3  ;;  %v2366_v9 = vrot.slane %v6236_v52, 3  ;;  %v2360_v63 = vrot.slane %v6237_v61, 3  ;;  %v2368_v16 = vrot.slane %v6238_v62, 3  ;;  %v6239_v13 = vld [vmem:[%s7981_s28 + $0x1c] sm:$0xff]  }
 0x793   : >> { %5537 = vmatpush3.bf16.msra.mxu0 %v4773_v43  ;;  %5947 = vmatpush3.bf16.msra.mxu1 %v4773_v43  ;;  %v2359_v11 = vsel %vm1182_vm9, %v2357_v54, %v2358_v50  ;;  %v2362_v14 = vrot.slane %v6239_v13, 3  ;;  %v2534_v18 = vld [vmem:[%s8041_s30] sm:$0xff]  ;;  %v2535_v21 = vld [vmem:[%s8041_s30 + $0x8] sm:$0xff]  ;;  %v2536_v3 = vld [vmem:[%s8041_s30 + $0x10] sm:$0xff] }
 0x794   : >> { %5538 = vmatprep.subr.bf16.mxu0 %v6437_v42  ;;  %5940 = vmatprep.subr.bf16.mxu1 %v6437_v42  ;;  %v2367_v55 = vsel %vm1182_vm9, %v2364_v8, %v2366_v9  ;;  %v2361_v60 = vsel %vm1182_vm9, %v2358_v50, %v2360_v63  ;;  %v2369_v12 = vsel %vm1182_vm9, %v2366_v9, %v2368_v16  ;;  %v2542_v19 = vld [vmem:[%s8041_s30 + $0x40] sm:$0xff]  ;;  %v2543_v23 = vld [vmem:[%s8041_s30 + $0x48] sm:$0xff]  ;;  %v2544_v35 = vld [vmem:[%s8041_s30 + $0x50] sm:$0xff] }
 0x795   : >> { %v2363_v15 = vsel %vm1182_vm9, %v2360_v63, %v2362_v14  ;;  %v2365_v17 = vsel %vm1182_vm9, %v2362_v14, %v2364_v8  ;;  %v2538_v50 = vld [vmem:[%s8041_s30 + $0x20] sm:$0xff]  ;;  %v8111_v36 = vld [vmem:[%s9229_s1 + $0x210] sm:$0xf] (%p2300_p11)  ;;  %v8116_v37 = vld [vmem:[%s9229_s1 + $0x214] sm:$0xf] (%p2300_p11) }
 0x796   : >> { %v2546_v8 = vld [vmem:[%s8041_s30 + $0x60] sm:$0xff]  ;;  %v8121_v38 = vld [vmem:[%s9229_s1 + $0x218] sm:$0xf] (%p2300_p11)  ;;  %v8126_v39 = vld [vmem:[%s9229_s1 + $0x21c] sm:$0xf] (%p2300_p11) }
 0x797   : >> { %5539 = vmatpush3.bf16.msra.mxu0 %v4774_v44  ;;  %5948 = vmatpush3.bf16.msra.mxu1 %v4774_v44  ;;  %v2545_v44 = vld [vmem:[%s8041_s30 + $0x58] sm:$0xff]  ;;  %v8131_v46 = vld [vmem:[%s9229_s1 + $0x220] sm:$0xf] (%p2300_p11)  ;;  %v8136_v47 = vld [vmem:[%s9229_s1 + $0x224] sm:$0xf] (%p2300_p11) }
 0x798   : >> { %5540 = vmatprep.subr.bf16.mxu0 %v6437_v42  ;;  %5941 = vmatprep.subr.bf16.mxu1 %v6437_v42  ;;  %v8141_v48 = vld [vmem:[%s9229_s1 + $0x228] sm:$0xf] (%p2300_p11)  ;;  %v8146_v49 = vld [vmem:[%s9229_s1 + $0x22c] sm:$0xf] (%p2300_p11)  ;;  %v8151_v56 = vld [vmem:[%s9229_s1 + $0x230] sm:$0xf] (%p2300_p11) }
 0x799   : > { %v8156_v57 = vld [vmem:[%s9229_s1 + $0x234] sm:$0xf] (%p2300_p11)  ;;  %v8161_v58 = vld [vmem:[%s9229_s1 + $0x238] sm:$0xf] (%p2300_p11)  ;;  %v8166_v59 = vld [vmem:[%s9229_s1 + $0x23c] sm:$0x3] (%p2300_p11) }
 0x79b   : >> { %5541 = vmatpush3.bf16.msra.mxu0 %v4775_v40  ;;  %5949 = vmatpush3.bf16.msra.mxu1 %v4775_v40 }
 0x79c   : >> { %5542 = vmatprep.subr.bf16.mxu0 %v6437_v42  ;;  %5942 = vmatprep.subr.bf16.mxu1 %v6437_v42 }
 0x79f   : >> { %5543 = vmatpush3.bf16.msra.mxu0 %v4776_v4  ;;  %5950 = vmatpush3.bf16.msra.mxu1 %v4776_v4 }
 0x7a0   : >> { %5544 = vmatprep.subr.bf16.mxu0 %v6437_v42  ;;  %5943 = vmatprep.subr.bf16.mxu1 %v6437_v42 }
 0x7a3   : >> { %5545 = vmatpush3.bf16.msra.mxu0 %v4777_v5  ;;  %5951 = vmatpush3.bf16.msra.mxu1 %v4777_v5 }
 0x7a4   : >> { %5546 = vmatprep.subr.bf16.mxu0 %v6437_v42  ;;  %5944 = vmatprep.subr.bf16.mxu1 %v6437_v42 }
 0x7a7   : >> { %5547 = vmatpush3.bf16.msra.mxu0 %v4778_v7  ;;  %5952 = vmatpush3.bf16.msra.mxu1 %v4778_v7 }
 0x7a8   : >> { %5548 = vmatprep.subr.bf16.mxu0 %v6437_v42  ;;  %5945 = vmatprep.subr.bf16.mxu1 %v6437_v42 }
 0x7ab   : >> { %5549 = vmatpush3.bf16.msra.mxu0 %v2441_v10  ;;  %5953 = vmatpush3.bf16.msra.mxu1 %v2441_v10  ;;  %v2539_v10 = vld [vmem:[%s8041_s30 + $0x28] sm:$0xff] }
 0x7ae   : >> { %5551 = vmatmul.mubr.msk.bf16.vlgmr.msra.gmra.mrb[0].mxu0 %vm380_vm2, %v2359_v11  ;;  %5567 = vmatmul.mubr.msk.bf16.vlgmr.msra.gmra.mrb[0].mxu1 %vm380_vm2, %v2367_v55  ;;  %v2547_v55 = vld [vmem:[%s8041_s30 + $0x68] sm:$0x1] }
 0x7af   : >> { %5554 = vmatprep.mubr.msk.bf16.mxu0 %vm6438_vm13, %v6437_v42  ;;  %5570 = vmatprep.mubr.msk.bf16.mxu1 %vm6438_vm13, %v6437_v42 }
 0x7b6   : >> { %5555 = vmatmul.mubr.msk.bf16.gmra.mrb[4].mxu0 %vm380_vm2, %v2361_v60  ;;  %5571 = vmatmul.mubr.msk.bf16.gmra.mrb[4].mxu1 %vm380_vm2, %v2369_v12 }
 0x7b7   : >> { %5558 = vmatprep.mubr.msk.bf16.mxu0 %vm6438_vm13, %v6437_v42  ;;  %5574 = vmatprep.mubr.msk.bf16.mxu1 %vm6438_vm13, %v6437_v42 }
 0x7be   : >> { %5559 = vmatmul.mubr.msk.bf16.gmra.mrb[8].mxu0 %vm380_vm2, %v2363_v15  ;;  %5575 = vmatmul.mubr.msk.bf16.gmra.mrb[8].mxu1 %vm380_vm2, %v2368_v16 }
 0x7bf   : >> { %5562 = vmatprep.mubr.msk.bf16.mxu0 %vm6438_vm13, %v6437_v42  ;;  %v2537_v42 = vld [vmem:[%s8041_s30 + $0x18] sm:$0xff] }
 0x7c6   : >> { %5563 = vmatmul.mubr.msk.bf16.gmra.mrb[12].mxu0 %vm380_vm2, %v2365_v17 }
 0x881   : >> { %v2477_v20 = vpop.f32.mrb[0].mxu0  ;;  %v2509_v22 = vpop.f32.mrb[0].mxu1 }
 0x882   : >> { %v2548_v24 = vadd.f32 %v2534_v18, %v2477_v20  ;;  %v5552_v25 = vpop.f32.mrb[1].mxu0  ;;  %v2556_v26 = vadd.f32 %v2542_v19, %v2509_v22  ;;  %v5568_v27 = vpop.f32.mrb[1].mxu1  ;;  %v2540_v18 = vld [vmem:[%s8041_s30 + $0x30] sm:$0xff]  ;;  %v2541_v20 = vld [vmem:[%s8041_s30 + $0x38] sm:$0xff] }
 0x883   : >> { %v2480_v28 = vpop.f32.mrb[2].mxu0  ;;  %v2512_v29 = vpop.f32.mrb[2].mxu1  ;;  %v8096_v27 = vld [vmem:[%s9229_s1 + $0x204] sm:$0xf] (%p2300_p11) }
 0x884   : >> { %2563 = vst.msk [vmem:[%s8041_s30] sm:$0xff] %vm497_vm3, %v2548_v24  ;;  %v2549_v30 = vadd.f32 %v2535_v21, %v2480_v28  ;;  %v5553_v0 = vpop.f32.mrb[3].mxu0  ;;  %2571 = vst.msk [vmem:[%s8041_s30 + $0x40] sm:$0xff] %vm497_vm3, %v2556_v26  ;;  %v2557_v1 = vadd.f32 %v2543_v23, %v2512_v29  ;;  %v5569_v2 = vpop.f32.mrb[3].mxu1  ;;  %v8091_v26 = vld [vmem:[%s9229_s1 + $0x200] sm:$0xf] (%p2300_p11) }
 0x885   : > { %v8101_v28 = vld [vmem:[%s9229_s1 + $0x208] sm:$0xf] (%p2300_p11)  ;;  %v8106_v29 = vld [vmem:[%s9229_s1 + $0x20c] sm:$0xf] (%p2300_p11) }
 0x886   : >> { %2564 = vst.msk [vmem:[%s8041_s30 + $0x8] sm:$0xff] %vm497_vm3, %v2549_v30  ;;  %2572 = vst.msk [vmem:[%s8041_s30 + $0x48] sm:$0xff] %vm497_vm3, %v2557_v1 }
 0x889   : >> { %v2485_v41 = vpop.f32.mrb[4].mxu0  ;;  %v2517_v43 = vpop.f32.mrb[4].mxu1 }
 0x88a   : >> { %v2550_v40 = vadd.f32 %v2536_v3, %v2485_v41  ;;  %v5556_v4 = vpop.f32.mrb[5].mxu0  ;;  %v2558_v5 = vadd.f32 %v2544_v35, %v2517_v43  ;;  %v5572_v6 = vpop.f32.mrb[5].mxu1 }
 0x88b   : >> { %v2488_v7 = vpop.f32.mrb[6].mxu0  ;;  %v2520_v45 = vpop.f32.mrb[6].mxu1 }
 0x88c   : >> { %2565 = vst.msk [vmem:[%s8041_s30 + $0x10] sm:$0xff] %vm497_vm3, %v2550_v40  ;;  %v2551_v51 = vadd.f32 %v2537_v42, %v2488_v7  ;;  %v5557_v52 = vpop.f32.mrb[7].mxu0  ;;  %2573 = vst.msk [vmem:[%s8041_s30 + $0x50] sm:$0xff] %vm497_vm3, %v2558_v5  ;;  %v2559_v53 = vadd.f32 %v2545_v44, %v2520_v45  ;;  %v5573_v54 = vpop.f32.mrb[7].mxu1 }
 0x88e   : >> { %2566 = vst.msk [vmem:[%s8041_s30 + $0x18] sm:$0xff] %vm497_vm3, %v2551_v51  ;;  %2574 = vst.msk [vmem:[%s8041_s30 + $0x58] sm:$0xff] %vm497_vm3, %v2559_v53 }
 0x891   : >> { %v2493_v9 = vpop.f32.mrb[8].mxu0  ;;  %v2525_v11 = vpop.f32.mrb[8].mxu1 }
 0x892   : >> { %v2552_v61 = vadd.f32 %v2538_v50, %v2493_v9  ;;  %v5560_v62 = vpop.f32.mrb[9].mxu0  ;;  %v2560_v63 = vadd.f32 %v2546_v8, %v2525_v11  ;;  %v5576_v16 = vpop.f32.mrb[9].mxu1 }
 0x893   : >> { %v2496_v60 = vpop.f32.mrb[10].mxu0  ;;  %v2528_v12 = vpop.f32.mrb[10].mxu1 }
 0x894   : >> { %2567 = vst.msk [vmem:[%s8041_s30 + $0x20] sm:$0xff] %vm497_vm3, %v2552_v61  ;;  %v2553_v13 = vadd.f32 %v2539_v10, %v2496_v60  ;;  %v5561_v14 = vpop.f32.mrb[11].mxu0  ;;  %2575 = vst.msk [vmem:[%s8041_s30 + $0x60] sm:$0xff] %vm497_vm3, %v2560_v63  ;;  %v2561_v15 = vadd.f32 %v2547_v55, %v2528_v12  ;;  %v5577_v17 = vpop.f32.mrb[11].mxu1 }
 0x896   : >> { %2568 = vst.msk [vmem:[%s8041_s30 + $0x28] sm:$0xff] %vm497_vm3, %v2553_v13 }
 0x897   : >> { %2577 = vst.msk [vmem:[%s8041_s30 + $0x68] sm:$0x1] %vm511_vm4, %v2561_v15 }
 0x898   : > { %2302 = sbr.rel (!%p2300_p11) target bundleno = 1933 (0x78d), region = 289 }
 0x899   : >> { %v2501_v19 = vpop.f32.mrb[12].mxu0 }
 0x89a   : >> { %v2554_v21 = vadd.f32 %v2540_v18, %v2501_v19  ;;  %v5564_v22 = vpop.f32.mrb[13].mxu0 }
 0x89b   : >> { %v2504_v23 = vpop.f32.mrb[14].mxu0 }
 0x89c   : >> { %2569 = vst.msk [vmem:[%s8041_s30 + $0x30] sm:$0xff] %vm497_vm3, %v2554_v21  ;;  %v2555_v24 = vadd.f32 %v2541_v20, %v2504_v23  ;;  %v5565_v25 = vpop.f32.mrb[15].mxu0 }
 0x89e   : >> { %2570 = vst.msk [vmem:[%s8041_s30 + $0x38] sm:$0xff] %vm497_vm3, %v2555_v24 }
 0x89f LB: >> { %v4811_v31 = vcombine.low %v8091_v26, %v8096_v27  ;;  %v6439_v32 = vmov 0.0   ;;  %v4812_v33 = vcombine.low %v8101_v28, %v8106_v29  ;;  %s5014_s20 = smul.u32 68, %s6401_s19  ;;  %vm6440_vm14 = vmmov 0   ;;  %s6401_s19 = sphi %s8168_s19, %s2600_s19  }
 0x8a0   : >> { %5578 = vmatprep.subr.bf16.mxu0 %v6439_v32  ;;  %5954 = vmatprep.subr.bf16.mxu1 %v6439_v32  ;;  %v4813_v34 = vcombine.low %v8111_v36, %v8116_v37  ;;  %v4814_v30 = vcombine.low %v8121_v38, %v8126_v39  ;;  %v4815_v0 = vcombine.low %v8131_v46, %v8136_v47  ;;  %s2815_s24 = smul.u32 112, %s6401_s19  ;;  %s2600_s19 = sadd.s32 1, %s6401_s19  }
 0x8a1   : >> { %5579 = vmatpush3.bf16.msra.mxu0 %v4811_v31  ;;  %5962 = vmatpush3.bf16.msra.mxu1 %v4811_v31  ;;  %s8180_s22 = scalar_lea.vmem %s6583_s16, %s5014_s20  ;;  %v4816_v1 = vcombine.low %v8141_v48, %v8146_v49  ;;  %v4817_v2 = vcombine.low %v8151_v56, %v8156_v57  ;;  %v4818_v3 = vcombine.low %v8161_v58, %v8166_v59  ;;  %p2597_p12 = scmp.ge.s32.totalorder %s2600_s19, 2  }
 0x8a2   : >> { %5580 = vmatprep.subr.bf16.mxu0 %v6439_v32  ;;  %5955 = vmatprep.subr.bf16.mxu1 %v6439_v32  ;;  %v6240_v41 = vld [vmem:[%s8180_s22 + $0x8] sm:$0xff]   ;;  %v6242_v43 = vld [vmem:[%s8180_s22 + $0x10] sm:$0xff]   ;;  %v6244_v40 = vld [vmem:[%s8180_s22 + $0x18] sm:$0xff]   ;;  %s8216_s25 = scalar_lea.vmem [#allocation2], %s2815_s24  ;;  %s8343_s13 = smov (%p2597_p12), 0  }
 0x8a3   : >> { %5594 = vmatprep.mubr.msk.bf16.mxu0 %vm6440_vm14, %v6439_v32  ;;  %5610 = vmatprep.mubr.msk.bf16.mxu1 %vm6440_vm14, %v6439_v32  ;;  %v2724_v35 = vsel %vm402_vm1, %v4818_v3, 0  ;;  %v6241_v42 = vld [vmem:[%s8180_s22 + $0x28] sm:$0xff]   ;;  %v6243_v44 = vld [vmem:[%s8180_s22 + $0x30] sm:$0xff]   ;;  %v6245_v4 = vld [vmem:[%s8180_s22 + $0x38] sm:$0x1f]  }
 0x8a4   : >> { %v6246_v5 = vld [vmem:[%s8180_s22 + $0x20] sm:$0xff]   ;;  %v8286_v26 = vld [vmem:[%s9229_s1 + $0x250] sm:$0xf] (%p2597_p12)  ;;  %v8291_v27 = vld [vmem:[%s9229_s1 + $0x254] sm:$0xf] (%p2597_p12) }
 0x8a5   : >> { %5581 = vmatpush3.bf16.msra.mxu0 %v4812_v33  ;;  %5963 = vmatpush3.bf16.msra.mxu1 %v4812_v33  ;;  %v2817_v6 = vld [vmem:[%s8216_s25] sm:$0xff]  ;;  %v2818_v51 = vld [vmem:[%s8216_s25 + $0x8] sm:$0xff]  ;;  %v2819_v16 = vld [vmem:[%s8216_s25 + $0x10] sm:$0xff] }
 0x8a6   : >> { %5582 = vmatprep.subr.bf16.mxu0 %v6439_v32  ;;  %5956 = vmatprep.subr.bf16.mxu1 %v6439_v32  ;;  %v2825_v7 = vld [vmem:[%s8216_s25 + $0x40] sm:$0xff]  ;;  %v2826_v53 = vld [vmem:[%s8216_s25 + $0x48] sm:$0xff]  ;;  %v2827_v60 = vld [vmem:[%s8216_s25 + $0x50] sm:$0xff] }
 0x8a7   : >> { %v2820_v13 = vld [vmem:[%s8216_s25 + $0x18] sm:$0xff]  ;;  %v2829_v33 = vld [vmem:[%s8216_s25 + $0x60] sm:$0xff]  ;;  %v8316_v38 = vld [vmem:[%s9229_s1 + $0x268] sm:$0xf] (%p2597_p12) }
 0x8a8   : >> { %v2828_v15 = vld [vmem:[%s8216_s25 + $0x58] sm:$0xff]  ;;  %v8306_v36 = vld [vmem:[%s9229_s1 + $0x260] sm:$0xf] (%p2597_p12)  ;;  %v8311_v37 = vld [vmem:[%s9229_s1 + $0x264] sm:$0xf] (%p2597_p12) }
 0x8a9   : >> { %5583 = vmatpush3.bf16.msra.mxu0 %v4813_v34  ;;  %5964 = vmatpush3.bf16.msra.mxu1 %v4813_v34  ;;  %v8296_v28 = vld [vmem:[%s9229_s1 + $0x258] sm:$0xf] (%p2597_p12)  ;;  %v8301_v29 = vld [vmem:[%s9229_s1 + $0x25c] sm:$0xf] (%p2597_p12)  ;;  %v8321_v39 = vld [vmem:[%s9229_s1 + $0x26c] sm:$0xf] (%p2597_p12) }
 0x8aa   : >> { %5584 = vmatprep.subr.bf16.mxu0 %v6439_v32  ;;  %5957 = vmatprep.subr.bf16.mxu1 %v6439_v32  ;;  %v8326_v46 = vld [vmem:[%s9229_s1 + $0x270] sm:$0xf] (%p2597_p12)  ;;  %v8331_v47 = vld [vmem:[%s9229_s1 + $0x274] sm:$0xf] (%p2597_p12)  ;;  %v8336_v48 = vld [vmem:[%s9229_s1 + $0x278] sm:$0xf] (%p2597_p12) }
 0x8ab   : > { %v8341_v49 = vld [vmem:[%s9229_s1 + $0x27c] sm:$0x3] (%p2597_p12) }
 0x8ad   : >> { %5585 = vmatpush3.bf16.msra.mxu0 %v4814_v30  ;;  %5965 = vmatpush3.bf16.msra.mxu1 %v4814_v30  ;;  %v2822_v30 = vld [vmem:[%s8216_s25 + $0x28] sm:$0xff] }
 0x8ae   : >> { %5586 = vmatprep.subr.bf16.mxu0 %v6439_v32  ;;  %5958 = vmatprep.subr.bf16.mxu1 %v6439_v32 }
 0x8b1   : >> { %5587 = vmatpush3.bf16.msra.mxu0 %v4815_v0  ;;  %5966 = vmatpush3.bf16.msra.mxu1 %v4815_v0 }
 0x8b2   : >> { %5588 = vmatprep.subr.bf16.mxu0 %v6439_v32  ;;  %5959 = vmatprep.subr.bf16.mxu1 %v6439_v32 }
 0x8b5   : >> { %5589 = vmatpush3.bf16.msra.mxu0 %v4816_v1  ;;  %5967 = vmatpush3.bf16.msra.mxu1 %v4816_v1  ;;  %v2830_v1 = vld [vmem:[%s8216_s25 + $0x68] sm:$0x1] }
 0x8b6   : >> { %5590 = vmatprep.subr.bf16.mxu0 %v6439_v32  ;;  %5960 = vmatprep.subr.bf16.mxu1 %v6439_v32 }
 0x8b9   : >> { %5591 = vmatpush3.bf16.msra.mxu0 %v4817_v2  ;;  %5968 = vmatpush3.bf16.msra.mxu1 %v4817_v2 }
 0x8ba   : >> { %5592 = vmatprep.subr.bf16.mxu0 %v6439_v32  ;;  %5961 = vmatprep.subr.bf16.mxu1 %v6439_v32 }
 0x8bd   : >> { %5593 = vmatpush3.bf16.msra.mxu0 %v2724_v35  ;;  %5969 = vmatpush3.bf16.msra.mxu1 %v2724_v35 }
 0x8c0   : >> { %5595 = vmatmul.mubr.msk.bf16.vlgmr.msra.gmra.mrb[0].mxu0 %vm380_vm2, %v6240_v41  ;;  %5611 = vmatmul.mubr.msk.bf16.vlgmr.msra.gmra.mrb[0].mxu1 %vm380_vm2, %v6241_v42 }
 0x8c1   : >> { %5598 = vmatprep.mubr.msk.bf16.mxu0 %vm6440_vm14, %v6439_v32  ;;  %5614 = vmatprep.mubr.msk.bf16.mxu1 %vm6440_vm14, %v6439_v32 }
 0x8c8   : >> { %5599 = vmatmul.mubr.msk.bf16.gmra.mrb[4].mxu0 %vm380_vm2, %v6242_v43  ;;  %5615 = vmatmul.mubr.msk.bf16.gmra.mrb[4].mxu1 %vm380_vm2, %v6243_v44 }
 0x8c9   : >> { %5602 = vmatprep.mubr.msk.bf16.mxu0 %vm6440_vm14, %v6439_v32  ;;  %5618 = vmatprep.mubr.msk.bf16.mxu1 %vm6440_vm14, %v6439_v32 }
 0x8d0   : >> { %5603 = vmatmul.mubr.msk.bf16.gmra.mrb[8].mxu0 %vm380_vm2, %v6244_v40  ;;  %5619 = vmatmul.mubr.msk.bf16.gmra.mrb[8].mxu1 %vm380_vm2, %v6245_v4 }
 0x8d1   : >> { %5606 = vmatprep.mubr.msk.bf16.mxu0 %vm6440_vm14, %v6439_v32  ;;  %v2821_v32 = vld [vmem:[%s8216_s25 + $0x20] sm:$0xff] }
 0x8d8   : >> { %5607 = vmatmul.mubr.msk.bf16.gmra.mrb[12].mxu0 %vm380_vm2, %v6246_v5 }
 0x993   : >> { %v2760_v45 = vpop.f32.mrb[0].mxu0  ;;  %v2792_v52 = vpop.f32.mrb[0].mxu1 }
 0x994   : >> { %v2831_v54 = vadd.f32 %v2817_v6, %v2760_v45  ;;  %v5596_v50 = vpop.f32.mrb[1].mxu0  ;;  %v2839_v8 = vadd.f32 %v2825_v7, %v2792_v52  ;;  %v5612_v9 = vpop.f32.mrb[1].mxu1  ;;  %v2823_v6 = vld [vmem:[%s8216_s25 + $0x30] sm:$0xff]  ;;  %v2824_v45 = vld [vmem:[%s8216_s25 + $0x38] sm:$0xff] }
 0x995   : >> { %v2763_v10 = vpop.f32.mrb[2].mxu0  ;;  %v2795_v11 = vpop.f32.mrb[2].mxu1  ;;  %v8271_v9 = vld [vmem:[%s9229_s1 + $0x244] sm:$0xf] (%p2597_p12) }
 0x996   : >> { %2846 = vst.msk [vmem:[%s8216_s25] sm:$0xff] %vm497_vm3, %v2831_v54  ;;  %v2832_v55 = vadd.f32 %v2818_v51, %v2763_v10  ;;  %v5597_v61 = vpop.f32.mrb[3].mxu0  ;;  %2854 = vst.msk [vmem:[%s8216_s25 + $0x40] sm:$0xff] %vm497_vm3, %v2839_v8  ;;  %v2840_v62 = vadd.f32 %v2826_v53, %v2795_v11  ;;  %v5613_v63 = vpop.f32.mrb[3].mxu1  ;;  %v8266_v8 = vld [vmem:[%s9229_s1 + $0x240] sm:$0xf] (%p2597_p12) }
 0x997   : > { %v8276_v10 = vld [vmem:[%s9229_s1 + $0x248] sm:$0xf] (%p2597_p12)  ;;  %v8281_v11 = vld [vmem:[%s9229_s1 + $0x24c] sm:$0xf] (%p2597_p12) }
 0x998   : >> { %2847 = vst.msk [vmem:[%s8216_s25 + $0x8] sm:$0xff] %vm497_vm3, %v2832_v55  ;;  %2855 = vst.msk [vmem:[%s8216_s25 + $0x48] sm:$0xff] %vm497_vm3, %v2840_v62 }
 0x99b   : >> { %v2768_v12 = vpop.f32.mrb[4].mxu0  ;;  %v2800_v14 = vpop.f32.mrb[4].mxu1 }
 0x99c   : >> { %v2833_v17 = vadd.f32 %v2819_v16, %v2768_v12  ;;  %v5600_v18 = vpop.f32.mrb[5].mxu0  ;;  %v2841_v19 = vadd.f32 %v2827_v60, %v2800_v14  ;;  %v5616_v20 = vpop.f32.mrb[5].mxu1 }
 0x99d   : >> { %v2771_v21 = vpop.f32.mrb[6].mxu0  ;;  %v2803_v22 = vpop.f32.mrb[6].mxu1 }
 0x99e   : >> { %2848 = vst.msk [vmem:[%s8216_s25 + $0x10] sm:$0xff] %vm497_vm3, %v2833_v17  ;;  %v2834_v23 = vadd.f32 %v2820_v13, %v2771_v21  ;;  %v5601_v24 = vpop.f32.mrb[7].mxu0  ;;  %2856 = vst.msk [vmem:[%s8216_s25 + $0x50] sm:$0xff] %vm497_vm3, %v2841_v19  ;;  %v2842_v25 = vadd.f32 %v2828_v15, %v2803_v22  ;;  %v5617_v31 = vpop.f32.mrb[7].mxu1 }
 0x9a0   : >> { %2849 = vst.msk [vmem:[%s8216_s25 + $0x18] sm:$0xff] %vm497_vm3, %v2834_v23  ;;  %2857 = vst.msk [vmem:[%s8216_s25 + $0x58] sm:$0xff] %vm497_vm3, %v2842_v25 }
 0x9a3   : >> { %v2776_v34 = vpop.f32.mrb[8].mxu0  ;;  %v2808_v0 = vpop.f32.mrb[8].mxu1 }
 0x9a4   : >> { %v2835_v2 = vadd.f32 %v2821_v32, %v2776_v34  ;;  %v5604_v3 = vpop.f32.mrb[9].mxu0  ;;  %v2843_v35 = vadd.f32 %v2829_v33, %v2808_v0  ;;  %v5620_v41 = vpop.f32.mrb[9].mxu1 }
 0x9a5   : >> { %v2779_v42 = vpop.f32.mrb[10].mxu0  ;;  %v2811_v43 = vpop.f32.mrb[10].mxu1 }
 0x9a6   : >> { %2850 = vst.msk [vmem:[%s8216_s25 + $0x20] sm:$0xff] %vm497_vm3, %v2835_v2  ;;  %v2836_v44 = vadd.f32 %v2822_v30, %v2779_v42  ;;  %v5605_v40 = vpop.f32.mrb[11].mxu0  ;;  %2858 = vst.msk [vmem:[%s8216_s25 + $0x60] sm:$0xff] %vm497_vm3, %v2843_v35  ;;  %v2844_v4 = vadd.f32 %v2830_v1, %v2811_v43  ;;  %v5621_v5 = vpop.f32.mrb[11].mxu1 }
 0x9a8   : >> { %2851 = vst.msk [vmem:[%s8216_s25 + $0x28] sm:$0xff] %vm497_vm3, %v2836_v44 }
 0x9a9   : >> { %2860 = vst.msk [vmem:[%s8216_s25 + $0x68] sm:$0x1] %vm511_vm4, %v2844_v4 }
 0x9aa   : > { %2599 = sbr.rel (!%p2597_p12) target bundleno = 2207 (0x89f), region = 300 }
 0x9ab   : >> { %v2784_v7 = vpop.f32.mrb[12].mxu0 }
 0x9ac   : >> { %v2837_v51 = vadd.f32 %v2823_v6, %v2784_v7  ;;  %v5608_v52 = vpop.f32.mrb[13].mxu0 }
 0x9ad   : >> { %v2787_v53 = vpop.f32.mrb[14].mxu0 }
 0x9ae   : >> { %2852 = vst.msk [vmem:[%s8216_s25 + $0x30] sm:$0xff] %vm497_vm3, %v2837_v51  ;;  %v2838_v54 = vadd.f32 %v2824_v45, %v2787_v53  ;;  %v5609_v50 = vpop.f32.mrb[15].mxu0 }
 0x9b0   : >> { %2853 = vst.msk [vmem:[%s8216_s25 + $0x38] sm:$0xff] %vm497_vm3, %v2838_v54 }
 0x9b1 LB: >> { %v4850_v56 = vcombine.low %v8266_v8, %v8271_v9  ;;  %v6441_v57 = vmov 0.0   ;;  %v4851_v58 = vcombine.low %v8276_v10, %v8281_v11  ;;  %s5015_s14 = smul.u32 68, %s6405_s13  ;;  %vm6442_vm15 = vmmov 0   ;;  %s6405_s13 = sphi %s8343_s13, %s2883_s13  }
 0x9b2   : >> { %5622 = vmatprep.subr.bf16.mxu0 %v6441_v57  ;;  %5970 = vmatprep.subr.bf16.mxu1 %v6441_v57  ;;  %v4852_v59 = vcombine.low %v8286_v26, %v8291_v27  ;;  %v4853_v55 = vcombine.low %v8296_v28, %v8301_v29  ;;  %v4854_v61 = vcombine.low %v8306_v36, %v8311_v37  ;;  %s3112_s17 = smul.u32 112, %s6405_s13  ;;  %s2883_s13 = sadd.s32 1, %s6405_s13  }
 0x9b3   : >> { %5623 = vmatpush3.bf16.msra.mxu0 %v4850_v56  ;;  %5978 = vmatpush3.bf16.msra.mxu1 %v4850_v56  ;;  %s8360_s15 = scalar_lea.vmem %s6583_s16, %s5015_s14  ;;  %v4855_v62 = vcombine.low %v8316_v38, %v8321_v39  ;;  %v4856_v16 = vcombine.low %v8326_v46, %v8331_v47  ;;  %v4857_v14 = vcombine.low %v8336_v48, %v8341_v49  ;;  %p2880_p13 = scmp.ge.s32.totalorder %s2883_s13, 2  }
 0x9b4   : >> { %5624 = vmatprep.subr.bf16.mxu0 %v6441_v57  ;;  %5971 = vmatprep.subr.bf16.mxu1 %v6441_v57  ;;  %v6247_v63 = vld [vmem:[%s8360_s15 + $0x8] sm:$0xfe]   ;;  %v6248_v60 = vld [vmem:[%s8360_s15 + $0x10] sm:$0xff]   ;;  %v6251_v23 = vld [vmem:[%s8360_s15 + $0x18] sm:$0xff]   ;;  %s8420_s18 = scalar_lea.vmem [#allocation2], %s3112_s17  ;;  %s8547_s8 = smov (%p2880_p13), 0  }
 0x9b5   : >> { %5638 = vmatprep.mubr.msk.bf16.mxu0 %vm6442_vm15, %v6441_v57  ;;  %5654 = vmatprep.mubr.msk.bf16.mxu1 %vm6442_vm15, %v6441_v57  ;;  %v6249_v12 = vld [vmem:[%s8360_s15 + $0x28] sm:$0xff]   ;;  %v6250_v13 = vld [vmem:[%s8360_s15 + $0x30] sm:$0xff]   ;;  %v2937_v15 = vrot.slane %v6247_v63, 1  ;;  %v2938_v17 = vrot.slane %v6248_v60, 1  ;;  %v3021_v20 = vsel %vm402_vm1, %v4857_v14, 0  ;;  %v2940_v25 = vrot.slane %v6251_v23, 1 }
 0x9b6   : >> { %v2944_v18 = vrot.slane %v6249_v12, 1  ;;  %v2946_v19 = vrot.slane %v6250_v13, 1  ;;  %v6252_v24 = vld [vmem:[%s8360_s15 + $0x38] sm:$0x3f]   ;;  %v6253_v34 = vld [vmem:[%s8360_s15 + $0x20] sm:$0xff]  }
 0x9b7   : >> { %5625 = vmatpush3.bf16.msra.mxu0 %v4851_v58  ;;  %5979 = vmatpush3.bf16.msra.mxu1 %v4851_v58  ;;  %v2939_v21 = vsel %vm588_vm6, %v2937_v15, %v2938_v17  ;;  %v2948_v31 = vrot.slane %v6252_v24, 1  ;;  %v2941_v32 = vsel %vm588_vm6, %v2938_v17, %v2940_v25  ;;  %v2942_v30 = vrot.slane %v6253_v34, 1  ;;  %v3114_v2 = vld [vmem:[%s8420_s18] sm:$0xff]  ;;  %v3115_v41 = vld [vmem:[%s8420_s18 + $0x8] sm:$0xff]  ;;  %v3116_v54 = vld [vmem:[%s8420_s18 + $0x10] sm:$0xff] }
 0x9b8   : >> { %5626 = vmatprep.subr.bf16.mxu0 %v6441_v57  ;;  %5972 = vmatprep.subr.bf16.mxu1 %v6441_v57  ;;  %v2947_v22 = vsel %vm588_vm6, %v2944_v18, %v2946_v19  ;;  %v3122_v3 = vld [vmem:[%s8420_s18 + $0x40] sm:$0xff]  ;;  %v3123_v43 = vld [vmem:[%s8420_s18 + $0x48] sm:$0xff]  ;;  %v3124_v50 = vld [vmem:[%s8420_s18 + $0x50] sm:$0xff] }
 0x9b9   : >> { %v2949_v33 = vsel %vm588_vm6, %v2946_v19, %v2948_v31  ;;  %v2943_v0 = vsel %vm588_vm6, %v2940_v25, %v2942_v30  ;;  %v2945_v1 = vsel %vm588_vm6, %v2942_v30, %v2944_v18  ;;  %v3118_v17 = vld [vmem:[%s8420_s18 + $0x20] sm:$0xff]  ;;  %v8490_v8 = vld [vmem:[%s9229_s1 + $0x290] sm:$0xf] (%p2880_p13)  ;;  %v8495_v9 = vld [vmem:[%s9229_s1 + $0x294] sm:$0xf] (%p2880_p13) }
 0x9ba   : >> { %v3126_v18 = vld [vmem:[%s8420_s18 + $0x60] sm:$0xff]  ;;  %v8500_v10 = vld [vmem:[%s9229_s1 + $0x298] sm:$0xf] (%p2880_p13)  ;;  %v8505_v11 = vld [vmem:[%s9229_s1 + $0x29c] sm:$0xf] (%p2880_p13) }
 0x9bb   : >> { %5627 = vmatpush3.bf16.msra.mxu0 %v4852_v59  ;;  %5980 = vmatpush3.bf16.msra.mxu1 %v4852_v59  ;;  %v3125_v59 = vld [vmem:[%s8420_s18 + $0x58] sm:$0xff]  ;;  %v8510_v26 = vld [vmem:[%s9229_s1 + $0x2a0] sm:$0xf] (%p2880_p13)  ;;  %v8515_v27 = vld [vmem:[%s9229_s1 + $0x2a4] sm:$0xf] (%p2880_p13) }
 0x9bc   : >> { %5628 = vmatprep.subr.bf16.mxu0 %v6441_v57  ;;  %5973 = vmatprep.subr.bf16.mxu1 %v6441_v57  ;;  %v8520_v28 = vld [vmem:[%s9229_s1 + $0x2a8] sm:$0xf] (%p2880_p13)  ;;  %v8525_v29 = vld [vmem:[%s9229_s1 + $0x2ac] sm:$0xf] (%p2880_p13)  ;;  %v8530_v36 = vld [vmem:[%s9229_s1 + $0x2b0] sm:$0xf] (%p2880_p13) }
 0x9bd   : > { %v8535_v37 = vld [vmem:[%s9229_s1 + $0x2b4] sm:$0xf] (%p2880_p13)  ;;  %v8540_v38 = vld [vmem:[%s9229_s1 + $0x2b8] sm:$0xf] (%p2880_p13)  ;;  %v8545_v39 = vld [vmem:[%s9229_s1 + $0x2bc] sm:$0x3] (%p2880_p13) }
 0x9bf   : >> { %5629 = vmatpush3.bf16.msra.mxu0 %v4853_v55  ;;  %5981 = vmatpush3.bf16.msra.mxu1 %v4853_v55 }
 0x9c0   : >> { %5630 = vmatprep.subr.bf16.mxu0 %v6441_v57  ;;  %5974 = vmatprep.subr.bf16.mxu1 %v6441_v57 }
 0x9c3   : >> { %5631 = vmatpush3.bf16.msra.mxu0 %v4854_v61  ;;  %5982 = vmatpush3.bf16.msra.mxu1 %v4854_v61 }
 0x9c4   : >> { %5632 = vmatprep.subr.bf16.mxu0 %v6441_v57  ;;  %5975 = vmatprep.subr.bf16.mxu1 %v6441_v57 }
 0x9c7   : >> { %5633 = vmatpush3.bf16.msra.mxu0 %v4855_v62  ;;  %5983 = vmatpush3.bf16.msra.mxu1 %v4855_v62 }
 0x9c8   : >> { %5634 = vmatprep.subr.bf16.mxu0 %v6441_v57  ;;  %5976 = vmatprep.subr.bf16.mxu1 %v6441_v57 }
 0x9cb   : >> { %5635 = vmatpush3.bf16.msra.mxu0 %v4856_v16  ;;  %5984 = vmatpush3.bf16.msra.mxu1 %v4856_v16 }
 0x9cc   : >> { %5636 = vmatprep.subr.bf16.mxu0 %v6441_v57  ;;  %5977 = vmatprep.subr.bf16.mxu1 %v6441_v57 }
 0x9cf   : >> { %5637 = vmatpush3.bf16.msra.mxu0 %v3021_v20  ;;  %5985 = vmatpush3.bf16.msra.mxu1 %v3021_v20  ;;  %v3119_v20 = vld [vmem:[%s8420_s18 + $0x28] sm:$0xff] }
 0x9d2   : >> { %5639 = vmatmul.mubr.msk.bf16.vlgmr.msra.gmra.mrb[0].mxu0 %vm380_vm2, %v2939_v21  ;;  %5655 = vmatmul.mubr.msk.bf16.vlgmr.msra.gmra.mrb[0].mxu1 %vm380_vm2, %v2947_v22  ;;  %v3127_v22 = vld [vmem:[%s8420_s18 + $0x68] sm:$0x1] }
 0x9d3   : >> { %5642 = vmatprep.mubr.msk.bf16.mxu0 %vm6442_vm15, %v6441_v57  ;;  %5658 = vmatprep.mubr.msk.bf16.mxu1 %vm6442_vm15, %v6441_v57 }
 0x9da   : >> { %5643 = vmatmul.mubr.msk.bf16.gmra.mrb[4].mxu0 %vm380_vm2, %v2941_v32  ;;  %5659 = vmatmul.mubr.msk.bf16.gmra.mrb[4].mxu1 %vm380_vm2, %v2949_v33 }
 0x9db   : >> { %5646 = vmatprep.mubr.msk.bf16.mxu0 %vm6442_vm15, %v6441_v57  ;;  %5662 = vmatprep.mubr.msk.bf16.mxu1 %vm6442_vm15, %v6441_v57 }
 0x9e2   : >> { %5647 = vmatmul.mubr.msk.bf16.gmra.mrb[8].mxu0 %vm380_vm2, %v2943_v0  ;;  %5663 = vmatmul.mubr.msk.bf16.gmra.mrb[8].mxu1 %vm380_vm2, %v2948_v31 }
 0x9e3   : >> { %5650 = vmatprep.mubr.msk.bf16.mxu0 %vm6442_vm15, %v6441_v57  ;;  %v3117_v57 = vld [vmem:[%s8420_s18 + $0x18] sm:$0xff] }
 0x9ea   : >> { %5651 = vmatmul.mubr.msk.bf16.gmra.mrb[12].mxu0 %vm380_vm2, %v2945_v1 }
 0xaa5   : >> { %v3057_v35 = vpop.f32.mrb[0].mxu0  ;;  %v3089_v42 = vpop.f32.mrb[0].mxu1 }
 0xaa6   : >> { %v3128_v44 = vadd.f32 %v3114_v2, %v3057_v35  ;;  %v5640_v40 = vpop.f32.mrb[1].mxu0  ;;  %v3136_v4 = vadd.f32 %v3122_v3, %v3089_v42  ;;  %v5656_v5 = vpop.f32.mrb[1].mxu1  ;;  %v3120_v2 = vld [vmem:[%s8420_s18 + $0x30] sm:$0xff]  ;;  %v3121_v35 = vld [vmem:[%s8420_s18 + $0x38] sm:$0xff] }
 0xaa7   : >> { %v3060_v6 = vpop.f32.mrb[2].mxu0  ;;  %v3092_v7 = vpop.f32.mrb[2].mxu1  ;;  %v8475_v5 = vld [vmem:[%s9229_s1 + $0x284] sm:$0xf] (%p2880_p13) }
 0xaa8   : >> { %3143 = vst.msk [vmem:[%s8420_s18] sm:$0xff] %vm497_vm3, %v3128_v44  ;;  %v3129_v45 = vadd.f32 %v3115_v41, %v3060_v6  ;;  %v5641_v51 = vpop.f32.mrb[3].mxu0  ;;  %3151 = vst.msk [vmem:[%s8420_s18 + $0x40] sm:$0xff] %vm497_vm3, %v3136_v4  ;;  %v3137_v52 = vadd.f32 %v3123_v43, %v3092_v7  ;;  %v5657_v53 = vpop.f32.mrb[3].mxu1  ;;  %v8470_v4 = vld [vmem:[%s9229_s1 + $0x280] sm:$0xf] (%p2880_p13) }
 0xaa9   : > { %v8480_v6 = vld [vmem:[%s9229_s1 + $0x288] sm:$0xf] (%p2880_p13)  ;;  %v8485_v7 = vld [vmem:[%s9229_s1 + $0x28c] sm:$0xf] (%p2880_p13) }
 0xaaa   : >> { %3144 = vst.msk [vmem:[%s8420_s18 + $0x8] sm:$0xff] %vm497_vm3, %v3129_v45  ;;  %3152 = vst.msk [vmem:[%s8420_s18 + $0x48] sm:$0xff] %vm497_vm3, %v3137_v52 }
 0xaad   : >> { %v3065_v56 = vpop.f32.mrb[4].mxu0  ;;  %v3097_v58 = vpop.f32.mrb[4].mxu1 }
 0xaae   : >> { %v3130_v55 = vadd.f32 %v3116_v54, %v3065_v56  ;;  %v5644_v61 = vpop.f32.mrb[5].mxu0  ;;  %v3138_v62 = vadd.f32 %v3124_v50, %v3097_v58  ;;  %v5660_v63 = vpop.f32.mrb[5].mxu1 }
 0xaaf   : >> { %v3068_v16 = vpop.f32.mrb[6].mxu0  ;;  %v3100_v60 = vpop.f32.mrb[6].mxu1 }
 0xab0   : >> { %3145 = vst.msk [vmem:[%s8420_s18 + $0x10] sm:$0xff] %vm497_vm3, %v3130_v55  ;;  %v3131_v12 = vadd.f32 %v3117_v57, %v3068_v16  ;;  %v5645_v13 = vpop.f32.mrb[7].mxu0  ;;  %3153 = vst.msk [vmem:[%s8420_s18 + $0x50] sm:$0xff] %vm497_vm3, %v3138_v62  ;;  %v3139_v14 = vadd.f32 %v3125_v59, %v3100_v60  ;;  %v5661_v15 = vpop.f32.mrb[7].mxu1 }
 0xab2   : >> { %3146 = vst.msk [vmem:[%s8420_s18 + $0x18] sm:$0xff] %vm497_vm3, %v3131_v12  ;;  %3154 = vst.msk [vmem:[%s8420_s18 + $0x58] sm:$0xff] %vm497_vm3, %v3139_v14 }
 0xab5   : >> { %v3073_v19 = vpop.f32.mrb[8].mxu0  ;;  %v3105_v21 = vpop.f32.mrb[8].mxu1 }
 0xab6   : >> { %v3132_v23 = vadd.f32 %v3118_v17, %v3073_v19  ;;  %v5648_v24 = vpop.f32.mrb[9].mxu0  ;;  %v3140_v25 = vadd.f32 %v3126_v18, %v3105_v21  ;;  %v5664_v31 = vpop.f32.mrb[9].mxu1 }
 0xab7   : >> { %v3076_v32 = vpop.f32.mrb[10].mxu0  ;;  %v3108_v33 = vpop.f32.mrb[10].mxu1 }
 0xab8   : >> { %3147 = vst.msk [vmem:[%s8420_s18 + $0x20] sm:$0xff] %vm497_vm3, %v3132_v23  ;;  %v3133_v34 = vadd.f32 %v3119_v20, %v3076_v32  ;;  %v5649_v30 = vpop.f32.mrb[11].mxu0  ;;  %3155 = vst.msk [vmem:[%s8420_s18 + $0x60] sm:$0xff] %vm497_vm3, %v3140_v25  ;;  %v3141_v0 = vadd.f32 %v3127_v22, %v3108_v33  ;;  %v5665_v1 = vpop.f32.mrb[11].mxu1 }
 0xaba   : >> { %3148 = vst.msk [vmem:[%s8420_s18 + $0x28] sm:$0xff] %vm497_vm3, %v3133_v34 }
 0xabb   : >> { %3157 = vst.msk [vmem:[%s8420_s18 + $0x68] sm:$0x1] %vm511_vm4, %v3141_v0 }
 0xabc   : > { %2882 = sbr.rel (!%p2880_p13) target bundleno = 2481 (0x9b1), region = 311 }
 0xabd   : >> { %v3081_v3 = vpop.f32.mrb[12].mxu0 }
 0xabe   : >> { %v3134_v41 = vadd.f32 %v3120_v2, %v3081_v3  ;;  %v5652_v42 = vpop.f32.mrb[13].mxu0 }
 0xabf   : >> { %v3084_v43 = vpop.f32.mrb[14].mxu0 }
 0xac0   : >> { %3149 = vst.msk [vmem:[%s8420_s18 + $0x30] sm:$0xff] %vm497_vm3, %v3134_v41  ;;  %v3135_v44 = vadd.f32 %v3121_v35, %v3084_v43  ;;  %v5653_v40 = vpop.f32.mrb[15].mxu0 }
 0xac2   : >> { %3150 = vst.msk [vmem:[%s8420_s18 + $0x38] sm:$0xff] %vm497_vm3, %v3135_v44 }
 0xac3 LB: >> { %v4889_v46 = vcombine.low %v8470_v4, %v8475_v5  ;;  %v6443_v47 = vmov 0.0   ;;  %v4890_v48 = vcombine.low %v8480_v6, %v8485_v7  ;;  %s5016_s9 = smul.u32 68, %s6409_s8  ;;  %vm6444_vm0 = vmmov 0   ;;  %s6409_s8 = sphi %s8547_s8, %s3180_s8  }
 0xac4   : >> { %5666 = vmatprep.subr.bf16.mxu0 %v6443_v47  ;;  %5986 = vmatprep.subr.bf16.mxu1 %v6443_v47  ;;  %v4891_v49 = vcombine.low %v8490_v8, %v8495_v9  ;;  %v4892_v45 = vcombine.low %v8500_v10, %v8505_v11  ;;  %v4893_v51 = vcombine.low %v8510_v26, %v8515_v27  ;;  %s3409_s12 = smul.u32 112, %s6409_s8  ;;  %s3180_s8 = sadd.s32 1, %s6409_s8  }
 0xac5   : >> { %5667 = vmatpush3.bf16.msra.mxu0 %v4889_v46  ;;  %5994 = vmatpush3.bf16.msra.mxu1 %v4889_v46  ;;  %s8564_s11 = scalar_lea.vmem %s6583_s16, %s5016_s9  ;;  %v4894_v52 = vcombine.low %v8520_v28, %v8525_v29  ;;  %v4895_v54 = vcombine.low %v8530_v36, %v8535_v37  ;;  %v4896_v58 = vcombine.low %v8540_v38, %v8545_v39  ;;  %p3177_p0 = scmp.ge.s32.totalorder %s3180_s8, 2  }
 0xac6   : >> { %5668 = vmatprep.subr.bf16.mxu0 %v6443_v47  ;;  %5987 = vmatprep.subr.bf16.mxu1 %v6443_v47  ;;  %v6254_v53 = vld [vmem:[%s8564_s11 + $0x8] sm:$0xfc]   ;;  %v6255_v50 = vld [vmem:[%s8564_s11 + $0x10] sm:$0xff]   ;;  %v6258_v12 = vld [vmem:[%s8564_s11 + $0x18] sm:$0xff]   ;;  %s8624_s23 = scalar_lea.vmem [#allocation2], %s3409_s12  ;;  %s8751_s27 = smov (%p3177_p0), 0  }
 0xac7   : >> { %5682 = vmatprep.mubr.msk.bf16.mxu0 %vm6444_vm0, %v6443_v47  ;;  %5698 = vmatprep.mubr.msk.bf16.mxu1 %vm6444_vm0, %v6443_v47  ;;  %v6256_v56 = vld [vmem:[%s8564_s11 + $0x28] sm:$0xff]   ;;  %v6257_v57 = vld [vmem:[%s8564_s11 + $0x30] sm:$0xff]   ;;  %v3234_v59 = vrot.slane %v6254_v53, 2  ;;  %v3235_v55 = vrot.slane %v6255_v50, 2  ;;  %v3318_v63 = vsel %vm402_vm1, %v4896_v58, 0  ;;  %v3237_v14 = vrot.slane %v6258_v12, 2 }
 0xac8   : >> { %v3241_v61 = vrot.slane %v6256_v56, 2  ;;  %v3243_v62 = vrot.slane %v6257_v57, 2  ;;  %v6259_v13 = vld [vmem:[%s8564_s11 + $0x38] sm:$0x7f]   ;;  %v6260_v19 = vld [vmem:[%s8564_s11 + $0x20] sm:$0xff]  }
 0xac9   : >> { %5669 = vmatpush3.bf16.msra.mxu0 %v4890_v48  ;;  %5995 = vmatpush3.bf16.msra.mxu1 %v4890_v48  ;;  %v3236_v16 = vsel %vm402_vm1, %v3234_v59, %v3235_v55  ;;  %v3245_v15 = vrot.slane %v6259_v13, 2  ;;  %v3238_v17 = vsel %vm402_vm1, %v3235_v55, %v3237_v14  ;;  %v3239_v20 = vrot.slane %v6260_v19, 2  ;;  %v3411_v23 = vld [vmem:[%s8624_s23] sm:$0xff]  ;;  %v3412_v31 = vld [vmem:[%s8624_s23 + $0x8] sm:$0xff]  ;;  %v3413_v44 = vld [vmem:[%s8624_s23 + $0x10] sm:$0xff] }
 0xaca   : >> { %5670 = vmatprep.subr.bf16.mxu0 %v6443_v47  ;;  %5988 = vmatprep.subr.bf16.mxu1 %v6443_v47  ;;  %v3244_v60 = vsel %vm402_vm1, %v3241_v61, %v3243_v62  ;;  %v3419_v24 = vld [vmem:[%s8624_s23 + $0x40] sm:$0xff]  ;;  %v3420_v33 = vld [vmem:[%s8624_s23 + $0x48] sm:$0xff]  ;;  %v3421_v40 = vld [vmem:[%s8624_s23 + $0x50] sm:$0xff] }
 0xacb   : >> { %v3246_v18 = vsel %vm402_vm1, %v3243_v62, %v3245_v15  ;;  %v3240_v21 = vsel %vm402_vm1, %v3237_v14, %v3239_v20  ;;  %v3242_v22 = vsel %vm402_vm1, %v3239_v20, %v3241_v61  ;;  %v3415_v55 = vld [vmem:[%s8624_s23 + $0x20] sm:$0xff]  ;;  %v8694_v4 = vld [vmem:[%s9229_s1 + $0x2d0] sm:$0xf] (%p3177_p0)  ;;  %v8699_v5 = vld [vmem:[%s9229_s1 + $0x2d4] sm:$0xf] (%p3177_p0) }
 0xacc   : >> { %v3423_v61 = vld [vmem:[%s8624_s23 + $0x60] sm:$0xff]  ;;  %v8704_v6 = vld [vmem:[%s9229_s1 + $0x2d8] sm:$0xf] (%p3177_p0)  ;;  %v8709_v7 = vld [vmem:[%s9229_s1 + $0x2dc] sm:$0xf] (%p3177_p0) }
 0xacd   : >> { %5671 = vmatpush3.bf16.msra.mxu0 %v4891_v49  ;;  %5996 = vmatpush3.bf16.msra.mxu1 %v4891_v49  ;;  %v3422_v49 = vld [vmem:[%s8624_s23 + $0x58] sm:$0xff]  ;;  %v8714_v8 = vld [vmem:[%s9229_s1 + $0x2e0] sm:$0xf] (%p3177_p0)  ;;  %v8719_v9 = vld [vmem:[%s9229_s1 + $0x2e4] sm:$0xf] (%p3177_p0) }
 0xace   : >> { %5672 = vmatprep.subr.bf16.mxu0 %v6443_v47  ;;  %5989 = vmatprep.subr.bf16.mxu1 %v6443_v47  ;;  %v8724_v10 = vld [vmem:[%s9229_s1 + $0x2e8] sm:$0xf] (%p3177_p0)  ;;  %v8729_v11 = vld [vmem:[%s9229_s1 + $0x2ec] sm:$0xf] (%p3177_p0)  ;;  %v8734_v26 = vld [vmem:[%s9229_s1 + $0x2f0] sm:$0xf] (%p3177_p0) }
 0xacf   : > { %v8739_v27 = vld [vmem:[%s9229_s1 + $0x2f4] sm:$0xf] (%p3177_p0)  ;;  %v8744_v28 = vld [vmem:[%s9229_s1 + $0x2f8] sm:$0xf] (%p3177_p0)  ;;  %v8749_v29 = vld [vmem:[%s9229_s1 + $0x2fc] sm:$0x3] (%p3177_p0) }
 0xad1   : >> { %5673 = vmatpush3.bf16.msra.mxu0 %v4892_v45  ;;  %5997 = vmatpush3.bf16.msra.mxu1 %v4892_v45 }
 0xad2   : >> { %5674 = vmatprep.subr.bf16.mxu0 %v6443_v47  ;;  %5990 = vmatprep.subr.bf16.mxu1 %v6443_v47 }
 0xad5   : >> { %5675 = vmatpush3.bf16.msra.mxu0 %v4893_v51  ;;  %5998 = vmatpush3.bf16.msra.mxu1 %v4893_v51 }
 0xad6   : >> { %5676 = vmatprep.subr.bf16.mxu0 %v6443_v47  ;;  %5991 = vmatprep.subr.bf16.mxu1 %v6443_v47 }
 0xad9   : >> { %5677 = vmatpush3.bf16.msra.mxu0 %v4894_v52  ;;  %5999 = vmatpush3.bf16.msra.mxu1 %v4894_v52 }
 0xada   : >> { %5678 = vmatprep.subr.bf16.mxu0 %v6443_v47  ;;  %5992 = vmatprep.subr.bf16.mxu1 %v6443_v47 }
 0xadd   : >> { %5679 = vmatpush3.bf16.msra.mxu0 %v4895_v54  ;;  %6000 = vmatpush3.bf16.msra.mxu1 %v4895_v54 }
 0xade   : >> { %5680 = vmatprep.subr.bf16.mxu0 %v6443_v47  ;;  %5993 = vmatprep.subr.bf16.mxu1 %v6443_v47 }
 0xae1   : >> { %5681 = vmatpush3.bf16.msra.mxu0 %v3318_v63  ;;  %6001 = vmatpush3.bf16.msra.mxu1 %v3318_v63  ;;  %v3416_v63 = vld [vmem:[%s8624_s23 + $0x28] sm:$0xff] }
 0xae4   : >> { %5683 = vmatmul.mubr.msk.bf16.vlgmr.msra.gmra.mrb[0].mxu0 %vm380_vm2, %v3236_v16  ;;  %5699 = vmatmul.mubr.msk.bf16.vlgmr.msra.gmra.mrb[0].mxu1 %vm380_vm2, %v3244_v60  ;;  %v3424_v60 = vld [vmem:[%s8624_s23 + $0x68] sm:$0x1] }
 0xae5   : >> { %5686 = vmatprep.mubr.msk.bf16.mxu0 %vm6444_vm0, %v6443_v47  ;;  %5702 = vmatprep.mubr.msk.bf16.mxu1 %vm6444_vm0, %v6443_v47 }
 0xaec   : >> { %5687 = vmatmul.mubr.msk.bf16.gmra.mrb[4].mxu0 %vm380_vm2, %v3238_v17  ;;  %5703 = vmatmul.mubr.msk.bf16.gmra.mrb[4].mxu1 %vm380_vm2, %v3246_v18 }
 0xaed   : >> { %5690 = vmatprep.mubr.msk.bf16.mxu0 %vm6444_vm0, %v6443_v47  ;;  %5706 = vmatprep.mubr.msk.bf16.mxu1 %vm6444_vm0, %v6443_v47 }
 0xaf4   : >> { %5691 = vmatmul.mubr.msk.bf16.gmra.mrb[8].mxu0 %vm380_vm2, %v3240_v21  ;;  %5707 = vmatmul.mubr.msk.bf16.gmra.mrb[8].mxu1 %vm380_vm2, %v3245_v15 }
 0xaf5   : >> { %5694 = vmatprep.mubr.msk.bf16.mxu0 %vm6444_vm0, %v6443_v47  ;;  %v3414_v47 = vld [vmem:[%s8624_s23 + $0x18] sm:$0xff] }
 0xafc   : >> { %5695 = vmatmul.mubr.msk.bf16.gmra.mrb[12].mxu0 %vm380_vm2, %v3242_v22 }
 0xbb7   : >> { %v3354_v25 = vpop.f32.mrb[0].mxu0  ;;  %v3386_v32 = vpop.f32.mrb[0].mxu1 }
 0xbb8   : >> { %v3425_v34 = vadd.f32 %v3411_v23, %v3354_v25  ;;  %v5684_v30 = vpop.f32.mrb[1].mxu0  ;;  %v3433_v0 = vadd.f32 %v3419_v24, %v3386_v32  ;;  %v5700_v1 = vpop.f32.mrb[1].mxu1  ;;  %v3417_v23 = vld [vmem:[%s8624_s23 + $0x30] sm:$0xff]  ;;  %v3418_v25 = vld [vmem:[%s8624_s23 + $0x38] sm:$0xff] }
 0xbb9   : >> { %v3357_v2 = vpop.f32.mrb[2].mxu0  ;;  %v3389_v3 = vpop.f32.mrb[2].mxu1  ;;  %v8679_v1 = vld [vmem:[%s9229_s1 + $0x2c4] sm:$0xf] (%p3177_p0) }
 0xbba   : >> { %3440 = vst.msk [vmem:[%s8624_s23] sm:$0xff] %vm497_vm3, %v3425_v34  ;;  %v3426_v35 = vadd.f32 %v3412_v31, %v3357_v2  ;;  %v5685_v41 = vpop.f32.mrb[3].mxu0  ;;  %3448 = vst.msk [vmem:[%s8624_s23 + $0x40] sm:$0xff] %vm497_vm3, %v3433_v0  ;;  %v3434_v42 = vadd.f32 %v3420_v33, %v3389_v3  ;;  %v5701_v43 = vpop.f32.mrb[3].mxu1  ;;  %v8674_v0 = vld [vmem:[%s9229_s1 + $0x2c0] sm:$0xf] (%p3177_p0) }
 0xbbb   : > { %v8684_v2 = vld [vmem:[%s9229_s1 + $0x2c8] sm:$0xf] (%p3177_p0)  ;;  %v8689_v3 = vld [vmem:[%s9229_s1 + $0x2cc] sm:$0xf] (%p3177_p0) }
 0xbbc   : >> { %3441 = vst.msk [vmem:[%s8624_s23 + $0x8] sm:$0xff] %vm497_vm3, %v3426_v35  ;;  %3449 = vst.msk [vmem:[%s8624_s23 + $0x48] sm:$0xff] %vm497_vm3, %v3434_v42 }
 0xbbf   : >> { %v3362_v46 = vpop.f32.mrb[4].mxu0  ;;  %v3394_v48 = vpop.f32.mrb[4].mxu1 }
 0xbc0   : >> { %v3427_v45 = vadd.f32 %v3413_v44, %v3362_v46  ;;  %v5688_v51 = vpop.f32.mrb[5].mxu0  ;;  %v3435_v52 = vadd.f32 %v3421_v40, %v3394_v48  ;;  %v5704_v53 = vpop.f32.mrb[5].mxu1 }
 0xbc1   : >> { %v3365_v54 = vpop.f32.mrb[6].mxu0  ;;  %v3397_v50 = vpop.f32.mrb[6].mxu1 }
 0xbc2   : >> { %3442 = vst.msk [vmem:[%s8624_s23 + $0x10] sm:$0xff] %vm497_vm3, %v3427_v45  ;;  %v3428_v56 = vadd.f32 %v3414_v47, %v3365_v54  ;;  %v5689_v57 = vpop.f32.mrb[7].mxu0  ;;  %3450 = vst.msk [vmem:[%s8624_s23 + $0x50] sm:$0xff] %vm497_vm3, %v3435_v52  ;;  %v3436_v58 = vadd.f32 %v3422_v49, %v3397_v50  ;;  %v5705_v59 = vpop.f32.mrb[7].mxu1 }
 0xbc4   : >> { %3443 = vst.msk [vmem:[%s8624_s23 + $0x18] sm:$0xff] %vm497_vm3, %v3428_v56  ;;  %3451 = vst.msk [vmem:[%s8624_s23 + $0x58] sm:$0xff] %vm497_vm3, %v3436_v58 }
 0xbc7   : >> { %v3370_v62 = vpop.f32.mrb[8].mxu0  ;;  %v3402_v16 = vpop.f32.mrb[8].mxu1 }
 0xbc8   : >> { %v3429_v12 = vadd.f32 %v3415_v55, %v3370_v62  ;;  %v5692_v13 = vpop.f32.mrb[9].mxu0  ;;  %v3437_v14 = vadd.f32 %v3423_v61, %v3402_v16  ;;  %v5708_v15 = vpop.f32.mrb[9].mxu1 }
 0xbc9   : >> { %v3373_v17 = vpop.f32.mrb[10].mxu0  ;;  %v3405_v18 = vpop.f32.mrb[10].mxu1 }
 0xbca   : >> { %3444 = vst.msk [vmem:[%s8624_s23 + $0x20] sm:$0xff] %vm497_vm3, %v3429_v12  ;;  %v3430_v19 = vadd.f32 %v3416_v63, %v3373_v17  ;;  %v5693_v20 = vpop.f32.mrb[11].mxu0  ;;  %3452 = vst.msk [vmem:[%s8624_s23 + $0x60] sm:$0xff] %vm497_vm3, %v3437_v14  ;;  %v3438_v21 = vadd.f32 %v3424_v60, %v3405_v18  ;;  %v5709_v22 = vpop.f32.mrb[11].mxu1 }
 0xbcc   : >> { %3445 = vst.msk [vmem:[%s8624_s23 + $0x28] sm:$0xff] %vm497_vm3, %v3430_v19 }
 0xbcd   : >> { %3454 = vst.msk [vmem:[%s8624_s23 + $0x68] sm:$0x1] %vm511_vm4, %v3438_v21 }
 0xbce   : > { %3179 = sbr.rel (!%p3177_p0) target bundleno = 2755 (0xac3), region = 322 }
 0xbcf   : >> { %v3378_v24 = vpop.f32.mrb[12].mxu0 }
 0xbd0   : >> { %v3431_v31 = vadd.f32 %v3417_v23, %v3378_v24  ;;  %v5696_v32 = vpop.f32.mrb[13].mxu0 }
 0xbd1   : >> { %v3381_v33 = vpop.f32.mrb[14].mxu0 }
 0xbd2   : >> { %3446 = vst.msk [vmem:[%s8624_s23 + $0x30] sm:$0xff] %vm497_vm3, %v3431_v31  ;;  %v3432_v34 = vadd.f32 %v3418_v25, %v3381_v33  ;;  %v5697_v30 = vpop.f32.mrb[15].mxu0 }
 0xbd4   : >> { %3447 = vst.msk [vmem:[%s8624_s23 + $0x38] sm:$0xff] %vm497_vm3, %v3432_v34 }
 0xbd5 LB: >> { %v4928_v36 = vcombine.low %v8674_v0, %v8679_v1  ;;  %v6445_v37 = vmov 0.0   ;;  %v4929_v38 = vcombine.low %v8684_v2, %v8689_v3  ;;  %s5017_s28 = smul.u32 68, %s6413_s27  ;;  %vm6446_vm5 = vmmov 0   ;;  %s6413_s27 = sphi %s8751_s27, %s3477_s27  }
 0xbd6   : >> { %5710 = vmatprep.subr.bf16.mxu0 %v6445_v37  ;;  %6002 = vmatprep.subr.bf16.mxu1 %v6445_v37  ;;  %v4930_v39 = vcombine.low %v8694_v4, %v8699_v5  ;;  %v4931_v35 = vcombine.low %v8704_v6, %v8709_v7  ;;  %v4932_v41 = vcombine.low %v8714_v8, %v8719_v9  ;;  %s3706_s30 = smul.u32 112, %s6413_s27  ;;  %s3477_s27 = sadd.s32 1, %s6413_s27  }
 0xbd7   : >> { %5711 = vmatpush3.bf16.msra.mxu0 %v4928_v36  ;;  %6010 = vmatpush3.bf16.msra.mxu1 %v4928_v36  ;;  %s8768_s29 = scalar_lea.vmem %s6583_s16, %s5017_s28  ;;  %v4933_v42 = vcombine.low %v8724_v10, %v8729_v11  ;;  %v4934_v44 = vcombine.low %v8734_v26, %v8739_v27  ;;  %v4935_v48 = vcombine.low %v8744_v28, %v8749_v29  ;;  %p3474_p1 = scmp.ge.s32.totalorder %s3477_s27, 2  }
 0xbd8   : >> { %5712 = vmatprep.subr.bf16.mxu0 %v6445_v37  ;;  %6003 = vmatprep.subr.bf16.mxu1 %v6445_v37  ;;  %v6261_v43 = vld [vmem:[%s8768_s29 + $0x8] sm:$0xf8]   ;;  %v6262_v40 = vld [vmem:[%s8768_s29 + $0x10] sm:$0xff]   ;;  %v6265_v56 = vld [vmem:[%s8768_s29 + $0x18] sm:$0xff]   ;;  %s8828_s7 = scalar_lea.vmem [#allocation2], %s3706_s30  ;;  %s8955_s20 = smov (%p3474_p1), 0  }
 0xbd9   : >> { %5726 = vmatprep.mubr.msk.bf16.mxu0 %vm6446_vm5, %v6445_v37  ;;  %5742 = vmatprep.mubr.msk.bf16.mxu1 %vm6446_vm5, %v6445_v37  ;;  %v6263_v46 = vld [vmem:[%s8768_s29 + $0x28] sm:$0xff]   ;;  %v6264_v47 = vld [vmem:[%s8768_s29 + $0x30] sm:$0xff]   ;;  %v3531_v49 = vrot.slane %v6261_v43, 3  ;;  %v3532_v45 = vrot.slane %v6262_v40, 3  ;;  %v3615_v53 = vsel %vm402_vm1, %v4935_v48, 0  ;;  %v6266_v57 = vld [vmem:[%s8768_s29 + $0x38] sm:$0xff]  }
 0xbda   : >> { %v3538_v51 = vrot.slane %v6263_v46, 3  ;;  %v3540_v52 = vrot.slane %v6264_v47, 3  ;;  %v3534_v58 = vrot.slane %v6265_v56, 3  ;;  %v3542_v59 = vrot.slane %v6266_v57, 3  ;;  %v6267_v62 = vld [vmem:[%s8768_s29 + $0x20] sm:$0xff]  }
 0xbdb   : >> { %5713 = vmatpush3.bf16.msra.mxu0 %v4929_v38  ;;  %6011 = vmatpush3.bf16.msra.mxu1 %v4929_v38  ;;  %v3533_v54 = vsel %vm1182_vm9, %v3531_v49, %v3532_v45  ;;  %v3536_v63 = vrot.slane %v6267_v62, 3  ;;  %v3708_v12 = vld [vmem:[%s8828_s7] sm:$0xff]  ;;  %v3709_v15 = vld [vmem:[%s8828_s7 + $0x8] sm:$0xff]  ;;  %v3710_v34 = vld [vmem:[%s8828_s7 + $0x10] sm:$0xff] }
 0xbdc   : >> { %5714 = vmatprep.subr.bf16.mxu0 %v6445_v37  ;;  %6004 = vmatprep.subr.bf16.mxu1 %v6445_v37  ;;  %v3541_v50 = vsel %vm1182_vm9, %v3538_v51, %v3540_v52  ;;  %v3535_v55 = vsel %vm1182_vm9, %v3532_v45, %v3534_v58  ;;  %v3543_v61 = vsel %vm1182_vm9, %v3540_v52, %v3542_v59  ;;  %v3716_v13 = vld [vmem:[%s8828_s7 + $0x40] sm:$0xff]  ;;  %v3717_v18 = vld [vmem:[%s8828_s7 + $0x48] sm:$0xff]  ;;  %v3718_v30 = vld [vmem:[%s8828_s7 + $0x50] sm:$0xff] }
 0xbdd   : >> { %v3537_v16 = vsel %vm1182_vm9, %v3534_v58, %v3536_v63  ;;  %v3539_v60 = vsel %vm1182_vm9, %v3536_v63, %v3538_v51  ;;  %v3712_v45 = vld [vmem:[%s8828_s7 + $0x20] sm:$0xff]  ;;  %v8898_v0 = vld [vmem:[%s9229_s1 + $0x310] sm:$0xf] (%p3474_p1)  ;;  %v8903_v1 = vld [vmem:[%s9229_s1 + $0x314] sm:$0xf] (%p3474_p1) }
 0xbde   : >> { %v3720_v51 = vld [vmem:[%s8828_s7 + $0x60] sm:$0xff]  ;;  %v8908_v2 = vld [vmem:[%s9229_s1 + $0x318] sm:$0xf] (%p3474_p1)  ;;  %v8913_v3 = vld [vmem:[%s9229_s1 + $0x31c] sm:$0xf] (%p3474_p1) }
 0xbdf   : >> { %5715 = vmatpush3.bf16.msra.mxu0 %v4930_v39  ;;  %6012 = vmatpush3.bf16.msra.mxu1 %v4930_v39  ;;  %v3719_v39 = vld [vmem:[%s8828_s7 + $0x58] sm:$0xff]  ;;  %v8918_v4 = vld [vmem:[%s9229_s1 + $0x320] sm:$0xf] (%p3474_p1)  ;;  %v8923_v5 = vld [vmem:[%s9229_s1 + $0x324] sm:$0xf] (%p3474_p1) }
 0xbe0   : >> { %5716 = vmatprep.subr.bf16.mxu0 %v6445_v37  ;;  %6005 = vmatprep.subr.bf16.mxu1 %v6445_v37  ;;  %v8928_v6 = vld [vmem:[%s9229_s1 + $0x328] sm:$0xf] (%p3474_p1)  ;;  %v8933_v7 = vld [vmem:[%s9229_s1 + $0x32c] sm:$0xf] (%p3474_p1)  ;;  %v8938_v8 = vld [vmem:[%s9229_s1 + $0x330] sm:$0xf] (%p3474_p1) }
 0xbe1   : > { %v8943_v9 = vld [vmem:[%s9229_s1 + $0x334] sm:$0xf] (%p3474_p1)  ;;  %v8948_v10 = vld [vmem:[%s9229_s1 + $0x338] sm:$0xf] (%p3474_p1)  ;;  %v8953_v11 = vld [vmem:[%s9229_s1 + $0x33c] sm:$0x3] (%p3474_p1) }
 0xbe3   : >> { %5717 = vmatpush3.bf16.msra.mxu0 %v4931_v35  ;;  %6013 = vmatpush3.bf16.msra.mxu1 %v4931_v35 }
 0xbe4   : >> { %5718 = vmatprep.subr.bf16.mxu0 %v6445_v37  ;;  %6006 = vmatprep.subr.bf16.mxu1 %v6445_v37 }
 0xbe7   : >> { %5719 = vmatpush3.bf16.msra.mxu0 %v4932_v41  ;;  %6014 = vmatpush3.bf16.msra.mxu1 %v4932_v41 }
 0xbe8   : >> { %5720 = vmatprep.subr.bf16.mxu0 %v6445_v37  ;;  %6007 = vmatprep.subr.bf16.mxu1 %v6445_v37 }
 0xbeb   : >> { %5721 = vmatpush3.bf16.msra.mxu0 %v4933_v42  ;;  %6015 = vmatpush3.bf16.msra.mxu1 %v4933_v42 }
 0xbec   : >> { %5722 = vmatprep.subr.bf16.mxu0 %v6445_v37  ;;  %6008 = vmatprep.subr.bf16.mxu1 %v6445_v37 }
 0xbef   : >> { %5723 = vmatpush3.bf16.msra.mxu0 %v4934_v44  ;;  %6016 = vmatpush3.bf16.msra.mxu1 %v4934_v44 }
 0xbf0   : >> { %5724 = vmatprep.subr.bf16.mxu0 %v6445_v37  ;;  %6009 = vmatprep.subr.bf16.mxu1 %v6445_v37 }
 0xbf3   : >> { %5725 = vmatpush3.bf16.msra.mxu0 %v3615_v53  ;;  %6017 = vmatpush3.bf16.msra.mxu1 %v3615_v53  ;;  %v3713_v53 = vld [vmem:[%s8828_s7 + $0x28] sm:$0xff] }
 0xbf6   : >> { %5727 = vmatmul.mubr.msk.bf16.vlgmr.msra.gmra.mrb[0].mxu0 %vm380_vm2, %v3533_v54  ;;  %5743 = vmatmul.mubr.msk.bf16.vlgmr.msra.gmra.mrb[0].mxu1 %vm380_vm2, %v3541_v50  ;;  %v3721_v50 = vld [vmem:[%s8828_s7 + $0x68] sm:$0x1] }
 0xbf7   : >> { %5730 = vmatprep.mubr.msk.bf16.mxu0 %vm6446_vm5, %v6445_v37  ;;  %5746 = vmatprep.mubr.msk.bf16.mxu1 %vm6446_vm5, %v6445_v37 }
 0xbfe   : >> { %5731 = vmatmul.mubr.msk.bf16.gmra.mrb[4].mxu0 %vm380_vm2, %v3535_v55  ;;  %5747 = vmatmul.mubr.msk.bf16.gmra.mrb[4].mxu1 %vm380_vm2, %v3543_v61 }
 0xbff   : >> { %5734 = vmatprep.mubr.msk.bf16.mxu0 %vm6446_vm5, %v6445_v37  ;;  %5750 = vmatprep.mubr.msk.bf16.mxu1 %vm6446_vm5, %v6445_v37 }
 0xc06   : >> { %5735 = vmatmul.mubr.msk.bf16.gmra.mrb[8].mxu0 %vm380_vm2, %v3537_v16  ;;  %5751 = vmatmul.mubr.msk.bf16.gmra.mrb[8].mxu1 %vm380_vm2, %v3542_v59 }
 0xc07   : >> { %5738 = vmatprep.mubr.msk.bf16.mxu0 %vm6446_vm5, %v6445_v37  ;;  %v3711_v37 = vld [vmem:[%s8828_s7 + $0x18] sm:$0xff] }
 0xc0e   : >> { %5739 = vmatmul.mubr.msk.bf16.gmra.mrb[12].mxu0 %vm380_vm2, %v3539_v60 }
 0xcc9   : >> { %v3651_v14 = vpop.f32.mrb[0].mxu0  ;;  %v3683_v17 = vpop.f32.mrb[0].mxu1 }
 0xcca   : >> { %v3722_v19 = vadd.f32 %v3708_v12, %v3651_v14  ;;  %v5728_v20 = vpop.f32.mrb[1].mxu0  ;;  %v3730_v21 = vadd.f32 %v3716_v13, %v3683_v17  ;;  %v5744_v22 = vpop.f32.mrb[1].mxu1  ;;  %v3714_v12 = vld [vmem:[%s8828_s7 + $0x30] sm:$0xff]  ;;  %v3715_v14 = vld [vmem:[%s8828_s7 + $0x38] sm:$0xff] }
 0xccb   : >> { %v3654_v23 = vpop.f32.mrb[2].mxu0  ;;  %v3686_v24 = vpop.f32.mrb[2].mxu1  ;;  %v8883_v22 = vld [vmem:[%s9229_s1 + $0x304] sm:$0xf] (%p3474_p1) }
 0xccc   : >> { %3737 = vst.msk [vmem:[%s8828_s7] sm:$0xff] %vm497_vm3, %v3722_v19  ;;  %v3723_v25 = vadd.f32 %v3709_v15, %v3654_v23  ;;  %v5729_v31 = vpop.f32.mrb[3].mxu0  ;;  %3745 = vst.msk [vmem:[%s8828_s7 + $0x40] sm:$0xff] %vm497_vm3, %v3730_v21  ;;  %v3731_v32 = vadd.f32 %v3717_v18, %v3686_v24  ;;  %v5745_v33 = vpop.f32.mrb[3].mxu1  ;;  %v8878_v21 = vld [vmem:[%s9229_s1 + $0x300] sm:$0xf] (%p3474_p1) }
 0xccd   : > { %v8888_v23 = vld [vmem:[%s9229_s1 + $0x308] sm:$0xf] (%p3474_p1)  ;;  %v8893_v24 = vld [vmem:[%s9229_s1 + $0x30c] sm:$0xf] (%p3474_p1) }
 0xcce   : >> { %3738 = vst.msk [vmem:[%s8828_s7 + $0x8] sm:$0xff] %vm497_vm3, %v3723_v25  ;;  %3746 = vst.msk [vmem:[%s8828_s7 + $0x48] sm:$0xff] %vm497_vm3, %v3731_v32 }
 0xcd1   : >> { %v3659_v36 = vpop.f32.mrb[4].mxu0  ;;  %v3691_v38 = vpop.f32.mrb[4].mxu1 }
 0xcd2   : >> { %v3724_v35 = vadd.f32 %v3710_v34, %v3659_v36  ;;  %v5732_v41 = vpop.f32.mrb[5].mxu0  ;;  %v3732_v42 = vadd.f32 %v3718_v30, %v3691_v38  ;;  %v5748_v43 = vpop.f32.mrb[5].mxu1 }
 0xcd3   : >> { %v3662_v44 = vpop.f32.mrb[6].mxu0  ;;  %v3694_v40 = vpop.f32.mrb[6].mxu1 }
 0xcd4   : >> { %3739 = vst.msk [vmem:[%s8828_s7 + $0x10] sm:$0xff] %vm497_vm3, %v3724_v35  ;;  %v3725_v46 = vadd.f32 %v3711_v37, %v3662_v44  ;;  %v5733_v47 = vpop.f32.mrb[7].mxu0  ;;  %3747 = vst.msk [vmem:[%s8828_s7 + $0x50] sm:$0xff] %vm497_vm3, %v3732_v42  ;;  %v3733_v48 = vadd.f32 %v3719_v39, %v3694_v40  ;;  %v5749_v49 = vpop.f32.mrb[7].mxu1 }
 0xcd6   : >> { %3740 = vst.msk [vmem:[%s8828_s7 + $0x18] sm:$0xff] %vm497_vm3, %v3725_v46  ;;  %3748 = vst.msk [vmem:[%s8828_s7 + $0x58] sm:$0xff] %vm497_vm3, %v3733_v48 }
 0xcd9   : >> { %v3667_v52 = vpop.f32.mrb[8].mxu0  ;;  %v3699_v54 = vpop.f32.mrb[8].mxu1 }
 0xcda   : >> { %v3726_v56 = vadd.f32 %v3712_v45, %v3667_v52  ;;  %v5736_v57 = vpop.f32.mrb[9].mxu0  ;;  %v3734_v58 = vadd.f32 %v3720_v51, %v3699_v54  ;;  %v5752_v59 = vpop.f32.mrb[9].mxu1 }
 0xcdb   : >> { %v3670_v55 = vpop.f32.mrb[10].mxu0  ;;  %v3702_v61 = vpop.f32.mrb[10].mxu1 }
 0xcdc   : >> { %3741 = vst.msk [vmem:[%s8828_s7 + $0x20] sm:$0xff] %vm497_vm3, %v3726_v56  ;;  %v3727_v62 = vadd.f32 %v3713_v53, %v3670_v55  ;;  %v5737_v63 = vpop.f32.mrb[11].mxu0  ;;  %3749 = vst.msk [vmem:[%s8828_s7 + $0x60] sm:$0xff] %vm497_vm3, %v3734_v58  ;;  %v3735_v16 = vadd.f32 %v3721_v50, %v3702_v61  ;;  %v5753_v60 = vpop.f32.mrb[11].mxu1 }
 0xcde   : >> { %3742 = vst.msk [vmem:[%s8828_s7 + $0x28] sm:$0xff] %vm497_vm3, %v3727_v62 }
 0xcdf   : >> { %3751 = vst.msk [vmem:[%s8828_s7 + $0x68] sm:$0x1] %vm511_vm4, %v3735_v16 }
 0xce0   : > { %3476 = sbr.rel (!%p3474_p1) target bundleno = 3029 (0xbd5), region = 333 }
 0xce1   : >> { %v3675_v13 = vpop.f32.mrb[12].mxu0 }
 0xce2   : >> { %v3728_v15 = vadd.f32 %v3714_v12, %v3675_v13  ;;  %v5740_v17 = vpop.f32.mrb[13].mxu0 }
 0xce3   : >> { %v3678_v18 = vpop.f32.mrb[14].mxu0 }
 0xce4   : >> { %3743 = vst.msk [vmem:[%s8828_s7 + $0x30] sm:$0xff] %vm497_vm3, %v3728_v15  ;;  %v3729_v19 = vadd.f32 %v3715_v14, %v3678_v18  ;;  %v5741_v20 = vpop.f32.mrb[15].mxu0 }
 0xce6   : >> { %3744 = vst.msk [vmem:[%s8828_s7 + $0x38] sm:$0xff] %vm497_vm3, %v3729_v19 }
 0xce7 LB: >> { %v4967_v26 = vcombine.low %v8878_v21, %v8883_v22  ;;  %v6447_v27 = vmov 0.0   ;;  %v4968_v28 = vcombine.low %v8888_v23, %v8893_v24  ;;  %s5018_s22 = smul.u32 68, %s6417_s20  ;;  %vm6448_vm6 = vmmov 0   ;;  %s6417_s20 = sphi %s8955_s20, %s3774_s20  }
 0xce8   : >> { %5754 = vmatprep.subr.bf16.mxu0 %v6447_v27  ;;  %6018 = vmatprep.subr.bf16.mxu1 %v6447_v27  ;;  %v4969_v29 = vcombine.low %v8898_v0, %v8903_v1  ;;  %v4970_v25 = vcombine.low %v8908_v2, %v8913_v3  ;;  %v4971_v31 = vcombine.low %v8918_v4, %v8923_v5  ;;  %s3989_s25 = smul.u32 112, %s6417_s20  ;;  %s3774_s20 = sadd.s32 1, %s6417_s20  }
 0xce9   : >> { %5755 = vmatpush3.bf16.msra.mxu0 %v4967_v26  ;;  %6026 = vmatpush3.bf16.msra.mxu1 %v4967_v26  ;;  %s8967_s24 = scalar_lea.vmem %s6583_s16, %s5018_s22  ;;  %v4972_v32 = vcombine.low %v8928_v6, %v8933_v7  ;;  %v4973_v33 = vcombine.low %v8938_v8, %v8943_v9  ;;  %v4974_v34 = vcombine.low %v8948_v10, %v8953_v11  ;;  %p3771_p2 = scmp.ge.s32.totalorder %s3774_s20, 2  }
 0xcea   : >> { %5756 = vmatprep.subr.bf16.mxu0 %v6447_v27  ;;  %6019 = vmatprep.subr.bf16.mxu1 %v6447_v27  ;;  %v6268_v36 = vld [vmem:[%s8967_s24 + $0xc] sm:$0xff]   ;;  %v6270_v38 = vld [vmem:[%s8967_s24 + $0x14] sm:$0xff]   ;;  %v6272_v35 = vld [vmem:[%s8967_s24 + $0x1c] sm:$0xff]   ;;  %s9003_s26 = scalar_lea.vmem [#allocation2], %s3989_s25  ;;  %s9090_s19 = smov (%p3771_p2), 0  }
 0xceb   : >> { %5770 = vmatprep.mubr.msk.bf16.mxu0 %vm6448_vm6, %v6447_v27  ;;  %5786 = vmatprep.mubr.msk.bf16.mxu1 %vm6448_vm6, %v6447_v27  ;;  %v3898_v30 = vsel %vm402_vm1, %v4974_v34, 0  ;;  %v6269_v37 = vld [vmem:[%s8967_s24 + $0x2c] sm:$0xff]   ;;  %v6271_v39 = vld [vmem:[%s8967_s24 + $0x34] sm:$0xff]   ;;  %v6273_v41 = vld [vmem:[%s8967_s24 + $0x3c] sm:$0x1f]  }
 0xcec   : >> { %v6274_v42 = vld [vmem:[%s8967_s24 + $0x24] sm:$0xff]   ;;  %v9078_v22 = vld [vmem:[%s9232_s4 + $0xc] sm:$0xf] (%p3771_p2)  ;;  %v9083_v23 = vld [vmem:[%s9232_s4 + $0x10] sm:$0xf] (%p3771_p2) }
 0xced   : >> { %5757 = vmatpush3.bf16.msra.mxu0 %v4968_v28  ;;  %6027 = vmatpush3.bf16.msra.mxu1 %v4968_v28  ;;  %v3991_v43 = vld [vmem:[%s9003_s26] sm:$0xff]  ;;  %v3992_v46 = vld [vmem:[%s9003_s26 + $0x8] sm:$0xff]  ;;  %v3993_v59 = vld [vmem:[%s9003_s26 + $0x10] sm:$0xff] }
 0xcee   : >> { %5758 = vmatprep.subr.bf16.mxu0 %v6447_v27  ;;  %6020 = vmatprep.subr.bf16.mxu1 %v6447_v27  ;;  %v3999_v44 = vld [vmem:[%s9003_s26 + $0x40] sm:$0xff]  ;;  %v4000_v48 = vld [vmem:[%s9003_s26 + $0x48] sm:$0xff]  ;;  %v4001_v55 = vld [vmem:[%s9003_s26 + $0x50] sm:$0xff] }
 0xcef   : >> { %v3994_v62 = vld [vmem:[%s9003_s26 + $0x18] sm:$0xff]  ;;  %v4003_v28 = vld [vmem:[%s9003_s26 + $0x60] sm:$0xff]  ;;  %v9073_v21 = vld [vmem:[%s9232_s4 + $0x8] sm:$0xf] (%p3771_p2) }
 0xcf0   : >> { %v4002_v16 = vld [vmem:[%s9003_s26 + $0x58] sm:$0xff]  ;;  %v9088_v24 = vld [vmem:[%s9233_s5] ss:$0 sm:$0xff] (%p3771_p2) }
 0xcf1   : >> { %5759 = vmatpush3.bf16.msra.mxu0 %v4969_v29  ;;  %6028 = vmatpush3.bf16.msra.mxu1 %v4969_v29 }
 0xcf2   : >> { %5760 = vmatprep.subr.bf16.mxu0 %v6447_v27  ;;  %6021 = vmatprep.subr.bf16.mxu1 %v6447_v27 }
 0xcf5   : >> { %5761 = vmatpush3.bf16.msra.mxu0 %v4970_v25  ;;  %6029 = vmatpush3.bf16.msra.mxu1 %v4970_v25  ;;  %v3996_v25 = vld [vmem:[%s9003_s26 + $0x28] sm:$0xff] }
 0xcf6   : >> { %5762 = vmatprep.subr.bf16.mxu0 %v6447_v27  ;;  %6022 = vmatprep.subr.bf16.mxu1 %v6447_v27 }
 0xcf9   : >> { %5763 = vmatpush3.bf16.msra.mxu0 %v4971_v31  ;;  %6030 = vmatpush3.bf16.msra.mxu1 %v4971_v31 }
 0xcfa   : >> { %5764 = vmatprep.subr.bf16.mxu0 %v6447_v27  ;;  %6023 = vmatprep.subr.bf16.mxu1 %v6447_v27 }
 0xcfd   : >> { %5765 = vmatpush3.bf16.msra.mxu0 %v4972_v32  ;;  %6031 = vmatpush3.bf16.msra.mxu1 %v4972_v32  ;;  %v4004_v32 = vld [vmem:[%s9003_s26 + $0x68] sm:$0x1] }
 0xcfe   : >> { %5766 = vmatprep.subr.bf16.mxu0 %v6447_v27  ;;  %6024 = vmatprep.subr.bf16.mxu1 %v6447_v27 }
 0xd01   : >> { %5767 = vmatpush3.bf16.msra.mxu0 %v4973_v33  ;;  %6032 = vmatpush3.bf16.msra.mxu1 %v4973_v33 }
 0xd02   : >> { %5768 = vmatprep.subr.bf16.mxu0 %v6447_v27  ;;  %6025 = vmatprep.subr.bf16.mxu1 %v6447_v27 }
 0xd05   : >> { %5769 = vmatpush3.bf16.msra.mxu0 %v3898_v30  ;;  %6033 = vmatpush3.bf16.msra.mxu1 %v3898_v30 }
 0xd08   : >> { %5771 = vmatmul.mubr.msk.bf16.vlgmr.msra.gmra.mrb[0].mxu0 %vm380_vm2, %v6268_v36  ;;  %5787 = vmatmul.mubr.msk.bf16.vlgmr.msra.gmra.mrb[0].mxu1 %vm380_vm2, %v6269_v37 }
 0xd09   : >> { %5774 = vmatprep.mubr.msk.bf16.mxu0 %vm6448_vm6, %v6447_v27  ;;  %5790 = vmatprep.mubr.msk.bf16.mxu1 %vm6448_vm6, %v6447_v27 }
 0xd10   : >> { %5775 = vmatmul.mubr.msk.bf16.gmra.mrb[4].mxu0 %vm380_vm2, %v6270_v38  ;;  %5791 = vmatmul.mubr.msk.bf16.gmra.mrb[4].mxu1 %vm380_vm2, %v6271_v39 }
 0xd11   : >> { %5778 = vmatprep.mubr.msk.bf16.mxu0 %vm6448_vm6, %v6447_v27  ;;  %5794 = vmatprep.mubr.msk.bf16.mxu1 %vm6448_vm6, %v6447_v27 }
 0xd18   : >> { %5779 = vmatmul.mubr.msk.bf16.gmra.mrb[8].mxu0 %vm380_vm2, %v6272_v35  ;;  %5795 = vmatmul.mubr.msk.bf16.gmra.mrb[8].mxu1 %vm380_vm2, %v6273_v41 }
 0xd19   : >> { %5782 = vmatprep.mubr.msk.bf16.mxu0 %vm6448_vm6, %v6447_v27  ;;  %v3995_v27 = vld [vmem:[%s9003_s26 + $0x20] sm:$0xff] }
 0xd20   : >> { %5783 = vmatmul.mubr.msk.bf16.gmra.mrb[12].mxu0 %vm380_vm2, %v6274_v42 }
 0xddb   : >> { %v3934_v40 = vpop.f32.mrb[0].mxu0  ;;  %v3966_v47 = vpop.f32.mrb[0].mxu1 }
 0xddc   : >> { %v4005_v49 = vadd.f32 %v3991_v43, %v3934_v40  ;;  %v5772_v45 = vpop.f32.mrb[1].mxu0  ;;  %v4013_v51 = vadd.f32 %v3999_v44, %v3966_v47  ;;  %v5788_v52 = vpop.f32.mrb[1].mxu1  ;;  %v3997_v43 = vld [vmem:[%s9003_s26 + $0x30] sm:$0xff]  ;;  %v3998_v40 = vld [vmem:[%s9003_s26 + $0x38] sm:$0xff] }
 0xddd   : >> { %v3937_v53 = vpop.f32.mrb[2].mxu0  ;;  %v3969_v54 = vpop.f32.mrb[2].mxu1  ;;  %v9058_v52 = vld [vmem:[%s9231_s3] sm:$0x3] (%p3771_p2) }
 0xdde   : >> { %4020 = vst.msk [vmem:[%s9003_s26] sm:$0xff] %vm497_vm3, %v4005_v49  ;;  %v4006_v50 = vadd.f32 %v3992_v46, %v3937_v53  ;;  %v5773_v56 = vpop.f32.mrb[3].mxu0  ;;  %4028 = vst.msk [vmem:[%s9003_s26 + $0x40] sm:$0xff] %vm497_vm3, %v4013_v51  ;;  %v4014_v57 = vadd.f32 %v4000_v48, %v3969_v54  ;;  %v5789_v58 = vpop.f32.mrb[3].mxu1  ;;  %v9053_v51 = vld [vmem:[%s9230_s2] ss:$0 sm:$0xff] (%p3771_p2) }
 0xddf   : > { %v9063_v53 = vld [vmem:[%s9232_s4] sm:$0xf] (%p3771_p2)  ;;  %v9068_v54 = vld [vmem:[%s9232_s4 + $0x4] sm:$0xf] (%p3771_p2) }
 0xde0   : >> { %4021 = vst.msk [vmem:[%s9003_s26 + $0x8] sm:$0xff] %vm497_vm3, %v4006_v50  ;;  %4029 = vst.msk [vmem:[%s9003_s26 + $0x48] sm:$0xff] %vm497_vm3, %v4014_v57 }
 0xde3   : >> { %v3942_v61 = vpop.f32.mrb[4].mxu0  ;;  %v3974_v63 = vpop.f32.mrb[4].mxu1 }
 0xde4   : >> { %v4007_v60 = vadd.f32 %v3993_v59, %v3942_v61  ;;  %v5776_v12 = vpop.f32.mrb[5].mxu0  ;;  %v4015_v13 = vadd.f32 %v4001_v55, %v3974_v63  ;;  %v5792_v14 = vpop.f32.mrb[5].mxu1 }
 0xde5   : >> { %v3945_v15 = vpop.f32.mrb[6].mxu0  ;;  %v3977_v17 = vpop.f32.mrb[6].mxu1 }
 0xde6   : >> { %4022 = vst.msk [vmem:[%s9003_s26 + $0x10] sm:$0xff] %vm497_vm3, %v4007_v60  ;;  %v4008_v18 = vadd.f32 %v3994_v62, %v3945_v15  ;;  %v5777_v19 = vpop.f32.mrb[7].mxu0  ;;  %4030 = vst.msk [vmem:[%s9003_s26 + $0x50] sm:$0xff] %vm497_vm3, %v4015_v13  ;;  %v4016_v20 = vadd.f32 %v4002_v16, %v3977_v17  ;;  %v5793_v26 = vpop.f32.mrb[7].mxu1 }
 0xde8   : >> { %4023 = vst.msk [vmem:[%s9003_s26 + $0x18] sm:$0xff] %vm497_vm3, %v4008_v18  ;;  %4031 = vst.msk [vmem:[%s9003_s26 + $0x58] sm:$0xff] %vm497_vm3, %v4016_v20 }
 0xdeb   : >> { %v3950_v29 = vpop.f32.mrb[8].mxu0  ;;  %v3982_v31 = vpop.f32.mrb[8].mxu1 }
 0xdec   : >> { %v4009_v33 = vadd.f32 %v3995_v27, %v3950_v29  ;;  %v5780_v34 = vpop.f32.mrb[9].mxu0  ;;  %v4017_v30 = vadd.f32 %v4003_v28, %v3982_v31  ;;  %v5796_v36 = vpop.f32.mrb[9].mxu1 }
 0xded   : >> { %v3953_v37 = vpop.f32.mrb[10].mxu0  ;;  %v3985_v38 = vpop.f32.mrb[10].mxu1 }
 0xdee   : >> { %4024 = vst.msk [vmem:[%s9003_s26 + $0x20] sm:$0xff] %vm497_vm3, %v4009_v33  ;;  %v4010_v39 = vadd.f32 %v3996_v25, %v3953_v37  ;;  %v5781_v35 = vpop.f32.mrb[11].mxu0  ;;  %4032 = vst.msk [vmem:[%s9003_s26 + $0x60] sm:$0xff] %vm497_vm3, %v4017_v30  ;;  %v4018_v41 = vadd.f32 %v4004_v32, %v3985_v38  ;;  %v5797_v42 = vpop.f32.mrb[11].mxu1 }
 0xdf0   : >> { %4025 = vst.msk [vmem:[%s9003_s26 + $0x28] sm:$0xff] %vm497_vm3, %v4010_v39 }
 0xdf1   : >> { %4034 = vst.msk [vmem:[%s9003_s26 + $0x68] sm:$0x1] %vm511_vm4, %v4018_v41 }
 0xdf2   : > { %3773 = sbr.rel (!%p3771_p2) target bundleno = 3303 (0xce7), region = 344 }
 0xdf3   : >> { %v3958_v44 = vpop.f32.mrb[12].mxu0 }
 0xdf4   : >> { %v4011_v46 = vadd.f32 %v3997_v43, %v3958_v44  ;;  %v5784_v47 = vpop.f32.mrb[13].mxu0 }
 0xdf5   : >> { %v3961_v48 = vpop.f32.mrb[14].mxu0 }
 0xdf6   : >> { %4026 = vst.msk [vmem:[%s9003_s26 + $0x30] sm:$0xff] %vm497_vm3, %v4011_v46  ;;  %v4012_v49 = vadd.f32 %v3998_v40, %v3961_v48  ;;  %v5785_v45 = vpop.f32.mrb[15].mxu0 }
 0xdf8   : >> { %4027 = vst.msk [vmem:[%s9003_s26 + $0x38] sm:$0xff] %vm497_vm3, %v4012_v49 }
 0xdf9 LB: >> { %v6449_v0 = vmov 0.0   ;;  %vm6450_vm1 = vmmov 0   ;;  %v4999_v1 = vcombine.low %v9063_v53, %v9068_v54  ;;  %s4061_s20 = smul.u32 112, %s6421_s19  ;;  %v5000_v2 = vcombine.low %v9073_v21, %v9078_v22  ;;  %s5003_s24 = sshll.u32 %s6421_s19, 2  ;;  %s6421_s19 = sphi %s9090_s19, %s4060_s19  }
 0xdfa   : >> { %5798 = vmatprep.subr.bf16.mxu0 %v6449_v0  ;;  %5812 = vmatprep.mubr.msk.bf16.mxu0 %vm6450_vm1, %v6449_v0  ;;  %s4297_s25 = scalar_lea.vmem %s6568_s10, %s5003_s24  ;;  %s4060_s19 = sadd.s32 1, %s6421_s19  }
 0xdfb   : >> { %5816 = vmatprep.subr.bf16.mxu1 %v6449_v0  ;;  %5822 = vmatprep.mubr.msk.bf16.mxu1 %vm6450_vm1, %v6449_v0  ;;  %s9105_s22 = scalar_lea.vmem [#allocation2], %s4061_s20  ;;  %p4057_p3 = scmp.ge.s32.totalorder %s4060_s19, 2  }
 0xdfc   : >> { %5817 = vmatpush3.bf16.msra.mxu1 %v4999_v1 }
 0xdfd   : >> { %5818 = vmatprep.subr.bf16.mxu1 %v6449_v0 }
 0xdff   : >> { %v4063_v3 = vld [vmem:[%s9105_s22] sm:$0xff]  ;;  %v4064_v4 = vld [vmem:[%s9105_s22 + $0x8] sm:$0xff]  ;;  %v4065_v5 = vld [vmem:[%s9105_s22 + $0x10] sm:$0xff] }
 0xe00   : >> { %v9111_v6 = vadd.f32 %v9053_v51, %v4063_v3  ;;  %v9114_v7 = vadd.f32 %v9053_v51, %v4064_v4  ;;  %v4066_v8 = vld [vmem:[%s9105_s22 + $0x18] sm:$0xff]  ;;  %v9118_v9 = vadd.f32 %v9053_v51, %v4065_v5  ;;  %v4067_v10 = vld [vmem:[%s9105_s22 + $0x20] sm:$0xff]  ;;  %v4068_v11 = vld [vmem:[%s9105_s22 + $0x28] sm:$0xff]  ;;  %5819 = vmatpush3.bf16.msra.mxu1 %v5000_v2 }
 0xe01   : >> { %v9123_v50 = vadd.f32 %v9053_v51, %v4066_v8  ;;  %v9126_v56 = vadd.f32 %v9053_v51, %v4067_v10  ;;  %v9129_v57 = vadd.f32 %v9053_v51, %v4068_v11  ;;  %5820 = vmatprep.subr.bf16.mxu1 %v6449_v0  ;;  %v4069_v62 = vld [vmem:[%s9105_s22 + $0x30] sm:$0xff]  ;;  %v4070_v63 = vld [vmem:[%s9105_s22 + $0x38] sm:$0xff]  ;;  %v4071_v16 = vld [vmem:[%s9105_s22 + $0x40] sm:$0xff] }
 0xe02   : >> { %v4105_v58 = vmin.f32 %v9111_v6, 0.0  ;;  %v4106_v59 = vmin.f32 %v9114_v7, 0.0  ;;  %v4107_v55 = vmin.f32 %v9118_v9, 0.0  ;;  %v4072_v13 = vld [vmem:[%s9105_s22 + $0x48] sm:$0xff]  ;;  %v9143_v19 = vadd.f32 %v9053_v51, %v4069_v62  ;;  %v4073_v31 = vld [vmem:[%s9105_s22 + $0x50] sm:$0xff]  ;;  %v4074_v32 = vld [vmem:[%s9105_s22 + $0x58] sm:$0xff] }
 0xe03   : >> { %v4108_v61 = vmin.f32 %v9123_v50, 0.0  ;;  %v4109_v17 = vmin.f32 %v9126_v56, 0.0  ;;  %v4110_v18 = vmin.f32 %v9129_v57, 0.0  ;;  %v9146_v20 = vadd.f32 %v9053_v51, %v4070_v63  ;;  %v4075_v34 = vld [vmem:[%s9105_s22 + $0x60] sm:$0xff]  ;;  %v4076_v41 = vld [vmem:[%s9105_s22 + $0x68] sm:$0x1] }
 0xe04   : >> { %v4119_v60 = vmul.f32 1.442695, %v4105_v58  ;;  %v4121_v12 = vmul.f32 1.442695, %v4106_v59  ;;  %v4123_v14 = vmul.f32 1.442695, %v4107_v55  ;;  %v9149_v26 = vadd.f32 %v9053_v51, %v4071_v16 }
 0xe05   : >> { %v4125_v15 = vmul.f32 1.442695, %v4108_v61  ;;  %v4127_v27 = vmul.f32 1.442695, %v4109_v17  ;;  %v4129_v28 = vmul.f32 1.442695, %v4110_v18  ;;  %v9152_v29 = vadd.f32 %v9053_v51, %v4072_v13 }
 0xe06   : >> { %6275 = vpow2.f32 %v4119_v60  ;;  %v4111_v25 = vmin.f32 %v9143_v19, 0.0  ;;  %v4112_v33 = vmin.f32 %v9146_v20, 0.0  ;;  %v4113_v36 = vmin.f32 %v9149_v26, 0.0 }
 0xe07   : >> { %6277 = vpow2.f32 %v4121_v12  ;;  %v4114_v37 = vmin.f32 %v9152_v29, 0.0  ;;  %v9162_v39 = vadd.f32 %v9053_v51, %v4073_v31  ;;  %v9165_v35 = vadd.f32 %v9053_v51, %v4074_v32 }
 0xe08   : >> { %6279 = vpow2.f32 %v4123_v14  ;;  %v4131_v30 = vmul.f32 1.442695, %v4111_v25  ;;  %v4133_v38 = vmul.f32 1.442695, %v4112_v33  ;;  %v4135_v42 = vmul.f32 1.442695, %v4113_v36 }
 0xe09   : >> { %6281 = vpow2.f32 %v4125_v15  ;;  %v4137_v43 = vmul.f32 1.442695, %v4114_v37  ;;  %v9169_v44 = vadd.f32 %v9053_v51, %v4075_v34  ;;  %v4115_v40 = vmin.f32 %v9162_v39, 0.0 }
 0xe0a   : >> { %6283 = vpow2.f32 %v4127_v27  ;;  %v4116_v46 = vmin.f32 %v9165_v35, 0.0  ;;  %v9174_v47 = vadd.f32 %v9053_v51, %v4076_v41  ;;  %vm4091_vm2 = vcmp.gt.f32.partialorder %v9111_v6, 0.0 }
 0xe0b   : >> { %6285 = vpow2.f32 %v4129_v28  ;;  %v4139_v48 = vmul.f32 1.442695, %v4115_v40  ;;  %v4117_v49 = vmin.f32 %v9169_v44, 0.0  ;;  %vm4092_vm4 = vcmp.gt.f32.partialorder %v9114_v7, 0.0 }
 0xe0c   : >> { %6287 = vpow2.f32 %v4131_v30  ;;  %v4141_v1 = vmul.f32 1.442695, %v4116_v46  ;;  %v4118_v2 = vmin.f32 %v9174_v47, 0.0  ;;  %vm4093_vm7 = vcmp.gt.f32.partialorder %v9118_v9, 0.0 }
 0xe0d   : >> { %6289 = vpow2.f32 %v4133_v38  ;;  %v4143_v5 = vmul.f32 1.442695, %v4117_v49  ;;  %vm4094_vm8 = vcmp.gt.f32.partialorder %v9123_v50, 0.0  ;;  %vm4095_vm10 = vcmp.gt.f32.partialorder %v9126_v56, 0.0 }
 0xe0e   : >> { %6291 = vpow2.f32 %v4135_v42  ;;  %v4145_v11 = vmul.f32 1.442695, %v4118_v2  ;;  %vm4096_vm11 = vcmp.gt.f32.partialorder %v9129_v57, 0.0  ;;  %vm4097_vm12 = vcmp.gt.f32.partialorder %v9143_v19, 0.0 }
 0xe0f   : >> { %6293 = vpow2.f32 %v4137_v43  ;;  %vm4098_vm13 = vcmp.gt.f32.partialorder %v9146_v20, 0.0  ;;  %vm4099_vm14 = vcmp.gt.f32.partialorder %v9149_v26, 0.0  ;;  %vm4100_vm15 = vcmp.gt.f32.partialorder %v9152_v29, 0.0 }
 0xe10   : >> { %v6276_v45 = vpop.eup %6275  ;;  %6295 = vpow2.f32 %v4139_v48  ;;  %vm4101_vm0 = vcmp.gt.f32.partialorder %v9162_v39, 0.0  ;;  %vm4102_vm5 = vcmp.gt.f32.partialorder %v9165_v35, 0.0  ;;  %vm4103_vm6 = vcmp.gt.f32.partialorder %v9169_v44, 0.0 }
 0xe11   : >> { %v6278_v3 = vpop.eup %6277  ;;  %v4984_v4 = vadd.f32 -1.0, %v6276_v45  ;;  %6297 = vpow2.f32 %v4141_v1  ;;  %vm4104_vm1 = vcmp.gt.f32.partialorder %v9174_v47, 0.0  ;;  %v6451_v45 = vmov 65535  }
 0xe12   : >> { %v6280_v8 = vpop.eup %6279  ;;  %v4985_v10 = vadd.f32 -1.0, %v6278_v3  ;;  %6299 = vpow2.f32 %v4143_v5 }
 0xe13   : >> { %v6282_v58 = vpop.eup %6281  ;;  %v4161_v59 = vsel %vm4091_vm2, %v9111_v6, %v4984_v4  ;;  %v4986_v55 = vadd.f32 -1.0, %v6280_v8  ;;  %6301 = vpow2.f32 %v4145_v11  ;;  %vm4186_vm2 = vcmask 1043456  }
 0xe14   : >> { %v6284_v61 = vpop.eup %6283  ;;  %v4162_v62 = vsel %vm4092_vm4, %v9114_v7, %v4985_v10  ;;  %v4987_v63 = vadd.f32 -1.0, %v6282_v58  ;;  %v4188_v1 = vsel %vm4186_vm2, 4294967295, %v6451_v45  ;;  %vm4182_vm4 = vcmask 859136  }
 0xe15   : >> { %v6286_v16 = vpop.eup %6285  ;;  %v4175_v60 = vpack.c.bf16 %v4162_v62, %v4161_v59  ;;  %v4163_v12 = vsel %vm4093_vm7, %v9118_v9, %v4986_v55  ;;  %v4988_v13 = vadd.f32 -1.0, %v6284_v61  ;;  %v4189_v4 = vsel %vm1182_vm9, %v4188_v1, 0 }
 0xe16   : >> { %v6288_v14 = vpop.eup %6287  ;;  %v4164_v6 = vsel %vm4094_vm8, %v9123_v50, %v4987_v63  ;;  %v4989_v15 = vadd.f32 -1.0, %v6286_v16  ;;  %vm4298_vm7 = vcmask 321536  }
 0xe17   : >> { %v6290_v17 = vpop.eup %6289  ;;  %5799 = vmatpush3.bf16.msra.mxu0 %v4175_v60  ;;  %v4176_v18 = vpack.c.bf16 %v4164_v6, %v4163_v12  ;;  %v4165_v7 = vsel %vm4095_vm10, %v9126_v56, %v4988_v13  ;;  %v4990_v25 = vadd.f32 -1.0, %v6288_v14 }
 0xe18   : >> { %v6292_v27 = vpop.eup %6291  ;;  %5800 = vmatprep.subr.bf16.mxu0 %v6449_v0  ;;  %v4166_v28 = vsel %vm4096_vm11, %v9129_v57, %v4989_v15  ;;  %v4991_v31 = vadd.f32 -1.0, %v6290_v17 }
 0xe19   : >> { %v6294_v9 = vpop.eup %6293  ;;  %v4177_v50 = vpack.c.bf16 %v4166_v28, %v4165_v7  ;;  %v4992_v33 = vadd.f32 -1.0, %v6292_v27  ;;  %v4167_v36 = vsel %vm4097_vm12, %v9143_v19, %v4990_v25 }
 0xe1a   : >> { %v6296_v32 = vpop.eup %6295  ;;  %v4993_v34 = vadd.f32 -1.0, %v6294_v9  ;;  %v4168_v56 = vsel %vm4098_vm13, %v9146_v20, %v4991_v31 }
 0xe1b   : >> { %5801 = vmatpush3.bf16.msra.mxu0 %v4176_v18  ;;  %v6298_v30 = vpop.eup %6297  ;;  %v4178_v38 = vpack.c.bf16 %v4168_v56, %v4167_v36  ;;  %v4169_v41 = vsel %vm4099_vm14, %v9149_v26, %v4992_v33  ;;  %v4994_v43 = vadd.f32 -1.0, %v6296_v32 }
 0xe1c   : >> { %5802 = vmatprep.subr.bf16.mxu0 %v6449_v0  ;;  %v6300_v57 = vpop.eup %6299  ;;  %v4170_v42 = vsel %vm4100_vm15, %v9152_v29, %v4993_v34  ;;  %v4995_v40 = vadd.f32 -1.0, %v6298_v30 }
 0xe1d   : >> { %v6302_v37 = vpop.eup %6301  ;;  %v4996_v46 = vadd.f32 -1.0, %v6300_v57  ;;  %v4179_v20 = vpack.c.bf16 %v4170_v42, %v4169_v41  ;;  %v4171_v26 = vsel %vm4101_vm0, %v9162_v39, %v4994_v43  ;;  %v5001_v39 = vcombine.low %v9083_v23, %v9083_v23 }
 0xe1e   : >> { %v4997_v19 = vadd.f32 -1.0, %v6302_v37  ;;  %v4172_v29 = vsel %vm4102_vm5, %v9165_v35, %v4995_v40 }
 0xe1f   : >> { %5803 = vmatpush3.bf16.msra.mxu0 %v4177_v50  ;;  %v4173_v48 = vsel %vm4103_vm6, %v9169_v44, %v4996_v46  ;;  %v4180_v2 = vpack.c.bf16 %v4172_v29, %v4171_v26  ;;  %v4254_v35 = vsel %vm4186_vm2, %v5001_v39, 0 }
 0xe20   : >> { %5804 = vmatprep.subr.bf16.mxu0 %v6449_v0  ;;  %v4174_v49 = vsel %vm4104_vm1, %v9174_v47, %v4997_v19  ;;  %5821 = vmatpush3.bf16.msra.mxu1 %v4254_v35 }
 0xe21   : >> { %v4181_v3 = vpack.c.bf16 %v4174_v49, %v4173_v48 }
 0xe23   : >> { %5805 = vmatpush3.bf16.msra.mxu0 %v4178_v38  ;;  %v4191_v5 = vand.u32 %v4189_v4, %v4181_v3 }
 0xe24   : >> { %5806 = vmatprep.subr.bf16.mxu0 %v6449_v0 }
 0xe27   : >> { %5807 = vmatpush3.bf16.msra.mxu0 %v4179_v20 }
 0xe28   : >> { %5808 = vmatprep.subr.bf16.mxu0 %v6449_v0 }
 0xe2b   : >> { %5809 = vmatpush3.bf16.msra.mxu0 %v4180_v2 }
 0xe2c   : >> { %5810 = vmatprep.subr.bf16.mxu0 %v6449_v0 }
 0xe2f   : >> { %5811 = vmatpush3.bf16.msra.mxu0 %v4191_v5 }
 0xe32   : >> { %5813 = vmatmul.mubr.msk.bf16.vlgmr.msra.gmra.mrb[0].mxu0 %vm4182_vm4, %v9058_v52 }
 0xf05   : >> { %v4227_v44 = vpop.f32.mrb[0].mxu0 }
 0xf06   : >> { %v4233_v47 = vpack.c.bf16 %v4227_v44, %v4227_v44  ;;  %v5814_v8 = vpop.f32.mrb[1].mxu0 }
 0xf07   : >> { %v4230_v10 = vpop.f32.mrb[2].mxu0 }
 0xf08   : >> { %v5815_v11 = vpop.f32.mrb[3].mxu0  ;;  %5823 = vmatmul.mubr.msk.bf16.vlgmr.msra.gmra.mrb[0].mxu1 %vm497_vm3, %v4233_v47 }
 0xfd8   : > { %4059 = sbr.rel (!%p4057_p3) target bundleno = 3577 (0xdf9), region = 355 }
 0xfdb   : >> { %v4290_v58 = vpop.f32.mrb[0].mxu1 }
 0xfdc   : >> { %v4291_v0 = vadd.f32 %v9088_v24, %v4290_v58  ;;  %v5824_v59 = vpop.f32.mrb[1].mxu1 }
 0xfdd   : >> { %v4293_v55 = vpop.f32.mrb[2].mxu1 }
 0xfde   : >> { %4299 = vst.msk [vmem:[%s4297_s25] sm:$0x7] %vm4298_vm7, %v4291_v0  ;;  %v5825_v61 = vpop.f32.mrb[3].mxu1 }
 0xfdf PF: > { %s16_s21 = sadd.s32 1, %s6365_s21  }
 0xfe0   : > { %p13_p4 = scmp.ge.s32.totalorder %s16_s21, 4  }
 0xfe2   :  { %15 = sbr.rel (!%p13_p4) target bundleno = 1 (0x1), region = 366 }

</bundles_post_ra>
